<compile_context>
chip_gen: v5e
topology: v5e:2x2
jax: 0.10.0
libtpu: 0.0.40
codegen_flags: <defaults>
</compile_context>

<pallas_src>
import functools

import numpy as np
import jax
import jax.numpy as jnp
from jax import lax
from jax.experimental import pallas as pl
from jax.experimental.pallas import tpu as pltpu

LN_EPS = 1e-5        # actionformer-style channel LayerNorm eps
GN_EPS = 1e-5        # nn.GroupNorm default eps
N_GROUPS_GN = 16
_N_FIXED_COLS = 12   # packed per-channel param columns before the conv taps


def _gelu_exact(x):
    # torch.nn.GELU default (approximate='none'), erf-based
    return 0.5 * x * (1.0 + lax.erf(x * 0.7071067811865476))


# -----------------------------------------------------------------------------
# Pallas kernel: DynESCConvLayer forward for one (C, T) batch element.
# -----------------------------------------------------------------------------
def dynesc_kernel(x_ref, mask_ref, pp_ref, sqbd_ref, wcp_ref, gwcoff_ref,
                  gind_r_ref, gind_b_ref, mlp1_w_ref, mlp1_b_ref, mlp2_w_ref,
                  o_ref, *, ksize, up_size, gk, n_groups, t_chunk):
    f32, bf16 = jnp.float32, jnp.bfloat16

    x = x_ref[...].astype(f32)          # (C, T)
    msk = mask_ref[...].astype(f32)     # (1, T)
    C, T = x.shape
    sq = C // 4
    p1, p2 = ksize // 2, up_size // 2

    # ---- packed per-channel parameters (C, P), static column slices ----
    pp = pp_ref[...]
    ln_w, ln_b = pp[:, 0:1], pp[:, 1:2]
    fc_w, fc_b = pp[:, 2:3], pp[:, 3:4]
    gfc_w, gfc_b = pp[:, 4:5], pp[:, 5:6]
    gwc_b = pp[:, 6:7]
    gn_w, gn_b = pp[:, 7:8], pp[:, 8:9]
    mlp2_b = pp[:, 9:10]
    psi_b = pp[:, 10:11]
    cwk_b = pp[:, 11:12]
    psi_w = pp[:, _N_FIXED_COLS:_N_FIXED_COLS + ksize]                    # (C, ksize)
    cwk_w = pp[:, _N_FIXED_COLS + ksize:_N_FIXED_COLS + ksize + up_size]  # (C, up_size)

    # time shift via lane roll (XLU slot) + edge mask: result[..., t] = v[..., t + o]
    col = lax.broadcasted_iota(jnp.int32, (1, T), 1)

    def tshift(v, o):
        if o == 0:
            return v
        r = pltpu.roll(v, shift=(-o) % T, axis=1)
        if o > 0:
            return jnp.where(col < T - o, r, 0.0)
        return jnp.where(col >= -o, r, 0.0)

    def mm(w_bf16, v):
        # (O, K) @ (K, T) on the MXU, bf16 operands, f32 accumulation.
        return jnp.dot(w_bf16, v.astype(bf16), preferred_element_type=f32)

    # ---------------- LayerNorm over the channel dim ----------------
    mu = jnp.mean(x, axis=0, keepdims=True)
    xc = x - mu
    var = jnp.mean(xc * xc, axis=0, keepdims=True)
    ln = xc * lax.rsqrt(var + LN_EPS) * ln_w + ln_b                  # (C, T)

    # ---------------- depthwise convs: stream shifted copies ----------------
    # one shifted (C,T) copy live at a time; shared between psi and (convw+convkw)
    psi = psi_b + psi_w[:, p1:p1 + 1] * ln
    cwk = cwk_b + cwk_w[:, p2:p2 + 1] * ln
    for o in [oo for oo in range(-p2, p2 + 1) if oo != 0]:
        t = tshift(ln, o)
        cwk = cwk + cwk_w[:, o + p2:o + p2 + 1] * t
        if -p1 <= o <= p1:
            psi = psi + psi_w[:, o + p1:o + p1 + 1] * t

    fc = fc_w * ln + fc_b
    phi = jax.nn.relu(gfc_w * jnp.mean(ln, axis=1, keepdims=True) + gfc_b)
    out = fc * phi + jax.nn.relu(cwk) * psi + ln                     # (C, T)

    # ---------------- CRU ----------------
    # [up_s ; low_s] = blockdiag(squeeze1, squeeze2) @ out
    slo = mm(sqbd_ref[...], out)                                     # (C/2, T)
    up_s = slo[:sq, :]
    # center GWC tap (+PWC1 folded in) and [PWC2; I] as ONE block matmul on slo
    y12 = mm(wcp_ref[...], slo)                                      # (2C, T)
    y1 = y12[:C, :] + gwc_b
    y2 = y12[C:, :]                                                  # = [PWC2(low_s); low_s]
    # off-center GWC taps: roll commutes with the channel contraction
    yoff = mm(gwcoff_ref[...], up_s)                                 # ((gk-1)*C, T)
    idx = 0
    for o in range(-(gk // 2), gk // 2 + 1):
        if o == 0:
            continue
        y1 = y1 + tshift(yoff[idx * C:(idx + 1) * C, :], o)
        idx += 1

    # softmax over the 2C per-channel means (adaptive avg pool -> softmax over dim=1)
    m1 = jnp.mean(y1, axis=1, keepdims=True)                         # (C, 1)
    m2 = jnp.mean(y2, axis=1, keepdims=True)
    mx = jnp.maximum(jnp.max(m1, axis=0, keepdims=True),
                     jnp.max(m2, axis=0, keepdims=True))             # (1, 1)
    e1 = jnp.exp(m1 - mx)
    e2 = jnp.exp(m2 - mx)
    z = jnp.sum(e1, axis=0, keepdims=True) + jnp.sum(e2, axis=0, keepdims=True)
    cru_out = (e1 / z) * y1 + (e2 / z) * y2                          # exact normalization

    # ---------------- residual with mask; stash in the output block ----------------
    out_res = x * msk + cru_out
    o_ref[...] = out_res.astype(o_ref.dtype)
    # TODO(synk): if the I/O dtype is narrower than f32, the MLP input is rounded here.

    # ---------------- GroupNorm(n_groups, C): tiny (G,C)/(C,G) matmuls ----------------
    gsz = C // n_groups
    s = jnp.sum(out_res, axis=1, keepdims=True)                      # (C, 1)
    ssq = jnp.sum(out_res * out_res, axis=1, keepdims=True)          # (C, 1)
    stats = jnp.concatenate([s, ssq], axis=1)                        # (C, 2)
    gstats = jnp.dot(gind_r_ref[...], stats,
                     preferred_element_type=f32) * (1.0 / (gsz * T)) # (G, 2)
    gmean = gstats[:, 0:1]
    gvar = jnp.maximum(gstats[:, 1:2] - gmean * gmean, 0.0)          # clamp: no rsqrt(<0)
    ginv = lax.rsqrt(gvar + GN_EPS)
    per_ch = jnp.dot(gind_b_ref[...], jnp.concatenate([gmean, ginv], axis=1),
                     preferred_element_type=f32)                     # (C, 2)
    a_c = per_ch[:, 1:2] * gn_w                                      # fused GN scale
    b_c = gn_b - per_ch[:, 0:1] * a_c                                # fused GN shift

    # ---------------- MLP: tiled over T (the (4C, T) hidden never lives whole) -------
    mlp1_w = mlp1_w_ref[...]
    mlp1_b = mlp1_b_ref[...]
    mlp2_w = mlp2_w_ref[...]
    n_chunks = T // t_chunk

    @pl.loop(0, n_chunks)
    def _(tc):
        ts = tc * t_chunk
        if t_chunk % 128 == 0:
            ts = pl.multiple_of(ts, 128)
        v = o_ref[:, pl.ds(ts, t_chunk)].astype(f32)                 # out_res chunk
        g = v * a_c + b_c                                            # GroupNorm output
        h = jnp.dot(mlp1_w, g.astype(bf16), preferred_element_type=f32) + mlp1_b
        h = _gelu_exact(h)
        m = jnp.dot(mlp2_w, h.astype(bf16), preferred_element_type=f32) + mlp2_b
        o_ref[:, pl.ds(ts, t_chunk)] = (v + m).astype(o_ref.dtype)


# -----------------------------------------------------------------------------
# Host-side parameter packing (purely linear re-parameterisation, built ONCE).
# -----------------------------------------------------------------------------
def pack_params(params, n_groups=N_GROUPS_GN):
    f32, bf16 = jnp.float32, jnp.bfloat16
    p = {k: jnp.asarray(v, f32) for k, v in params.items()}
    C = p["ln_w"].shape[0]
    ksize = p["psi_w"].shape[1]
    up_size = p["convkw_w"].shape[1]
    uc, sq = C // 2, C // 4
    gk = p["gwc_w"].shape[0]
    assert gk % 2 == 1 and gk >= 3

    # fold convw into convkw (they are summed before the ReLU in the forward)
    off = (up_size - ksize) // 2
    cwk_w = p["convkw_w"].at[:, off:off + ksize].add(p["convw_w"])
    cwk_b = p["convw_b"] + p["convkw_b"]

    cols = [p["ln_w"], p["ln_b"], p["fc_w"], p["fc_b"], p["gfc_w"], p["gfc_b"],
            p["gwc_b"], p["gn_w"], p["gn_b"], p["mlp2_b"], p["psi_b"], cwk_b,
            p["psi_w"], cwk_w]
    pp = jnp.concatenate(cols, axis=1)                            # (C, 12+ksize+up_size)

    # block-diagonal squeeze: [up_s ; low_s] = sqbd @ out
    sqbd = jnp.zeros((uc, C), f32)
    sqbd = sqbd.at[:sq, :uc].set(p["sq1_w"])
    sqbd = sqbd.at[sq:, uc:].set(p["sq2_w"])

    # fused center matmul on [up_s; low_s]:
    #   rows [0,C):  (GWC center tap + PWC1) acting on up_s
    #   rows [C,2C): [PWC2 ; I] acting on low_s  (CRU concat disappears)
    wcp = jnp.zeros((2 * C, uc), f32)
    wcp = wcp.at[:C, :sq].set(p["gwc_w"][gk // 2] + p["pwc1_w"])
    wcp = wcp.at[C:, sq:].set(
        jnp.concatenate([p["pwc2_w"], jnp.eye(sq, dtype=f32)], axis=0))

    # off-center GWC taps stacked along rows (same ascending-offset order as kernel)
    gwc_off = jnp.concatenate([p["gwc_w"][k] for k in range(gk) if k != gk // 2],
                              axis=0)                              # ((gk-1)*C, sq)

    # GroupNorm group indicators: (G, C) reduce and (C, G) broadcast (no (C, C) matrix)
    gsz = C // n_groups
    gidx = np.arange(C) // gsz
    gind_r = jnp.asarray((np.arange(n_groups)[:, None] == gidx[None, :])
                         .astype(np.float32))                      # (G, C)
    gind_b = jnp.transpose(gind_r)                                 # (C, G)

    ops = (pp, sqbd.astype(bf16), wcp.astype(bf16), gwc_off.astype(bf16),
           gind_r, gind_b, p["mlp1_w"].astype(bf16), p["mlp1_b"],
           p["mlp2_w"].astype(bf16))
    meta = dict(ksize=ksize, up_size=up_size, gk=gk, n_groups=n_groups)
    return ops, meta


def _pick_t_chunk(T):
    for c in (1024, 512):
        if T % c == 0:
            return c
    for c in (256, 128):
        if T % c == 0:
            return c
    return T


def _vmem_limit_bytes(C, T, t_chunk, ops, io_itemsize):
    tile = C * T * 4
    param_bytes = sum(int(np.prod(a.shape)) * a.dtype.itemsize for a in ops)
    est = (10 * tile                                  # resident f32 (C,T) temporaries
           + 3 * (4 * C) * t_chunk * 4                # MLP hidden chunk + slack
           + 2 * 2 * (C * T + T) * io_itemsize        # double-buffered x / mask / out
           + param_bytes + (4 << 20))
    try:
        cap = int(pltpu.get_tpu_info().vmem_capacity_bytes)   # 64 MiB v7x, 128 MiB v5e/v6e
    except Exception:
        cap = 128 * 1024 * 1024
    return int(min(max(est, 32 * 1024 * 1024), int(0.75 * cap)))


def dynesc_forward(x, mask, packed, *, t_chunk=None):
    ops, meta = packed
    B, C, T = x.shape
    ksize, up_size = meta["ksize"], meta["up_size"]
    gk, n_groups = meta["gk"], meta["n_groups"]
    assert C % n_groups == 0 and C % 4 == 0
    assert T >= up_size and T >= gk     # roll + edge-mask shift requires |offset| < T
    # TODO(synk): n_ds_stride > 1 (MaxPool1d + mask interpolation) not implemented.
    mask_f = mask.astype(x.dtype)       # stride == 1 -> nearest interpolate is identity

    if t_chunk is None:
        t_chunk = _pick_t_chunk(T)
    assert T % t_chunk == 0

    kernel = functools.partial(dynesc_kernel, ksize=ksize, up_size=up_size,
                               gk=gk, n_groups=n_groups, t_chunk=t_chunk)

    def const_spec(a):
        return pl.BlockSpec(a.shape, lambda b, _z=(0,) * a.ndim: _z)

    grid_spec = pltpu.PrefetchScalarGridSpec(
        num_scalar_prefetch=0,
        grid=(B,),                      # one batch element per step; megacore splits B
        in_specs=[pl.BlockSpec((None, C, T), lambda b: (b, 0, 0)),
                  pl.BlockSpec((None, 1, T), lambda b: (b, 0, 0))]
                 + [const_spec(a) for a in ops],
        out_specs=pl.BlockSpec((None, C, T), lambda b: (b, 0, 0)),
    )

    H = ops[6].shape[0]                 # mlp1_w rows
    sq = C // 4
    mm_flops = 2 * T * ((C // 2) * C + 2 * C * (C // 2) + (gk - 1) * C * sq + 2 * H * C)
    param_bytes = sum(int(np.prod(a.shape)) * a.dtype.itemsize for a in ops)
    cost = pl.CostEstimate(
        flops=int(B * (mm_flops + 40 * C * T)),
        transcendentals=int(B * (H * T + 4 * C)),
        bytes_accessed=int((2 * C * T + T) * B * x.dtype.itemsize + param_bytes),
    )

    out = pl.pallas_call(
        kernel,
        out_shape=jax.ShapeDtypeStruct((B, C, T), x.dtype),
        grid_spec=grid_spec,
        compiler_params=pltpu.CompilerParams(
            dimension_semantics=("parallel",),
            vmem_limit_bytes=_vmem_limit_bytes(C, T, t_chunk, ops, x.dtype.itemsize)),
        cost_estimate=cost,
    )(x, mask_f, *ops)
    return out, mask.astype(bool)


# -----------------------------------------------------------------------------
# Deterministic parameter initialization (shapes follow the module's __init__).
# -----------------------------------------------------------------------------
def init_params(key, C, kernel_size=3, k=1.5, init_conv_vars=0.1):
    up_size = round((kernel_size + 1) * k)
    up_size = up_size + 1 if up_size % 2 == 0 else up_size        # -> 7 for defaults
    keys = jax.random.split(key, 16)

    def nrm(kk, shape, std):
        return jax.random.normal(kk, shape, jnp.float32) * std

    p = {}
    p["ln_w"] = jnp.ones((C, 1), jnp.float32)
    p["ln_b"] = jnp.zeros((C, 1), jnp.float32)
    p["psi_w"] = nrm(keys[0], (C, kernel_size), init_conv_vars)
    p["psi_b"] = jnp.zeros((C, 1), jnp.float32)
    p["convw_w"] = nrm(keys[1], (C, kernel_size), init_conv_vars)
    p["convw_b"] = jnp.zeros((C, 1), jnp.float32)
    p["convkw_w"] = nrm(keys[2], (C, up_size), init_conv_vars)
    p["convkw_b"] = jnp.zeros((C, 1), jnp.float32)
    p["fc_w"] = nrm(keys[3], (C, 1), init_conv_vars)
    p["fc_b"] = jnp.zeros((C, 1), jnp.float32)
    p["gfc_w"] = nrm(keys[4], (C, 1), init_conv_vars)
    p["gfc_b"] = jnp.zeros((C, 1), jnp.float32)

    # CRU (alpha=1/2, squeeze_radio=2, group_size=2, group_kernel_size=3)
    uc, sq = C // 2, C // 4
    p["sq1_w"] = nrm(keys[5], (sq, uc), 1.0 / np.sqrt(uc))
    p["sq2_w"] = nrm(keys[6], (sq, uc), 1.0 / np.sqrt(uc))
    gk, groups = 3, 2
    in_pg, out_pg = sq // groups, C // groups
    gwc_raw = nrm(keys[7], (C, in_pg, gk), 1.0 / np.sqrt(in_pg * gk))
    gwc_dense = jnp.zeros((gk, C, sq), jnp.float32)      # block-diagonal dense per tap
    for g in range(groups):
        for kk in range(gk):
            gwc_dense = gwc_dense.at[kk,
                                     g * out_pg:(g + 1) * out_pg,
                                     g * in_pg:(g + 1) * in_pg].set(
                gwc_raw[g * out_pg:(g + 1) * out_pg, :, kk])
    p["gwc_w"] = gwc_dense
    p["gwc_b"] = nrm(keys[8], (C, 1), 0.01)
    p["pwc1_w"] = nrm(keys[9], (C, sq), 1.0 / np.sqrt(sq))
    p["pwc2_w"] = nrm(keys[10], (C - sq, sq), 1.0 / np.sqrt(sq))

    p["gn_w"] = jnp.ones((C, 1), jnp.float32)
    p["gn_b"] = jnp.zeros((C, 1), jnp.float32)
    H = 4 * C
    p["mlp1_w"] = nrm(keys[11], (H, C), 1.0 / np.sqrt(C))
    p["mlp1_b"] = nrm(keys[12], (H, 1), 0.01)
    p["mlp2_w"] = nrm(keys[13], (C, H), 1.0 / np.sqrt(H))
    p["mlp2_b"] = nrm(keys[14], (C, 1), 0.01)
    return p


# -----------------------------------------------------------------------------
# Pure-JAX reference (mirrors the PyTorch forward) for the correctness check.
# -----------------------------------------------------------------------------
def reference_forward(x, mask, p):
    B, C, T = x.shape
    msk = mask.astype(x.dtype)

    mu = x.mean(1, keepdims=True)
    xc = x - mu
    var = (xc * xc).mean(1, keepdims=True)
    ln = xc / jnp.sqrt(var + LN_EPS) * p["ln_w"][None] + p["ln_b"][None]

    def dw(v, w, b):
        ks = w.shape[1]
        pad = ks // 2
        vp = jnp.pad(v, ((0, 0), (0, 0), (pad, pad)))
        acc = jnp.zeros_like(v)
        for kk in range(ks):
            acc = acc + w[None, :, kk:kk + 1] * vp[:, :, kk:kk + T]
        return acc + b[None]

    psi = dw(ln, p["psi_w"], p["psi_b"])
    convw = dw(ln, p["convw_w"], p["convw_b"])
    convkw = dw(ln, p["convkw_w"], p["convkw_b"])
    fc = p["fc_w"][None] * ln + p["fc_b"][None]
    phi = jax.nn.relu(p["gfc_w"][None] * ln.mean(-1, keepdims=True) + p["gfc_b"][None])
    out = fc * phi + jax.nn.relu(convw + convkw) * psi + ln

    uc, sq = C // 2, C // 4
    up, low = out[:, :uc], out[:, uc:]
    up_s = jnp.einsum("oi,bit->bot", p["sq1_w"], up)
    low_s = jnp.einsum("oi,bit->bot", p["sq2_w"], low)
    gk = p["gwc_w"].shape[0]
    gpad = gk // 2
    up_p = jnp.pad(up_s, ((0, 0), (0, 0), (gpad, gpad)))
    gwc = sum(jnp.einsum("oi,bit->bot", p["gwc_w"][kk], up_p[:, :, kk:kk + T])
              for kk in range(gk)) + p["gwc_b"][None]
    y1 = gwc + jnp.einsum("oi,bit->bot", p["pwc1_w"], up_s)
    y2 = jnp.concatenate([jnp.einsum("oi,bit->bot", p["pwc2_w"], low_s), low_s], axis=1)
    cat = jnp.concatenate([y1, y2], axis=1)
    w = jax.nn.softmax(cat.mean(-1, keepdims=True), axis=1)
    cat = w * cat
    cru_out = cat[:, :C] + cat[:, C:]

    out_res = x * msk + cru_out

    gsz = C // N_GROUPS_GN
    r = out_res.reshape(B, N_GROUPS_GN, gsz * T)
    gm = r.mean(-1, keepdims=True)
    gv = r.var(-1, keepdims=True)
    gn = ((r - gm) / jnp.sqrt(gv + GN_EPS)).reshape(B, C, T)
    gn = gn * p["gn_w"][None] + p["gn_b"][None]
    h = jnp.einsum("oi,bit->bot", p["mlp1_w"], gn) + p["mlp1_b"][None]
    h = _gelu_exact(h)
    mlp = jnp.einsum("oi,bit->bot", p["mlp2_w"], h) + p["mlp2_b"][None]
    return out_res + mlp, mask.astype(bool)


if __name__ == "__main__":
    key = jax.random.PRNGKey(0)
    B, C, T = 2, 32, 256          # n_embd=32 (divisible by 16 for GroupNorm, 4 for CRU)
    kx, kp = jax.random.split(key, 2)
    x = jax.random.normal(kx, (B, C, T), jnp.float32)
    t_idx = jnp.arange(T)[None, None, :]
    valid_len = jnp.array([T, T - 48])[:, None, None]
    mask = t_idx < valid_len                       # (B, 1, T) bool

    params = init_params(kp, C)
    packed = pack_params(params)                   # packing hoisted: built once, reused

    # t_chunk=128 exercises the T-chunked MLP path even at this small T.
    out, out_mask = dynesc_forward(x, mask, packed, t_chunk=128)
    out = jax.block_until_ready(out)

    ref_out, ref_mask = reference_forward(x, mask, params)
    np.testing.assert_allclose(np.asarray(out), np.asarray(ref_out), rtol=5e-2, atol=5e-2)
    assert bool(jnp.all(out_mask == ref_mask))
    print("KERNEL_OK")
</pallas_src>

<mosaic_0001>
module attributes {stable_mosaic.version = 11 : i64} {
  func.func @dynesc_kernel(%arg0: i32, %arg1: memref<1x32x256xf32, #tpu.memory_space<vmem>>, %arg2: memref<1x1x256xf32, #tpu.memory_space<vmem>>, %arg3: memref<32x22xf32, #tpu.memory_space<vmem>>, %arg4: memref<16x32xbf16, #tpu.memory_space<vmem>>, %arg5: memref<64x16xbf16, #tpu.memory_space<vmem>>, %arg6: memref<64x8xbf16, #tpu.memory_space<vmem>>, %arg7: memref<16x32xf32, #tpu.memory_space<vmem>>, %arg8: memref<32x16xf32, #tpu.memory_space<vmem>>, %arg9: memref<128x32xbf16, #tpu.memory_space<vmem>>, %arg10: memref<128x1xf32, #tpu.memory_space<vmem>>, %arg11: memref<32x128xbf16, #tpu.memory_space<vmem>>, %arg12: memref<1x32x256xf32, #tpu.memory_space<vmem>>) attributes {dimension_semantics = [#tpu.dimension_semantics<parallel>], iteration_bounds = array<i64: 2>, scalar_prefetch = 0 : i64, scratch_operands = 0 : i64, tpu.core_type = #tpu.core_type<tc>, window_params = [{transform_indices = @transform_0, window_bounds = array<i64: 1, 32, 256>}, {transform_indices = @transform_1, window_bounds = array<i64: 1, 1, 256>}, {pipeline_mode = #tpu.pipeline_mode<synchronous>, transform_indices = @transform_2, window_bounds = array<i64: 32, 22>}, {pipeline_mode = #tpu.pipeline_mode<synchronous>, transform_indices = @transform_3, window_bounds = array<i64: 16, 32>}, {pipeline_mode = #tpu.pipeline_mode<synchronous>, transform_indices = @transform_4, window_bounds = array<i64: 64, 16>}, {pipeline_mode = #tpu.pipeline_mode<synchronous>, transform_indices = @transform_5, window_bounds = array<i64: 64, 8>}, {pipeline_mode = #tpu.pipeline_mode<synchronous>, transform_indices = @transform_6, window_bounds = array<i64: 16, 32>}, {pipeline_mode = #tpu.pipeline_mode<synchronous>, transform_indices = @transform_7, window_bounds = array<i64: 32, 16>}, {pipeline_mode = #tpu.pipeline_mode<synchronous>, transform_indices = @transform_8, window_bounds = array<i64: 128, 32>}, {pipeline_mode = #tpu.pipeline_mode<synchronous>, transform_indices = @transform_9, window_bounds = array<i64: 128, 1>}, {pipeline_mode = #tpu.pipeline_mode<synchronous>, transform_indices = @transform_10, window_bounds = array<i64: 32, 128>}, {transform_indices = @transform_11, window_bounds = array<i64: 1, 32, 256>}]} {
    %c0 = arith.constant 0 : index
    %c0_0 = arith.constant 0 : index
    %c0_1 = arith.constant 0 : index
    %0 = vector.load %arg1[%c0, %c0_0, %c0_1] : memref<1x32x256xf32, #tpu.memory_space<vmem>>, vector<1x32x256xf32>
    %1 = vector.shape_cast %0 : vector<1x32x256xf32> to vector<32x256xf32>
    %c0_2 = arith.constant 0 : index
    %c0_3 = arith.constant 0 : index
    %c0_4 = arith.constant 0 : index
    %2 = vector.load %arg2[%c0_2, %c0_3, %c0_4] : memref<1x1x256xf32, #tpu.memory_space<vmem>>, vector<1x1x256xf32>
    %3 = vector.shape_cast %2 : vector<1x1x256xf32> to vector<1x256xf32>
    %c0_5 = arith.constant 0 : index
    %c0_6 = arith.constant 0 : index
    %4 = vector.load %arg3[%c0_5, %c0_6] : memref<32x22xf32, #tpu.memory_space<vmem>>, vector<32x22xf32>
    %5 = vector.extract_strided_slice %4 {offsets = [0, 0], sizes = [32, 1], strides = [1, 1]} : vector<32x22xf32> to vector<32x1xf32>
    %6 = vector.extract_strided_slice %4 {offsets = [0, 1], sizes = [32, 1], strides = [1, 1]} : vector<32x22xf32> to vector<32x1xf32>
    %7 = vector.extract_strided_slice %4 {offsets = [0, 2], sizes = [32, 1], strides = [1, 1]} : vector<32x22xf32> to vector<32x1xf32>
    %8 = vector.extract_strided_slice %4 {offsets = [0, 3], sizes = [32, 1], strides = [1, 1]} : vector<32x22xf32> to vector<32x1xf32>
    %9 = vector.extract_strided_slice %4 {offsets = [0, 4], sizes = [32, 1], strides = [1, 1]} : vector<32x22xf32> to vector<32x1xf32>
    %10 = vector.extract_strided_slice %4 {offsets = [0, 5], sizes = [32, 1], strides = [1, 1]} : vector<32x22xf32> to vector<32x1xf32>
    %11 = vector.extract_strided_slice %4 {offsets = [0, 6], sizes = [32, 1], strides = [1, 1]} : vector<32x22xf32> to vector<32x1xf32>
    %12 = vector.extract_strided_slice %4 {offsets = [0, 7], sizes = [32, 1], strides = [1, 1]} : vector<32x22xf32> to vector<32x1xf32>
    %13 = vector.extract_strided_slice %4 {offsets = [0, 8], sizes = [32, 1], strides = [1, 1]} : vector<32x22xf32> to vector<32x1xf32>
    %14 = vector.extract_strided_slice %4 {offsets = [0, 9], sizes = [32, 1], strides = [1, 1]} : vector<32x22xf32> to vector<32x1xf32>
    %15 = vector.extract_strided_slice %4 {offsets = [0, 10], sizes = [32, 1], strides = [1, 1]} : vector<32x22xf32> to vector<32x1xf32>
    %16 = vector.extract_strided_slice %4 {offsets = [0, 11], sizes = [32, 1], strides = [1, 1]} : vector<32x22xf32> to vector<32x1xf32>
    %17 = vector.extract_strided_slice %4 {offsets = [0, 12], sizes = [32, 3], strides = [1, 1]} : vector<32x22xf32> to vector<32x3xf32>
    %18 = vector.extract_strided_slice %4 {offsets = [0, 15], sizes = [32, 7], strides = [1, 1]} : vector<32x22xf32> to vector<32x7xf32>
    %19 = tpu.iota {dimensions = array<i32: 1>} : vector<1x256xi32>
    %cst = arith.constant dense<0.000000e+00> : vector<256xf32>
    %20 = vector.multi_reduction <add>, %1, %cst [0] : vector<32x256xf32> to vector<256xf32>
    %21 = vector.shape_cast %20 : vector<256xf32> to vector<1x256xf32>
    %cst_7 = arith.constant 3.200000e+01 : f32
    %22 = vector.broadcast %cst_7 : f32 to vector<1x256xf32>
    %23 = arith.divf %21, %22 : vector<1x256xf32>
    %24 = vector.broadcast %23 : vector<1x256xf32> to vector<32x256xf32>
    %25 = arith.subf %1, %24 : vector<32x256xf32>
    %26 = arith.mulf %25, %25 : vector<32x256xf32>
    %cst_8 = arith.constant dense<0.000000e+00> : vector<256xf32>
    %27 = vector.multi_reduction <add>, %26, %cst_8 [0] : vector<32x256xf32> to vector<256xf32>
    %28 = vector.shape_cast %27 : vector<256xf32> to vector<1x256xf32>
    %cst_9 = arith.constant 3.200000e+01 : f32
    %29 = vector.broadcast %cst_9 : f32 to vector<1x256xf32>
    %30 = arith.divf %28, %29 : vector<1x256xf32>
    %cst_10 = arith.constant 9.99999974E-6 : f32
    %31 = vector.broadcast %cst_10 : f32 to vector<1x256xf32>
    %32 = arith.addf %30, %31 : vector<1x256xf32>
    %33 = math.rsqrt %32 : vector<1x256xf32>
    %34 = vector.broadcast %33 : vector<1x256xf32> to vector<32x256xf32>
    %35 = arith.mulf %25, %34 : vector<32x256xf32>
    %36 = vector.broadcast %5 : vector<32x1xf32> to vector<32x256xf32>
    %37 = arith.mulf %35, %36 : vector<32x256xf32>
    %38 = vector.broadcast %6 : vector<32x1xf32> to vector<32x256xf32>
    %39 = arith.addf %37, %38 : vector<32x256xf32>
    %40 = vector.extract_strided_slice %17 {offsets = [0, 1], sizes = [32, 1], strides = [1, 1]} : vector<32x3xf32> to vector<32x1xf32>
    %41 = vector.broadcast %40 : vector<32x1xf32> to vector<32x256xf32>
    %42 = arith.mulf %41, %39 : vector<32x256xf32>
    %43 = vector.broadcast %15 : vector<32x1xf32> to vector<32x256xf32>
    %44 = arith.addf %43, %42 : vector<32x256xf32>
    %45 = vector.extract_strided_slice %18 {offsets = [0, 3], sizes = [32, 1], strides = [1, 1]} : vector<32x7xf32> to vector<32x1xf32>
    %46 = vector.broadcast %45 : vector<32x1xf32> to vector<32x256xf32>
    %47 = arith.mulf %46, %39 : vector<32x256xf32>
    %48 = vector.broadcast %16 : vector<32x1xf32> to vector<32x256xf32>
    %49 = arith.addf %48, %47 : vector<32x256xf32>
    %c3_i32 = arith.constant 3 : i32
    %50 = tpu.dynamic_rotate %39 by %c3_i32 dim 1 : vector<32x256xf32>, i32 -> vector<32x256xf32>
    %c3_i32_11 = arith.constant 3 : i32
    %51 = vector.broadcast %c3_i32_11 : i32 to vector<1x256xi32>
    %52 = arith.cmpi sge, %19, %51 : vector<1x256xi32>
    %cst_12 = arith.constant 0.000000e+00 : f32
    %53 = vector.shape_cast %52 : vector<1x256xi1> to vector<1x256xi1>
    %54 = vector.broadcast %53 : vector<1x256xi1> to vector<32x256xi1>
    %55 = vector.broadcast %cst_12 : f32 to vector<32x256xf32>
    %56 = arith.select %54, %50, %55 : vector<32x256xi1>, vector<32x256xf32>
    %57 = vector.extract_strided_slice %18 {offsets = [0, 0], sizes = [32, 1], strides = [1, 1]} : vector<32x7xf32> to vector<32x1xf32>
    %58 = vector.broadcast %57 : vector<32x1xf32> to vector<32x256xf32>
    %59 = arith.mulf %58, %56 : vector<32x256xf32>
    %60 = arith.addf %49, %59 : vector<32x256xf32>
    %c2_i32 = arith.constant 2 : i32
    %61 = tpu.dynamic_rotate %39 by %c2_i32 dim 1 : vector<32x256xf32>, i32 -> vector<32x256xf32>
    %c2_i32_13 = arith.constant 2 : i32
    %62 = vector.broadcast %c2_i32_13 : i32 to vector<1x256xi32>
    %63 = arith.cmpi sge, %19, %62 : vector<1x256xi32>
    %cst_14 = arith.constant 0.000000e+00 : f32
    %64 = vector.shape_cast %63 : vector<1x256xi1> to vector<1x256xi1>
    %65 = vector.broadcast %64 : vector<1x256xi1> to vector<32x256xi1>
    %66 = vector.broadcast %cst_14 : f32 to vector<32x256xf32>
    %67 = arith.select %65, %61, %66 : vector<32x256xi1>, vector<32x256xf32>
    %68 = vector.extract_strided_slice %18 {offsets = [0, 1], sizes = [32, 1], strides = [1, 1]} : vector<32x7xf32> to vector<32x1xf32>
    %69 = vector.broadcast %68 : vector<32x1xf32> to vector<32x256xf32>
    %70 = arith.mulf %69, %67 : vector<32x256xf32>
    %71 = arith.addf %60, %70 : vector<32x256xf32>
    %c1_i32 = arith.constant 1 : i32
    %72 = tpu.dynamic_rotate %39 by %c1_i32 dim 1 : vector<32x256xf32>, i32 -> vector<32x256xf32>
    %c1_i32_15 = arith.constant 1 : i32
    %73 = vector.broadcast %c1_i32_15 : i32 to vector<1x256xi32>
    %74 = arith.cmpi sge, %19, %73 : vector<1x256xi32>
    %cst_16 = arith.constant 0.000000e+00 : f32
    %75 = vector.shape_cast %74 : vector<1x256xi1> to vector<1x256xi1>
    %76 = vector.broadcast %75 : vector<1x256xi1> to vector<32x256xi1>
    %77 = vector.broadcast %cst_16 : f32 to vector<32x256xf32>
    %78 = arith.select %76, %72, %77 : vector<32x256xi1>, vector<32x256xf32>
    %79 = vector.extract_strided_slice %18 {offsets = [0, 2], sizes = [32, 1], strides = [1, 1]} : vector<32x7xf32> to vector<32x1xf32>
    %80 = vector.broadcast %79 : vector<32x1xf32> to vector<32x256xf32>
    %81 = arith.mulf %80, %78 : vector<32x256xf32>
    %82 = arith.addf %71, %81 : vector<32x256xf32>
    %83 = vector.extract_strided_slice %17 {offsets = [0, 0], sizes = [32, 1], strides = [1, 1]} : vector<32x3xf32> to vector<32x1xf32>
    %84 = vector.broadcast %83 : vector<32x1xf32> to vector<32x256xf32>
    %85 = arith.mulf %84, %78 : vector<32x256xf32>
    %86 = arith.addf %44, %85 : vector<32x256xf32>
    %c255_i32 = arith.constant 255 : i32
    %87 = tpu.dynamic_rotate %39 by %c255_i32 dim 1 : vector<32x256xf32>, i32 -> vector<32x256xf32>
    %c255_i32_17 = arith.constant 255 : i32
    %88 = vector.broadcast %c255_i32_17 : i32 to vector<1x256xi32>
    %89 = arith.cmpi slt, %19, %88 : vector<1x256xi32>
    %cst_18 = arith.constant 0.000000e+00 : f32
    %90 = vector.shape_cast %89 : vector<1x256xi1> to vector<1x256xi1>
    %91 = vector.broadcast %90 : vector<1x256xi1> to vector<32x256xi1>
    %92 = vector.broadcast %cst_18 : f32 to vector<32x256xf32>
    %93 = arith.select %91, %87, %92 : vector<32x256xi1>, vector<32x256xf32>
    %94 = vector.extract_strided_slice %18 {offsets = [0, 4], sizes = [32, 1], strides = [1, 1]} : vector<32x7xf32> to vector<32x1xf32>
    %95 = vector.broadcast %94 : vector<32x1xf32> to vector<32x256xf32>
    %96 = arith.mulf %95, %93 : vector<32x256xf32>
    %97 = arith.addf %82, %96 : vector<32x256xf32>
    %98 = vector.extract_strided_slice %17 {offsets = [0, 2], sizes = [32, 1], strides = [1, 1]} : vector<32x3xf32> to vector<32x1xf32>
    %99 = vector.broadcast %98 : vector<32x1xf32> to vector<32x256xf32>
    %100 = arith.mulf %99, %93 : vector<32x256xf32>
    %101 = arith.addf %86, %100 : vector<32x256xf32>
    %c254_i32 = arith.constant 254 : i32
    %102 = tpu.dynamic_rotate %39 by %c254_i32 dim 1 : vector<32x256xf32>, i32 -> vector<32x256xf32>
    %c254_i32_19 = arith.constant 254 : i32
    %103 = vector.broadcast %c254_i32_19 : i32 to vector<1x256xi32>
    %104 = arith.cmpi slt, %19, %103 : vector<1x256xi32>
    %cst_20 = arith.constant 0.000000e+00 : f32
    %105 = vector.shape_cast %104 : vector<1x256xi1> to vector<1x256xi1>
    %106 = vector.broadcast %105 : vector<1x256xi1> to vector<32x256xi1>
    %107 = vector.broadcast %cst_20 : f32 to vector<32x256xf32>
    %108 = arith.select %106, %102, %107 : vector<32x256xi1>, vector<32x256xf32>
    %109 = vector.extract_strided_slice %18 {offsets = [0, 5], sizes = [32, 1], strides = [1, 1]} : vector<32x7xf32> to vector<32x1xf32>
    %110 = vector.broadcast %109 : vector<32x1xf32> to vector<32x256xf32>
    %111 = arith.mulf %110, %108 : vector<32x256xf32>
    %112 = arith.addf %97, %111 : vector<32x256xf32>
    %c253_i32 = arith.constant 253 : i32
    %113 = tpu.dynamic_rotate %39 by %c253_i32 dim 1 : vector<32x256xf32>, i32 -> vector<32x256xf32>
    %c253_i32_21 = arith.constant 253 : i32
    %114 = vector.broadcast %c253_i32_21 : i32 to vector<1x256xi32>
    %115 = arith.cmpi slt, %19, %114 : vector<1x256xi32>
    %cst_22 = arith.constant 0.000000e+00 : f32
    %116 = vector.shape_cast %115 : vector<1x256xi1> to vector<1x256xi1>
    %117 = vector.broadcast %116 : vector<1x256xi1> to vector<32x256xi1>
    %118 = vector.broadcast %cst_22 : f32 to vector<32x256xf32>
    %119 = arith.select %117, %113, %118 : vector<32x256xi1>, vector<32x256xf32>
    %120 = vector.extract_strided_slice %18 {offsets = [0, 6], sizes = [32, 1], strides = [1, 1]} : vector<32x7xf32> to vector<32x1xf32>
    %121 = vector.broadcast %120 : vector<32x1xf32> to vector<32x256xf32>
    %122 = arith.mulf %121, %119 : vector<32x256xf32>
    %123 = arith.addf %112, %122 : vector<32x256xf32>
    %124 = vector.broadcast %7 : vector<32x1xf32> to vector<32x256xf32>
    %125 = arith.mulf %124, %39 : vector<32x256xf32>
    %126 = vector.broadcast %8 : vector<32x1xf32> to vector<32x256xf32>
    %127 = arith.addf %125, %126 : vector<32x256xf32>
    %cst_23 = arith.constant dense<0.000000e+00> : vector<32xf32>
    %128 = vector.multi_reduction <add>, %39, %cst_23 [1] : vector<32x256xf32> to vector<32xf32>
    %129 = vector.shape_cast %128 : vector<32xf32> to vector<32x1xf32>
    %cst_24 = arith.constant 2.560000e+02 : f32
    %130 = vector.broadcast %cst_24 : f32 to vector<32x1xf32>
    %131 = arith.divf %129, %130 : vector<32x1xf32>
    %132 = arith.mulf %9, %131 : vector<32x1xf32>
    %133 = arith.addf %132, %10 : vector<32x1xf32>
    %cst_25 = arith.constant 0.000000e+00 : f32
    %134 = vector.broadcast %cst_25 : f32 to vector<32x1xf32>
    %135 = arith.maximumf %133, %134 : vector<32x1xf32>
    %136 = vector.broadcast %135 : vector<32x1xf32> to vector<32x256xf32>
    %137 = arith.mulf %127, %136 : vector<32x256xf32>
    %cst_26 = arith.constant 0.000000e+00 : f32
    %138 = vector.broadcast %cst_26 : f32 to vector<32x256xf32>
    %139 = arith.maximumf %123, %138 : vector<32x256xf32>
    %140 = arith.mulf %139, %101 : vector<32x256xf32>
    %141 = arith.addf %137, %140 : vector<32x256xf32>
    %142 = arith.addf %141, %39 : vector<32x256xf32>
    %c0_27 = arith.constant 0 : index
    %c0_28 = arith.constant 0 : index
    %143 = vector.load %arg4[%c0_27, %c0_28] : memref<16x32xbf16, #tpu.memory_space<vmem>>, vector<16x32xbf16>
    %144 = arith.truncf %142 : vector<32x256xf32> to vector<32x256xbf16>
    %cst_29 = arith.constant dense<0.000000e+00> : vector<16x256xf32>
    %145 = tpu.matmul %143, %144, %cst_29 {dimension_numbers = #tpu.dot_dimension_numbers<[1], [0], [0], [1], [0, 0, 1, 1], [], []>} : vector<16x32xbf16>, vector<32x256xbf16>, vector<16x256xf32> -> vector<16x256xf32>
    %146 = vector.extract_strided_slice %145 {offsets = [0, 0], sizes = [8, 256], strides = [1, 1]} : vector<16x256xf32> to vector<8x256xf32>
    %c0_30 = arith.constant 0 : index
    %c0_31 = arith.constant 0 : index
    %147 = vector.load %arg5[%c0_30, %c0_31] : memref<64x16xbf16, #tpu.memory_space<vmem>>, vector<64x16xbf16>
    %148 = arith.truncf %145 : vector<16x256xf32> to vector<16x256xbf16>
    %cst_32 = arith.constant dense<0.000000e+00> : vector<64x256xf32>
    %149 = tpu.matmul %147, %148, %cst_32 {dimension_numbers = #tpu.dot_dimension_numbers<[1], [0], [0], [1], [0, 0, 1, 1], [], []>} : vector<64x16xbf16>, vector<16x256xbf16>, vector<64x256xf32> -> vector<64x256xf32>
    %150 = vector.extract_strided_slice %149 {offsets = [0, 0], sizes = [32, 256], strides = [1, 1]} : vector<64x256xf32> to vector<32x256xf32>
    %151 = vector.broadcast %11 : vector<32x1xf32> to vector<32x256xf32>
    %152 = arith.addf %150, %151 : vector<32x256xf32>
    %153 = vector.extract_strided_slice %149 {offsets = [32, 0], sizes = [32, 256], strides = [1, 1]} : vector<64x256xf32> to vector<32x256xf32>
    %c0_33 = arith.constant 0 : index
    %c0_34 = arith.constant 0 : index
    %154 = vector.load %arg6[%c0_33, %c0_34] : memref<64x8xbf16, #tpu.memory_space<vmem>>, vector<64x8xbf16>
    %155 = arith.truncf %146 : vector<8x256xf32> to vector<8x256xbf16>
    %cst_35 = arith.constant dense<0.000000e+00> : vector<64x256xf32>
    %156 = tpu.matmul %154, %155, %cst_35 {dimension_numbers = #tpu.dot_dimension_numbers<[1], [0], [0], [1], [0, 0, 1, 1], [], []>} : vector<64x8xbf16>, vector<8x256xbf16>, vector<64x256xf32> -> vector<64x256xf32>
    %157 = vector.extract_strided_slice %156 {offsets = [0, 0], sizes = [32, 256], strides = [1, 1]} : vector<64x256xf32> to vector<32x256xf32>
    %c1_i32_36 = arith.constant 1 : i32
    %158 = tpu.dynamic_rotate %157 by %c1_i32_36 dim 1 : vector<32x256xf32>, i32 -> vector<32x256xf32>
    %c1_i32_37 = arith.constant 1 : i32
    %159 = vector.broadcast %c1_i32_37 : i32 to vector<1x256xi32>
    %160 = arith.cmpi sge, %19, %159 : vector<1x256xi32>
    %cst_38 = arith.constant 0.000000e+00 : f32
    %161 = vector.shape_cast %160 : vector<1x256xi1> to vector<1x256xi1>
    %162 = vector.broadcast %161 : vector<1x256xi1> to vector<32x256xi1>
    %163 = vector.broadcast %cst_38 : f32 to vector<32x256xf32>
    %164 = arith.select %162, %158, %163 : vector<32x256xi1>, vector<32x256xf32>
    %165 = arith.addf %152, %164 : vector<32x256xf32>
    %166 = vector.extract_strided_slice %156 {offsets = [32, 0], sizes = [32, 256], strides = [1, 1]} : vector<64x256xf32> to vector<32x256xf32>
    %c255_i32_39 = arith.constant 255 : i32
    %167 = tpu.dynamic_rotate %166 by %c255_i32_39 dim 1 : vector<32x256xf32>, i32 -> vector<32x256xf32>
    %c255_i32_40 = arith.constant 255 : i32
    %168 = vector.broadcast %c255_i32_40 : i32 to vector<1x256xi32>
    %169 = arith.cmpi slt, %19, %168 : vector<1x256xi32>
    %cst_41 = arith.constant 0.000000e+00 : f32
    %170 = vector.shape_cast %169 : vector<1x256xi1> to vector<1x256xi1>
    %171 = vector.broadcast %170 : vector<1x256xi1> to vector<32x256xi1>
    %172 = vector.broadcast %cst_41 : f32 to vector<32x256xf32>
    %173 = arith.select %171, %167, %172 : vector<32x256xi1>, vector<32x256xf32>
    %174 = arith.addf %165, %173 : vector<32x256xf32>
    %cst_42 = arith.constant dense<0.000000e+00> : vector<32xf32>
    %175 = vector.multi_reduction <add>, %174, %cst_42 [1] : vector<32x256xf32> to vector<32xf32>
    %176 = vector.shape_cast %175 : vector<32xf32> to vector<32x1xf32>
    %cst_43 = arith.constant 2.560000e+02 : f32
    %177 = vector.broadcast %cst_43 : f32 to vector<32x1xf32>
    %178 = arith.divf %176, %177 : vector<32x1xf32>
    %cst_44 = arith.constant dense<0.000000e+00> : vector<32xf32>
    %179 = vector.multi_reduction <add>, %153, %cst_44 [1] : vector<32x256xf32> to vector<32xf32>
    %180 = vector.shape_cast %179 : vector<32xf32> to vector<32x1xf32>
    %cst_45 = arith.constant 2.560000e+02 : f32
    %181 = vector.broadcast %cst_45 : f32 to vector<32x1xf32>
    %182 = arith.divf %180, %181 : vector<32x1xf32>
    %cst_46 = arith.constant dense<0xFF800000> : vector<1xf32>
    %183 = vector.multi_reduction <maximumf>, %178, %cst_46 [0] : vector<32x1xf32> to vector<1xf32>
    %184 = vector.shape_cast %183 : vector<1xf32> to vector<1x1xf32>
    %cst_47 = arith.constant dense<0xFF800000> : vector<1xf32>
    %185 = vector.multi_reduction <maximumf>, %182, %cst_47 [0] : vector<32x1xf32> to vector<1xf32>
    %186 = vector.shape_cast %185 : vector<1xf32> to vector<1x1xf32>
    %187 = arith.maximumf %184, %186 : vector<1x1xf32>
    %188 = vector.broadcast %187 : vector<1x1xf32> to vector<32x1xf32>
    %189 = arith.subf %178, %188 : vector<32x1xf32>
    %190 = math.exp %189 : vector<32x1xf32>
    %191 = vector.broadcast %187 : vector<1x1xf32> to vector<32x1xf32>
    %192 = arith.subf %182, %191 : vector<32x1xf32>
    %193 = math.exp %192 : vector<32x1xf32>
    %cst_48 = arith.constant dense<0.000000e+00> : vector<1xf32>
    %194 = vector.multi_reduction <add>, %190, %cst_48 [0] : vector<32x1xf32> to vector<1xf32>
    %195 = vector.shape_cast %194 : vector<1xf32> to vector<1x1xf32>
    %cst_49 = arith.constant dense<0.000000e+00> : vector<1xf32>
    %196 = vector.multi_reduction <add>, %193, %cst_49 [0] : vector<32x1xf32> to vector<1xf32>
    %197 = vector.shape_cast %196 : vector<1xf32> to vector<1x1xf32>
    %198 = arith.addf %195, %197 : vector<1x1xf32>
    %199 = vector.broadcast %198 : vector<1x1xf32> to vector<32x1xf32>
    %200 = arith.divf %190, %199 : vector<32x1xf32>
    %201 = vector.broadcast %200 : vector<32x1xf32> to vector<32x256xf32>
    %202 = arith.mulf %201, %174 : vector<32x256xf32>
    %203 = vector.broadcast %198 : vector<1x1xf32> to vector<32x1xf32>
    %204 = arith.divf %193, %203 : vector<32x1xf32>
    %205 = vector.broadcast %204 : vector<32x1xf32> to vector<32x256xf32>
    %206 = arith.mulf %205, %153 : vector<32x256xf32>
    %207 = arith.addf %202, %206 : vector<32x256xf32>
    %208 = vector.broadcast %3 : vector<1x256xf32> to vector<32x256xf32>
    %209 = arith.mulf %1, %208 : vector<32x256xf32>
    %210 = arith.addf %209, %207 : vector<32x256xf32>
    %c0_50 = arith.constant 0 : index
    %c0_51 = arith.constant 0 : index
    %c0_52 = arith.constant 0 : index
    %211 = vector.load %arg12[%c0_50, %c0_51, %c0_52] : memref<1x32x256xf32, #tpu.memory_space<vmem>>, vector<1x32x256xf32>
    %212 = vector.shape_cast %211 : vector<1x32x256xf32> to vector<32x256xf32>
    %213 = vector.shape_cast %210 : vector<32x256xf32> to vector<1x32x256xf32>
    tpu.vector_store %arg12[%c0_50, %c0_51, %c0_52], %213 {strides = array<i32>} : memref<1x32x256xf32, #tpu.memory_space<vmem>>, vector<1x32x256xf32>,
    %cst_53 = arith.constant dense<0.000000e+00> : vector<32xf32>
    %214 = vector.multi_reduction <add>, %210, %cst_53 [1] : vector<32x256xf32> to vector<32xf32>
    %215 = vector.shape_cast %214 : vector<32xf32> to vector<32x1xf32>
    %216 = arith.mulf %210, %210 : vector<32x256xf32>
    %cst_54 = arith.constant dense<0.000000e+00> : vector<32xf32>
    %217 = vector.multi_reduction <add>, %216, %cst_54 [1] : vector<32x256xf32> to vector<32xf32>
    %218 = vector.shape_cast %217 : vector<32xf32> to vector<32x1xf32>
    %219 = tpu.concatenate %215, %218 in 1 : vector<32x1xf32>, vector<32x1xf32> -> vector<32x2xf32>
    %c0_55 = arith.constant 0 : index
    %c0_56 = arith.constant 0 : index
    %220 = vector.load %arg7[%c0_55, %c0_56] : memref<16x32xf32, #tpu.memory_space<vmem>>, vector<16x32xf32>
    %cst_57 = arith.constant dense<0.000000e+00> : vector<16x2xf32>
    %221 = tpu.matmul %220, %219, %cst_57 {dimension_numbers = #tpu.dot_dimension_numbers<[1], [0], [0], [1], [0, 0, 1, 1], [], []>} : vector<16x32xf32>, vector<32x2xf32>, vector<16x2xf32> -> vector<16x2xf32>
    %cst_58 = arith.constant 0.001953125 : f32
    %222 = vector.broadcast %cst_58 : f32 to vector<16x2xf32>
    %223 = arith.mulf %221, %222 : vector<16x2xf32>
    %224 = vector.extract_strided_slice %223 {offsets = [0, 0], sizes = [16, 1], strides = [1, 1]} : vector<16x2xf32> to vector<16x1xf32>
    %225 = vector.extract_strided_slice %223 {offsets = [0, 1], sizes = [16, 1], strides = [1, 1]} : vector<16x2xf32> to vector<16x1xf32>
    %226 = arith.mulf %224, %224 : vector<16x1xf32>
    %227 = arith.subf %225, %226 : vector<16x1xf32>
    %cst_59 = arith.constant 0.000000e+00 : f32
    %228 = vector.broadcast %cst_59 : f32 to vector<16x1xf32>
    %229 = arith.maximumf %227, %228 : vector<16x1xf32>
    %cst_60 = arith.constant 9.99999974E-6 : f32
    %230 = vector.broadcast %cst_60 : f32 to vector<16x1xf32>
    %231 = arith.addf %229, %230 : vector<16x1xf32>
    %232 = math.rsqrt %231 : vector<16x1xf32>
    %c0_61 = arith.constant 0 : index
    %c0_62 = arith.constant 0 : index
    %233 = vector.load %arg8[%c0_61, %c0_62] : memref<32x16xf32, #tpu.memory_space<vmem>>, vector<32x16xf32>
    %234 = tpu.concatenate %224, %232 in 1 : vector<16x1xf32>, vector<16x1xf32> -> vector<16x2xf32>
    %cst_63 = arith.constant dense<0.000000e+00> : vector<32x2xf32>
    %235 = tpu.matmul %233, %234, %cst_63 {dimension_numbers = #tpu.dot_dimension_numbers<[1], [0], [0], [1], [0, 0, 1, 1], [], []>} : vector<32x16xf32>, vector<16x2xf32>, vector<32x2xf32> -> vector<32x2xf32>
    %236 = vector.extract_strided_slice %235 {offsets = [0, 1], sizes = [32, 1], strides = [1, 1]} : vector<32x2xf32> to vector<32x1xf32>
    %237 = arith.mulf %236, %12 : vector<32x1xf32>
    %238 = vector.extract_strided_slice %235 {offsets = [0, 0], sizes = [32, 1], strides = [1, 1]} : vector<32x2xf32> to vector<32x1xf32>
    %239 = arith.mulf %238, %237 : vector<32x1xf32>
    %240 = arith.subf %13, %239 : vector<32x1xf32>
    %c0_64 = arith.constant 0 : index
    %c0_65 = arith.constant 0 : index
    %241 = vector.load %arg9[%c0_64, %c0_65] : memref<128x32xbf16, #tpu.memory_space<vmem>>, vector<128x32xbf16>
    %c0_66 = arith.constant 0 : index
    %c0_67 = arith.constant 0 : index
    %242 = vector.load %arg10[%c0_66, %c0_67] : memref<128x1xf32, #tpu.memory_space<vmem>>, vector<128x1xf32>
    %c0_68 = arith.constant 0 : index
    %c0_69 = arith.constant 0 : index
    %243 = vector.load %arg11[%c0_68, %c0_69] : memref<32x128xbf16, #tpu.memory_space<vmem>>, vector<32x128xbf16>
    %c0_i32 = arith.constant 0 : i32
    %c2_i32_70 = arith.constant 2 : i32
    %244 = arith.addi %c0_i32, %c2_i32_70 : i32
    %c1_i32_71 = arith.constant 1 : i32
    scf.for %arg13 = %c0_i32 to %244 step %c1_i32_71  : i32 {
      %c1_i32_73 = arith.constant 1 : i32
      %245 = arith.muli %arg13, %c1_i32_73 : i32
      %c0_i32_74 = arith.constant 0 : i32
      %246 = arith.addi %c0_i32_74, %245 : i32
      %c128_i32 = arith.constant 128 : i32
      %247 = arith.muli %246, %c128_i32 : i32
      %248 = tpu.assume_multiple %247, 128 : i32
      %c0_75 = arith.constant 0 : index
      %c0_76 = arith.constant 0 : index
      %249 = arith.index_cast %248 : i32 to index
      %250 = vector.load %arg12[%c0_75, %c0_76, %249] : memref<1x32x256xf32, #tpu.memory_space<vmem>>, vector<1x32x128xf32>
      %251 = vector.shape_cast %250 : vector<1x32x128xf32> to vector<32x128xf32>
      %252 = vector.broadcast %237 : vector<32x1xf32> to vector<32x128xf32>
      %253 = arith.mulf %251, %252 : vector<32x128xf32>
      %254 = vector.broadcast %240 : vector<32x1xf32> to vector<32x128xf32>
      %255 = arith.addf %253, %254 : vector<32x128xf32>
      %256 = arith.truncf %255 : vector<32x128xf32> to vector<32x128xbf16>
      %cst_77 = arith.constant dense<0.000000e+00> : vector<128x128xf32>
      %257 = tpu.matmul %241, %256, %cst_77 {dimension_numbers = #tpu.dot_dimension_numbers<[1], [0], [0], [1], [0, 0, 1, 1], [], []>} : vector<128x32xbf16>, vector<32x128xbf16>, vector<128x128xf32> -> vector<128x128xf32>
      %258 = vector.broadcast %242 : vector<128x1xf32> to vector<128x128xf32>
      %259 = arith.addf %257, %258 : vector<128x128xf32>
      %cst_78 = arith.constant 5.000000e-01 : f32
      %260 = vector.broadcast %cst_78 : f32 to vector<128x128xf32>
      %261 = arith.mulf %260, %259 : vector<128x128xf32>
      %cst_79 = arith.constant 0.707106769 : f32
      %262 = vector.broadcast %cst_79 : f32 to vector<128x128xf32>
      %263 = arith.mulf %259, %262 : vector<128x128xf32>
      %264 = math.erf %263 : vector<128x128xf32>
      %cst_80 = arith.constant 1.000000e+00 : f32
      %265 = vector.broadcast %cst_80 : f32 to vector<128x128xf32>
      %266 = arith.addf %265, %264 : vector<128x128xf32>
      %267 = arith.mulf %261, %266 : vector<128x128xf32>
      %268 = arith.truncf %267 : vector<128x128xf32> to vector<128x128xbf16>
      %cst_81 = arith.constant dense<0.000000e+00> : vector<32x128xf32>
      %269 = tpu.matmul %243, %268, %cst_81 {dimension_numbers = #tpu.dot_dimension_numbers<[1], [0], [0], [1], [0, 0, 1, 1], [], []>} : vector<32x128xbf16>, vector<128x128xbf16>, vector<32x128xf32> -> vector<32x128xf32>
      %270 = vector.broadcast %14 : vector<32x1xf32> to vector<32x128xf32>
      %271 = arith.addf %269, %270 : vector<32x128xf32>
      %272 = arith.addf %251, %271 : vector<32x128xf32>
      %c0_82 = arith.constant 0 : index
      %c0_83 = arith.constant 0 : index
      %273 = arith.index_cast %248 : i32 to index
      %274 = vector.load %arg12[%c0_82, %c0_83, %273] : memref<1x32x256xf32, #tpu.memory_space<vmem>>, vector<1x32x128xf32>
      %275 = vector.shape_cast %274 : vector<1x32x128xf32> to vector<32x128xf32>
      %276 = vector.shape_cast %272 : vector<32x128xf32> to vector<1x32x128xf32>
      tpu.vector_store %arg12[%c0_82, %c0_83, %273], %276 {strides = array<i32>} : memref<1x32x256xf32, #tpu.memory_space<vmem>>, vector<1x32x128xf32>,
    }
    %c2_i32_72 = arith.constant 2 : i32
    return
  }
  func.func @transform_0(%arg0: i32) -> (i32, i32, i32) {
    %c0_i32 = arith.constant 0 : i32
    %c0_i32_0 = arith.constant 0 : i32
    %c0_i32_1 = arith.constant 0 : i32
    return %arg0, %c0_i32, %c0_i32_0 : i32, i32, i32
  }
  func.func @transform_1(%arg0: i32) -> (i32, i32, i32) {
    %c0_i32 = arith.constant 0 : i32
    %c0_i32_0 = arith.constant 0 : i32
    %c0_i32_1 = arith.constant 0 : i32
    return %arg0, %c0_i32, %c0_i32_0 : i32, i32, i32
  }
  func.func @transform_2(%arg0: i32) -> (i32, i32) {
    %c0_i32 = arith.constant 0 : i32
    %c0_i32_0 = arith.constant 0 : i32
    %c0_i32_1 = arith.constant 0 : i32
    return %c0_i32, %c0_i32_0 : i32, i32
  }
  func.func @transform_3(%arg0: i32) -> (i32, i32) {
    %c0_i32 = arith.constant 0 : i32
    %c0_i32_0 = arith.constant 0 : i32
    %c0_i32_1 = arith.constant 0 : i32
    return %c0_i32, %c0_i32_0 : i32, i32
  }
  func.func @transform_4(%arg0: i32) -> (i32, i32) {
    %c0_i32 = arith.constant 0 : i32
    %c0_i32_0 = arith.constant 0 : i32
    %c0_i32_1 = arith.constant 0 : i32
    return %c0_i32, %c0_i32_0 : i32, i32
  }
  func.func @transform_5(%arg0: i32) -> (i32, i32) {
    %c0_i32 = arith.constant 0 : i32
    %c0_i32_0 = arith.constant 0 : i32
    %c0_i32_1 = arith.constant 0 : i32
    return %c0_i32, %c0_i32_0 : i32, i32
  }
  func.func @transform_6(%arg0: i32) -> (i32, i32) {
    %c0_i32 = arith.constant 0 : i32
    %c0_i32_0 = arith.constant 0 : i32
    %c0_i32_1 = arith.constant 0 : i32
    return %c0_i32, %c0_i32_0 : i32, i32
  }
  func.func @transform_7(%arg0: i32) -> (i32, i32) {
    %c0_i32 = arith.constant 0 : i32
    %c0_i32_0 = arith.constant 0 : i32
    %c0_i32_1 = arith.constant 0 : i32
    return %c0_i32, %c0_i32_0 : i32, i32
  }
  func.func @transform_8(%arg0: i32) -> (i32, i32) {
    %c0_i32 = arith.constant 0 : i32
    %c0_i32_0 = arith.constant 0 : i32
    %c0_i32_1 = arith.constant 0 : i32
    return %c0_i32, %c0_i32_0 : i32, i32
  }
  func.func @transform_9(%arg0: i32) -> (i32, i32) {
    %c0_i32 = arith.constant 0 : i32
    %c0_i32_0 = arith.constant 0 : i32
    %c0_i32_1 = arith.constant 0 : i32
    return %c0_i32, %c0_i32_0 : i32, i32
  }
  func.func @transform_10(%arg0: i32) -> (i32, i32) {
    %c0_i32 = arith.constant 0 : i32
    %c0_i32_0 = arith.constant 0 : i32
    %c0_i32_1 = arith.constant 0 : i32
    return %c0_i32, %c0_i32_0 : i32, i32
  }
  func.func @transform_11(%arg0: i32) -> (i32, i32, i32) {
    %c0_i32 = arith.constant 0 : i32
    %c0_i32_0 = arith.constant 0 : i32
    %c0_i32_1 = arith.constant 0 : i32
    return %arg0, %c0_i32, %c0_i32_0 : i32, i32, i32
  }
}

</mosaic_0001>

<bundles_post_ra>
// kernel: tpu_custom_call.1
= control target key start
LH: loop header
LB: loop body
LE: loop exit
PB: predicated region body
PF: predicated region fallthrough
CT: control target
= control target key end

     0   :  { %s5996_s0 = inlined_call_operand.vmem [shape: f32[2,32,256], index: 0, kind: input, shape index: {}]   ;;  %s5997_s1 = inlined_call_operand.vmem [shape: f32[2,1,256], index: 1, kind: input, shape index: {}]   ;;  %s5998_s2 = inlined_call_operand.vmem [shape: f32[32,22], index: 2, kind: input, shape index: {}]   ;;  %s5999_s3 = inlined_call_operand.vmem [shape: bf16[16,32], index: 3, kind: input, shape index: {}]   ;;  %s6000_s4 = inlined_call_operand.vmem [shape: bf16[64,16], index: 4, kind: input, shape index: {}]   ;;  %s6001_s5 = inlined_call_operand.vmem [shape: bf16[64,8], index: 5, kind: input, shape index: {}]   ;;  %s6002_s6 = inlined_call_operand.vmem [shape: f32[16,32], index: 6, kind: input, shape index: {}]   ;;  %s6003_s7 = inlined_call_operand.vmem [shape: f32[32,16], index: 7, kind: input, shape index: {}]   ;;  %s6004_s8 = inlined_call_operand.vmem [shape: bf16[128,32], index: 8, kind: input, shape index: {}]   ;;  %s6005_s9 = inlined_call_operand.vmem [shape: f32[128,1], index: 9, kind: input, shape index: {}]   ;;  %s6006_s10 = inlined_call_operand.vmem [shape: bf16[32,128], index: 10, kind: input, shape index: {}]   ;;  %s6007_s11 = inlined_call_operand.hbm [shape: f32[2,32,256], index: 11, kind: output, shape index: {}]  }
   0x1   :  { %6061 = sst [smem:[#allocation73_spill]] %s5996_s0 }
   0x2   :  { %6062 = sst [smem:[#allocation74_spill]] %s5997_s1 }
   0x3   :  { %6063 = sst [smem:[#allocation75_spill]] %s5998_s2 }
   0x4   :  { %6064 = sst [smem:[#allocation76_spill]] %s5999_s3 }
   0x5   :  { %16 = vsyncpa [#allocation3], 0 }
   0x6   :  { %18 = vsyncpa [#allocation3 + $0x1], 0  ;;  %s3769_s17 = smov 0   ;;  %s3771_s18 = smov 0  }
   0x7   :  { %s3773_s19 = smov 0   ;;  %s3775_s20 = smov 0  }
   0x8 LB: > { %s3790_s21 = sadd.s32 4294967295, %s3669_s20   ;;  %s3193_s22 = sadd.s32 4294967294, %s3669_s20   ;;  %s3669_s20 = sphi %s3775_s20, %s6259_s20   ;;  %s3665_s19 = sphi %s3773_s19, %s6258_s19   ;;  %s3661_s18 = sphi %s3771_s18, %s6257_s18   ;;  %s3657_s17 = sphi %s3769_s17, %s6256_s17  }
   0x9   : > { %s3794_s23 = sadd.s32 1, %s3669_s20   ;;  %s272_s24 = sadd.s32 1, %s3665_s19 }
   0xa   : > { %s269_s25 = ssub.s32 %s3669_s20, %s3794_s23  ;;  %p282_p0 = scmp.ne.s32.totalorder %s3665_s19, %s3661_s18 }
   0xb   : > { %p270_p1 = scmp.eq.s32.totalorder %s269_s25, 0  ;;  %p283_p2 = scmp.eq.s32.totalorder %s3790_s21, 1 }
   0xc   : > { %p288_p3 = scmp.ne.s32.totalorder %s3661_s18, %s3657_s17  ;;  %p289_p4 = scmp.eq.s32.totalorder %s3193_s22, 1 }
   0xd   : > { %s3805_s26 = scalar_select %p270_p1, %s3665_s19, %s272_s24  }
   0xe   : > { %p3807_p5 = por %p283_p2, %p282_p0  ;;  %p3811_p6 = por %p289_p4, %p288_p3 }
   0xf   : > { %p3196_p7 = scmp.ge.s32.totalorder %s3669_s20, 1  ;;  %p349_p8 = scmp.lt.s32.totalorder %s3669_s20, 3 }
  0x11   : > { %p350_p9 = pnand %p3196_p7, %p349_p8 }
  0x13   : > { %353 = sbr.rel (%p350_p9) target bundleno = 2729 (0xaa9), region = 64 }
  0x18   : > { %s6067_s2 = sld [smem:[#allocation75_spill]]  ;;  %v3675_v1 = vmov 1   ;;  %v3676_v2 = vmov 0   ;;  %p393_p10 = scmp.lt.s32.totalorder %s3790_s21, 1  ;;  %v3678_v14 = vmov 11   ;;  %v3679_v15 = vmov 32.0  }
  0x19   : > { %3449 = vset.pattern.permute.xlu1 %v3675_v1  ;;  %3448 = vset.pattern.permute.xlu0 %v3676_v2  ;;  %s6072_s0 = sld [smem:[#allocation73_spill]]  ;;  %s3677_s13 = smov 127   ;;  %3511 = vrcp.f32 %v3679_v15  ;;  %v3680_v25 = vmov 18   ;;  %v3681_v51 = vmov 15  }
  0x1a   : > { %3450 = vset.pattern.permute.xlu2 %v3676_v2  ;;  %s3837_s16 = scalar_select %p393_p10, %s3790_s21, 1 }
  0x1b   : > { %s3682_s14 = smov 3   ;;  %s3683_s15 = smov 2  }
  0x1c   : > { %s3332_s25 = sshll.u32 %s3837_s16, 6  ;;  %s3684_s22 = smov 1  }
  0x1d   : > { %s3687_s24 = smov 126   ;;  %s6095_s3 = sld [smem:[#allocation76_spill]] }
  0x1e   : > { %v3820_v0 = vld [vmem:[%s6067_s2 + $0x10] sm:$0xff]  ;;  %v3827_v3 = vld [vmem:[%s6067_s2] sm:$0xff]  ;;  %v3834_v4 = vld [vmem:[%s6067_s2 + $0x18] sm:$0xff]  ;;  %s6096_s1 = sld [smem:[#allocation74_spill]] }
  0x1f   : > { %6068 = vst [vmem:[#allocation5_spill] sm:$0xff] %v3820_v0  ;;  %549 = vperm.xlu1 %3449, %v3820_v0   ;;  %524 = vperm.xlu0 %3448, %v3820_v0   ;;  %v3844_v5 = vld [vmem:[%s6067_s2 + $0x8] sm:$0xff]  ;;  %s3851_s12 = scalar_lea.vmem %s6072_s0, %s3332_s25  ;;  %v3512_v24 = vpop.eup %3511  ;;  %s3689_s25 = smov 125  }
  0x20   : > { %6069 = vst [vmem:[#allocation6_spill] sm:$0xff] %v3827_v3  ;;  %514 = vperm.xlu2 %3450, %v3827_v3   ;;  %v403_v6 = vld [vmem:[%s3851_s12] sm:$0xff]  ;;  %v404_v7 = vld [vmem:[%s3851_s12 + $0x8] sm:$0xff]  ;;  %v405_v8 = vld [vmem:[%s3851_s12 + $0x10] sm:$0xff]  ;;  %v438_v27 = vmul.f32 32.0, %v3512_v24  ;;  %vm442_vm0 = vweird.f32 %v3512_v24 }
  0x21   : > { %6070 = vst [vmem:[#allocation7_spill] sm:$0xff] %v3834_v4  ;;  %v406_v9 = vld [vmem:[%s3851_s12 + $0x18] sm:$0xff]  ;;  %v419_v10 = vadd.f32 %v405_v8, %v403_v6  ;;  %v407_v11 = vld [vmem:[%s3851_s12 + $0x20] sm:$0xff]  ;;  %v408_v12 = vld [vmem:[%s3851_s12 + $0x28] sm:$0xff] }
  0x22   : > { %6071 = vst [vmem:[#allocation8_spill] sm:$0xff] %v3844_v5  ;;  %v428_v13 = vadd.f32 %v406_v9, %v404_v7  ;;  %v409_v17 = vld [vmem:[%s3851_s12 + $0x30] sm:$0xff]  ;;  %v410_v18 = vld [vmem:[%s3851_s12 + $0x38] sm:$0xff]  ;;  %v439_v30 = vsub.f32 1.0, %v438_v27 }
  0x23   : > { %v420_v16 = vadd.f32 %v419_v10, %v407_v11 }
  0x24   : > { %v429_v19 = vadd.f32 %v428_v13, %v408_v12  ;;  %v440_v33 = vmul.f32 %v3512_v24, %v439_v30 }
  0x25   : > { %v421_v20 = vadd.f32 %v420_v16, %v409_v17 }
  0x26   : > { %v430_v21 = vadd.f32 %v429_v19, %v410_v18  ;;  %v441_v36 = vadd.f32 %v3512_v24, %v440_v33 }
  0x27   : > { %553 = vperm.xlu1 %3449, %v3834_v4   ;;  %529 = vperm.xlu0 %3448, %v3834_v4   ;;  %v422_v22 = vrot.slane %v421_v20, 4 }
  0x28   : > { %519 = vperm.xlu2 %3450, %v3844_v5   ;;  %v431_v23 = vrot.slane %v430_v21, 4  ;;  %v443_v39 = vsel %vm442_vm0, %v3512_v24, %v441_v36 }
  0x29   : > { %v423_v26 = vadd.f32 %v422_v22, %v421_v20 }
  0x2a   : > { %v432_v28 = vadd.f32 %v431_v23, %v430_v21 }
  0x2b   : > { %v424_v29 = vrot.slane %v423_v26, 2 }
  0x2c   : > { %v433_v31 = vrot.slane %v432_v28, 2 }
  0x2d   : > { %v425_v32 = vadd.f32 %v424_v29, %v423_v26 }
  0x2e   : > { %v434_v34 = vadd.f32 %v433_v31, %v432_v28 }
  0x2f   : > { %3451 = vset.pattern.permute.xlu0 %v3675_v1  ;;  %545 = vperm.xlu1 %3449, %v3844_v5   ;;  %v426_v35 = vrot.slane %v425_v32, 1 }
  0x30   : > { %541 = vperm.xlu0 %3451, %v3827_v3   ;;  %1229 = vrot.lane.b32.xlu2 %v3820_v0, %s3677_s13  ;;  %v435_v37 = vrot.slane %v434_v34, 1 }
  0x31   : > { %3455 = vset.pattern.permute.xlu2 %v3678_v14  ;;  %v427_v38 = vadd.f32 %v426_v35, %v425_v32 }
  0x32   : > { %v436_v40 = vadd.f32 %v435_v37, %v434_v34 }
  0x33   : > { %v444_v41 = vmul.f32 %v443_v39, %v427_v38 }
  0x34   : > { %v445_v42 = vmul.f32 %v443_v39, %v436_v40 }
  0x35   : > { %v3876_v43 = vsub.f32 %v403_v6, %v444_v41  ;;  %v3878_v44 = vsub.f32 %v405_v8, %v444_v41  ;;  %v3884_v47 = vsub.f32 %v407_v11, %v444_v41  ;;  %v452_v54 = vsub.f32 %v409_v17, %v444_v41 }
  0x36   : > { %v3880_v45 = vsub.f32 %v404_v7, %v445_v42  ;;  %v3882_v46 = vsub.f32 %v406_v9, %v445_v42  ;;  %v3886_v48 = vsub.f32 %v408_v12, %v445_v42  ;;  %v3898_v55 = vsub.f32 %v410_v18, %v445_v42 }
  0x37   : > { %1231 = vrot.lane.b32.xlu1 %v3834_v4, %s3677_s13  ;;  %v454_v49 = vmul.f32 %v3876_v43, %v3876_v43  ;;  %v456_v50 = vmul.f32 %v3878_v44, %v3878_v44  ;;  %v458_v56 = vmul.f32 %v3884_v47, %v3884_v47  ;;  %v460_v60 = vmul.f32 %v452_v54, %v452_v54 }
  0x38   : > { %1225 = vrot.lane.b32.xlu0 %v3827_v3, %s3677_s13  ;;  %3452 = vset.pattern.permute.xlu1 %v3680_v25  ;;  %v455_v52 = vmul.f32 %v3880_v45, %v3880_v45  ;;  %v457_v53 = vmul.f32 %v3882_v46, %v3882_v46  ;;  %v459_v57 = vmul.f32 %v3886_v48, %v3886_v48 }
  0x39   : > { %3453 = vset.pattern.permute.xlu0 %v3678_v14  ;;  %1227 = vrot.lane.b32.xlu2 %v3844_v5, %s3677_s13  ;;  %v462_v58 = vadd.f32 %v456_v50, %v454_v49  ;;  %v461_v62 = vmul.f32 %v3898_v55, %v3898_v55 }
  0x3a   : > { %v471_v59 = vadd.f32 %v457_v53, %v455_v52 }
  0x3b   : > { %v463_v61 = vadd.f32 %v462_v58, %v458_v56 }
  0x3c   : > { %v472_v63 = vadd.f32 %v471_v59, %v459_v57 }
  0x3d   : > { %v464_v1 = vadd.f32 %v463_v61, %v460_v60 }
  0x3e   : > { %v473_v6 = vadd.f32 %v472_v63, %v461_v62 }
  0x3f   : > { %621 = vperm.xlu1 %3452, %v3820_v0   ;;  %v465_v2 = vrot.slane %v464_v1, 4 }
  0x40   : > { %645 = vperm.xlu0 %3453, %v3820_v0   ;;  %v474_v8 = vrot.slane %v473_v6, 4 }
  0x41   : > { %649 = vperm.xlu2 %3455, %v3834_v4   ;;  %v466_v7 = vadd.f32 %v465_v2, %v464_v1 }
  0x42   : > { %v475_v10 = vadd.f32 %v474_v8, %v473_v6 }
  0x43   : > { %v467_v9 = vrot.slane %v466_v7, 2 }
  0x44   : > { %v476_v12 = vrot.slane %v475_v10, 2 }
  0x45   : > { %v468_v11 = vadd.f32 %v467_v9, %v466_v7 }
  0x46   : > { %v477_v15 = vadd.f32 %v476_v12, %v475_v10 }
  0x47   : > { %3456 = vset.pattern.permute.xlu1 %v3681_v51  ;;  %v469_v13 = vrot.slane %v468_v11, 1 }
  0x48   : > { %3454 = vset.pattern.permute.xlu0 %v3680_v25  ;;  %708 = vperm.xlu1 %3456, %v3820_v0   ;;  %v478_v17 = vrot.slane %v477_v15, 1 }
  0x49   : > { %625 = vperm.xlu0 %3454, %v3834_v4   ;;  %3457 = vset.pattern.permute.xlu2 %v3681_v51  ;;  %v470_v16 = vadd.f32 %v469_v13, %v468_v11 }
  0x4a   : > { %712 = vperm.xlu2 %3457, %v3834_v4   ;;  %v479_v19 = vadd.f32 %v478_v17, %v477_v15  ;;  %v3685_v15 = vmov 16   ;;  %v3686_v17 = vmov 17  }
  0x4b   : > { %v480_v18 = vmul.f32 %v470_v16, %v443_v39 }
  0x4c   : > { %v481_v21 = vmul.f32 %v479_v19, %v443_v39 }
  0x4d   : > { %v482_v20 = vadd.f32 1e-05, %v480_v18 }
  0x4e   : > { %v483_v22 = vadd.f32 1e-05, %v481_v21 }
  0x4f   : > { %3513 = vrsqrt.f32 %v482_v20  ;;  %vm490_vm1 = vweird.f32 %v482_v20 }
  0x50   : > { %3515 = vrsqrt.f32 %v483_v22  ;;  %vm500_vm4 = vweird.f32 %v483_v22  ;;  %3460 = vset.pattern.permute.xlu1 %v3685_v15 }
  0x52   : > { %3458 = vset.pattern.permute.xlu2 %v3680_v25 }
  0x55   : > { %v3514_v23 = vpop.eup %3513 }
  0x56   : > { %v485_v24 = vmul.f32 %v3514_v23, %v482_v20  ;;  %v3516_v26 = vpop.eup %3515  ;;  %vm491_vm2 = vweird.f32 %v3514_v23 }
  0x57   : > { %v495_v27 = vmul.f32 %v3516_v26, %v483_v22  ;;  %vm492_vm3 = vmor %vm490_vm1, %vm491_vm2  ;;  %vm501_vm5 = vweird.f32 %v3516_v26 }
  0x58   : > { %v486_v25 = vmul.f32 %v3514_v23, %v485_v24  ;;  %vm502_vm6 = vmor %vm500_vm4, %vm501_vm5  ;;  %vm1316_vm4 = vcmask 261120   ;;  %vm1516_vm5 = vcmask 1043456  }
  0x59   : > { %v496_v29 = vmul.f32 %v3516_v26, %v495_v27 }
  0x5a   : > { %v487_v28 = vmul.f32 0.5, %v486_v25 }
  0x5b   : > { %v497_v31 = vmul.f32 0.5, %v496_v29 }
  0x5c   : > { %v488_v30 = vsub.f32 1.5, %v487_v28 }
  0x5d   : > { %v498_v33 = vsub.f32 1.5, %v497_v31 }
  0x5e   : > { %v489_v32 = vmul.f32 %v3514_v23, %v488_v30 }
  0x5f   : > { %v499_v35 = vmul.f32 %v3516_v26, %v498_v33 }
  0x60   : > { %v493_v34 = vsel %vm492_vm3, %v3514_v23, %v489_v32 }
  0x61   : > { %v508_v36 = vmul.f32 %v493_v34, %v3884_v47  ;;  %v503_v39 = vsel %vm502_vm6, %v3516_v26, %v499_v35  ;;  %v510_v49 = vmul.f32 %v493_v34, %v452_v54  ;;  %v504_v56 = vmul.f32 %v493_v34, %v3876_v43 }
  0x62   : > { %v509_v41 = vmul.f32 %v503_v39, %v3886_v48  ;;  %v505_v47 = vmul.f32 %v503_v39, %v3880_v45  ;;  %v511_v59 = vmul.f32 %v503_v39, %v3898_v55  ;;  %v506_v2 = vmul.f32 %v493_v34, %v3878_v44 }
  0x63   : > { %v507_v6 = vmul.f32 %v503_v39, %v3882_v46  ;;  %v6020_v26 = vmov 12   ;;  %v3690_v34 = vmov 19   ;;  %v6008_v39 = vmov 2  }
  0x64   : > { %vm1503_vm6 = vcmask 64512  }
  0x7a   : > { %v515_v60 = vpop.permute.xlu2 %514 }
  0x7b   : > { %v532_v54 = vmul.f32 %v515_v60, %v504_v56  ;;  %v533_v61 = vmul.f32 %v515_v60, %v505_v47 }
  0x82   : > { %v520_v7 = vpop.permute.xlu2 %519 }
  0x83   : > { %v534_v8 = vmul.f32 %v520_v7, %v506_v2  ;;  %v535_v9 = vmul.f32 %v520_v7, %v507_v6 }
  0x8a   : > { %v3979_v16 = vpop.permute.xlu2 %1229 }
  0x91   : > { %v550_v37 = vpop.permute.xlu1 %549  ;;  %v525_v38 = vpop.permute.xlu0 %524 }
  0x92   : > { %v536_v40 = vmul.f32 %v525_v38, %v508_v36  ;;  %v537_v50 = vmul.f32 %v525_v38, %v509_v41  ;;  %v6018_v41 = vmov 13  }
  0x93   : > { %v3992_v19 = vpop.permute.xlu2 %1227 }
  0x94   : > { %v3911_v42 = vadd.f32 %v550_v37, %v536_v40  ;;  %v3917_v58 = vadd.f32 %v550_v37, %v537_v50  ;;  %6076 = vst [vmem:[#allocation12_spill] sm:$0xff] %v3992_v19 }
  0x96   : > { %6073 = vst [vmem:[#allocation9_spill] sm:$0xff] %v3911_v42  ;;  %664 = vrot.lane.b32.xlu2 %v3911_v42, %s3682_s14  ;;  %v1204_v10 = vadd.f32 %v3917_v58, %v3911_v42 }
  0x99   : > { %v530_v52 = vpop.permute.xlu0 %529  ;;  %v554_v57 = vpop.permute.xlu1 %553 }
  0x9a   : > { %v538_v53 = vmul.f32 %v530_v52, %v510_v49  ;;  %v539_v62 = vmul.f32 %v530_v52, %v511_v59 }
  0x9b   : > { %v4002_v21 = vpop.permute.xlu2 %649 }
  0x9c   : > { %v3920_v48 = vadd.f32 %v554_v57, %v538_v53  ;;  %v3930_v1 = vadd.f32 %v554_v57, %v539_v62  ;;  %v416_v57 = vlaneseq }
  0x9e   : > { %666 = vrot.lane.b32.xlu1 %v3920_v48, %s3682_s14  ;;  %672 = vrot.lane.b32.xlu2 %v3917_v58, %s3682_s14  ;;  %v1207_v46 = vadd.f32 %v3930_v1, %v3920_v48  ;;  %v4106_v62 = vand.u32 127, %v416_v57 }
  0xa0   : > { %vm818_vm7 = vcmp.lt.s32.totalorder %v4106_v62, 1  ;;  %vm676_vm8 = vcmp.lt.s32.totalorder %v4106_v62, 3  ;;  %vm685_vm9 = vcmp.ge.s32.totalorder %v4106_v62, 3  ;;  %vm747_vm10 = vcmp.lt.s32.totalorder %v4106_v62, 2 }
  0xa1   : > { %v546_v11 = vpop.permute.xlu1 %545  ;;  %vm756_vm11 = vcmp.ge.s32.totalorder %v4106_v62, 2  ;;  %vm827_vm12 = vcmp.ge.s32.totalorder %v4106_v62, 1  ;;  %vm921_vm13 = vcmp.lt.s32.totalorder %v4106_v62, 127  ;;  %vm1024_vm15 = vcmp.lt.s32.totalorder %v4106_v62, 126 }
  0xa2   : > { %v542_v43 = vpop.permute.xlu0 %541  ;;  %v3945_v12 = vadd.f32 %v546_v11, %v534_v8  ;;  %v3947_v13 = vadd.f32 %v546_v11, %v535_v9  ;;  %vm1095_vm2 = vcmp.lt.s32.totalorder %v4106_v62, 125 }
  0xa3   : > { %v3926_v63 = vadd.f32 %v542_v43, %v532_v54  ;;  %v3928_v45 = vadd.f32 %v542_v43, %v533_v61  ;;  %v6014_v54 = vmov 21  }
  0xa4   : > { %6075 = vst [vmem:[#allocation11_spill] sm:$0xff] %v3947_v13  ;;  %v1201_v44 = vadd.f32 %v3947_v13, %v3945_v12  ;;  %v4011_v23 = vpop.permute.xlu2 %712 }
  0xa5   : > { %6074 = vst [vmem:[#allocation10_spill] sm:$0xff] %v3928_v45  ;;  %v1198_v55 = vadd.f32 %v3928_v45, %v3926_v63 }
  0xa6   : > { %674 = vrot.lane.b32.xlu1 %v3930_v1, %s3682_s14 }
  0xa7   : > { %1199 = vadd.xlane.f32.xlu0 %v1198_v55  ;;  %v6010_v55 = vmov 20  }
  0xaa   : > { %v3984_v18 = vpop.permute.xlu0 %1225 }
  0xae   : > { %735 = vrot.lane.b32.xlu1 %v3911_v42, %s3683_s15 }
  0xb2   : > { %v3995_v20 = vpop.permute.xlu0 %645 }
  0xbb   : > { %737 = vrot.lane.b32.xlu0 %v3920_v48, %s3683_s15  ;;  %v4007_v22 = vpop.permute.xlu0 %625 }
  0xc3   : > { %613 = vperm.xlu0 %3454, %v3827_v3  }
  0xc7   : > { %1205 = vadd.xlane.f32.xlu2 %v1204_v10 }
  0xcb   : > { %670 = vrot.lane.b32.xlu0 %v3947_v13, %s3682_s14 }
  0xcc   : > { %3463 = vset.pattern.permute.xlu0 %v3681_v51 }
  0xcf   : > { %1202 = vadd.xlane.f32.xlu2 %v1201_v44 }
  0xd3   : > { %806 = vrot.lane.b32.xlu0 %v3911_v42, %s3684_s22 }
  0xd8   : > { %1208 = vadd.xlane.f32.xlu1 %v1207_v46 }
  0xdb   : > { %816 = vrot.lane.b32.xlu0 %v3930_v1, %s3684_s22 }
  0xe3   : > { %700 = vperm.xlu0 %3463, %v3827_v3  }
  0xe7   : > { %743 = vrot.lane.b32.xlu2 %v3917_v58, %s3683_s15 }
  0xeb   : > { %741 = vrot.lane.b32.xlu0 %v3947_v13, %s3683_s15 }
  0xec   : > { %3473 = vset.pattern.permute.xlu0 %v3686_v17 }
  0xef   : > { %617 = vperm.xlu2 %3458, %v3844_v5  }
  0xf0   : > { %v4024_v24 = vpop.permute.xlu2 %664 }
  0xf1   : > { %745 = vrot.lane.b32.xlu1 %v3930_v1, %s3683_s15 }
  0xf3   : > { %909 = vrot.lane.b32.xlu0 %v3911_v42, %s3677_s13 }
  0xf7   : > { %662 = vrot.lane.b32.xlu2 %v3945_v12, %s3682_s14 }
  0xf8   : > { %3459 = vset.pattern.permute.xlu2 %v3685_v15  ;;  %v4039_v28 = vpop.permute.xlu2 %672 }
  0xf9   : > { %660 = vrot.lane.b32.xlu1 %v3926_v63, %s3682_s14 }
  0xfb   : > { %919 = vrot.lane.b32.xlu0 %v3930_v1, %s3677_s13 }
  0xff   : > { %779 = vperm.xlu2 %3459, %v3820_v0  }
 0x101   : > { %668 = vrot.lane.b32.xlu1 %v3928_v45, %s3682_s14  ;;  %s3200_s14 = sshll.u32 %s3837_s16, 1  ;;  %s6037_s16 = sand.u32 1, %s3661_s18  }
 0x102   : > { %s3197_s29 = sshll.u32 %s6037_s16, 6  ;;  %s3702_s16 = smov 8  }
 0x103   : > { %802 = vrot.lane.b32.xlu0 %v3926_v63, %s3684_s22  ;;  %s4932_s30 = scalar_lea.vmem [#allocation2], %s3197_s29 }
 0x107   : > { %808 = vrot.lane.b32.xlu2 %v3920_v48, %s3684_s22 }
 0x108   : > { %3461 = vset.pattern.permute.xlu2 %v3678_v14 }
 0x109   : > { %783 = vperm.xlu1 %3460, %v3834_v4  }
 0x10b   : > { %812 = vrot.lane.b32.xlu0 %v3947_v13, %s3684_s22 }
 0x10f   : > { %637 = vperm.xlu2 %3461, %v3827_v3  }
 0x111   : > { %814 = vrot.lane.b32.xlu1 %v3917_v58, %s3684_s22 }
 0x112   : > { %3462 = vset.pattern.permute.xlu1 %v3678_v14 }
 0x113   : > { %1012 = vrot.lane.b32.xlu0 %v3911_v42, %s3687_s24 }
 0x117   : > { %3464 = vset.pattern.permute.xlu2 %v3681_v51  ;;  %v4022_v51 = vpop.permute.xlu1 %1231 }
 0x118   : > { %704 = vperm.xlu2 %3464, %v3844_v5  }
 0x119   : > { %641 = vperm.xlu1 %3462, %v3844_v5  }
 0x11a   : > { %v4020_v14 = vpop.xlane.xlu0 %1199 }
 0x11b   : > { %1022 = vrot.lane.b32.xlu0 %v3930_v1, %s3687_s24 }
 0x11f   : > { %v4034_v27 = vpop.permute.xlu1 %621 }
 0x120   : > { %733 = vrot.lane.b32.xlu2 %v3945_v12, %s3683_s15 }
 0x121   : > { %731 = vrot.lane.b32.xlu1 %v3926_v63, %s3683_s15  ;;  %3465 = vset.pattern.permute.xlu2 %v3686_v17 }
 0x122   : > { %3466 = vset.pattern.permute.xlu1 %v3686_v17 }
 0x123   : > { %842 = vperm.xlu0 %3473, %v3827_v3  }
 0x127   : > { %v4045_v30 = vpop.permute.xlu1 %708 }
 0x128   : > { %850 = vperm.xlu2 %3465, %v3820_v0  }
 0x129   : > { %739 = vrot.lane.b32.xlu1 %v3928_v45, %s3683_s15 }
 0x12b   : > { %915 = vrot.lane.b32.xlu0 %v3947_v13, %s3677_s13 }
 0x12c   : > { %3479 = vset.pattern.permute.xlu0 %v6020_v26 }
 0x12d   : > { %v4032_v25 = vpop.permute.xlu0 %737 }
 0x12f   : > { %v4056_v33 = vpop.permute.xlu1 %666 }
 0x130   : > { %911 = vrot.lane.b32.xlu2 %v3920_v48, %s3677_s13 }
 0x131   : > { %854 = vperm.xlu1 %3466, %v3834_v4   ;;  %3467 = vset.pattern.permute.xlu2 %v3685_v15 }
 0x133   : > { %1083 = vrot.lane.b32.xlu0 %v3911_v42, %s3689_s25 }
 0x135   : > { %v4043_v29 = vpop.permute.xlu0 %613 }
 0x136   : > { %v628_v9 = vmul.f32 %v4043_v29, %v3926_v63  ;;  %v629_v10 = vmul.f32 %v4043_v29, %v3928_v45  ;;  %v6012_v29 = vmov 14  }
 0x137   : > { %v4068_v37 = vpop.permute.xlu1 %674 }
 0x138   : > { %771 = vperm.xlu2 %3467, %v3827_v3  }
 0x139   : > { %917 = vrot.lane.b32.xlu1 %v3917_v58, %s3677_s13 }
 0x13a   : > { %v4050_v31 = vpop.xlane.xlu2 %1205  ;;  %3468 = vset.pattern.permute.xlu1 %v3685_v15 }
 0x13b   : > { %1093 = vrot.lane.b32.xlu0 %v3930_v1, %s3689_s25 }
 0x13d   : > { %v4054_v32 = vpop.permute.xlu0 %670 }
 0x13f   : > { %v4084_v50 = vpop.permute.xlu1 %735 }
 0x140   : > { %804 = vrot.lane.b32.xlu2 %v3945_v12, %s3684_s22 }
 0x141   : > { %775 = vperm.xlu1 %3468, %v3844_v5   ;;  %3469 = vset.pattern.permute.xlu2 %v3690_v34 }
 0x142   : > { %v4062_v35 = vpop.xlane.xlu2 %1202 }
 0x143   : > { %882 = vperm.xlu0 %3479, %v3820_v0  }
 0x145   : > { %v4065_v36 = vpop.permute.xlu0 %806 }
 0x148   : > { %953 = vperm.xlu2 %3469, %v3820_v0  }
 0x149   : > { %810 = vrot.lane.b32.xlu1 %v3928_v45, %s3684_s22 }
 0x14a   : > { %v4072_v38 = vpop.permute.xlu2 %743  ;;  %3470 = vset.pattern.permute.xlu1 %v3690_v34 }
 0x14b   : > { %1010 = vrot.lane.b32.xlu0 %v3945_v12, %s3687_s24  ;;  %v4092_v56 = vpop.xlane.xlu1 %1208 }
 0x14c   : > { %3490 = vset.pattern.permute.xlu0 %v6008_v39 }
 0x14d   : > { %v817_v40 = vpop.permute.xlu0 %816 }
 0x150   : > { %1014 = vrot.lane.b32.xlu2 %v3920_v48, %s3687_s24 }
 0x151   : > { %957 = vperm.xlu1 %3470, %v3834_v4   ;;  %3471 = vset.pattern.permute.xlu2 %v6018_v41 }
 0x152   : > { %v4082_v49 = vpop.permute.xlu2 %617 }
 0x153   : > { %1087 = vrot.lane.b32.xlu0 %v3928_v45, %s3689_s25 }
 0x155   : > { %v701_v52 = vpop.permute.xlu0 %700 }
 0x158   : > { %573 = vperm.xlu2 %3471, %v3820_v0  }
 0x159   : > { %1020 = vrot.lane.b32.xlu1 %v3917_v58, %s3687_s24 }
 0x15a   : > { %v663_v53 = vpop.permute.xlu2 %662  ;;  %3472 = vset.pattern.permute.xlu1 %v6018_v41 }
 0x15b   : > { %1163 = vperm.xlu0 %3490, %v3834_v4  }
 0x15d   : > { %v4095_v47 = vpop.permute.xlu0 %741 }
 0x160   : > { %3474 = vset.pattern.permute.xlu2 %v3686_v17 }
 0x161   : > { %846 = vperm.xlu2 %3474, %v3844_v5   ;;  %577 = vperm.xlu1 %3472, %v3834_v4  }
 0x162   : > { %v4100_v59 = vpop.permute.xlu2 %779 }
 0x163   : > { %v746_v60 = vpop.permute.xlu1 %745  ;;  %3491 = vset.pattern.permute.xlu0 %v6014_v54 }
 0x164   : > { %1127 = vperm.xlu0 %3491, %v3820_v0  }
 0x165   : > { %v4104_v61 = vpop.permute.xlu0 %909 }
 0x169   : > { %907 = vrot.lane.b32.xlu2 %v3945_v12, %s3677_s13  ;;  %905 = vrot.lane.b32.xlu1 %v3926_v63, %s3677_s13 }
 0x16a   : > { %v809_v43 = vpop.permute.xlu2 %808  ;;  %3475 = vset.pattern.permute.xlu2 %v6010_v55  ;;  %3476 = vset.pattern.permute.xlu1 %v6010_v55 }
 0x16b   : > { %v4117_v2 = vsel %vm818_vm7, %v809_v43, %v817_v40  ;;  %v4121_v6 = vsel %vm818_vm7, %v817_v40, %v809_v43  ;;  %v661_v7 = vpop.permute.xlu1 %660 }
 0x16c   : > { %1119 = vperm.xlu0 %3491, %v3827_v3  }
 0x16d   : > { %v4124_v8 = vpop.permute.xlu0 %919 }
 0x171   : > { %1056 = vperm.xlu2 %3475, %v3820_v0   ;;  %913 = vrot.lane.b32.xlu1 %v3928_v45, %s3677_s13 }
 0x172   : > { %v638_v11 = vpop.permute.xlu2 %637 }
 0x173   : > { %v652_v44 = vadd.f32 %v638_v11, %v628_v9  ;;  %v653_v46 = vadd.f32 %v638_v11, %v629_v10  ;;  %v669_v15 = vpop.permute.xlu1 %668  ;;  %v682_v11 = vsel %vm676_vm8, %v4054_v32, %v663_v53 }
 0x174   : > { %v677_v17 = vsel %vm676_vm8, %v661_v7, %v669_v15  ;;  %v681_v40 = vsel %vm676_vm8, %v669_v15, %v661_v7  ;;  %3496 = vset.pattern.permute.xlu0 %v6012_v29  ;;  %v755_v7 = vsel %vm747_vm10, %v746_v60, %v4032_v25 }
 0x175   : > { %v691_v57 = vsel %vm685_vm9, %v681_v40, 0.0  ;;  %v716_v43 = vmul.f32 %v701_v52, %v677_v17  ;;  %989 = vperm.xlu0 %3496, %v3834_v4   ;;  %v4143_v9 = vpop.permute.xlu0 %802  ;;  %v678_v17 = vsel %vm676_vm8, %v663_v53, %v4054_v32  ;;  %v6016_v40 = vmov 10  }
 0x176   : > { %v715_v10 = vmul.f32 %v701_v52, %v691_v57  ;;  %v768_v55 = vsel %vm756_vm11, %v755_v7, 0.0  ;;  %v683_v53 = vsel %vm676_vm8, %v4039_v28, %v4024_v24  ;;  %v633_v7 = vmul.f32 %v4034_v27, %v3917_v58 }
 0x177   : > { %v4149_v39 = vadd.f32 %v716_v43, %v653_v46  ;;  %v693_v46 = vsel %vm685_vm9, %v682_v11, 0.0 }
 0x178   : > { %v4154_v15 = vadd.f32 %v715_v10, %v652_v44  ;;  %v751_v10 = vsel %vm747_vm10, %v4032_v25, %v746_v60  ;;  %v632_v25 = vmul.f32 %v4034_v27, %v3911_v42  ;;  %v679_v60 = vsel %vm676_vm8, %v4024_v24, %v4039_v28 }
 0x179   : > { %1085 = vrot.lane.b32.xlu2 %v3920_v48, %s3689_s25  ;;  %1060 = vperm.xlu1 %3476, %v3834_v4   ;;  %v657_v41 = vadd.f32 %v3995_v20, %v633_v7 }
 0x17a   : > { %v705_v52 = vpop.permute.xlu2 %704  ;;  %3477 = vset.pattern.permute.xlu2 %v6016_v40 }
 0x17b   : > { %v717_v44 = vmul.f32 %v705_v52, %v693_v46  ;;  %v718_v57 = vmul.f32 %v705_v52, %v678_v17  ;;  %v784_v43 = vpop.permute.xlu1 %783  ;;  %v754_v52 = vsel %vm747_vm10, %v4072_v38, %v4084_v50 }
 0x17c   : > { %v4171_v29 = vmul.f32 %v784_v43, %v768_v55  ;;  %v4173_v54 = vmul.f32 %v784_v43, %v751_v10  ;;  %v695_v55 = vsel %vm685_vm9, %v683_v53, 0.0  ;;  %v720_v10 = vmul.f32 %v4045_v30, %v679_v60 }
 0x17d   : > { %981 = vperm.xlu0 %3496, %v3844_v5   ;;  %v4176_v32 = vpop.permute.xlu0 %812  ;;  %v719_v43 = vmul.f32 %v4045_v30, %v695_v55 }
 0x17e   : > { %v728_v30 = vadd.f32 %v720_v10, %v657_v41 }
 0x181   : > { %597 = vperm.xlu2 %3477, %v3820_v0   ;;  %1091 = vrot.lane.b32.xlu1 %v3917_v58, %s3689_s25 }
 0x182   : > { %v734_v11 = vpop.permute.xlu2 %733  ;;  %3478 = vset.pattern.permute.xlu1 %v6016_v40  ;;  %v656_v40 = vadd.f32 %v3995_v20, %v632_v25 }
 0x183   : > { %v4203_v17 = vsel %vm747_vm10, %v734_v11, %v4095_v47  ;;  %v4208_v24 = vsel %vm747_vm10, %v4095_v47, %v734_v11  ;;  %v815_v28 = vpop.permute.xlu1 %814  ;;  %v750_v47 = vsel %vm747_vm10, %v4084_v50, %v4072_v38  ;;  %v766_v11 = vsel %vm756_vm11, %v754_v52, 0.0 }
 0x184   : > { %v4213_v27 = vsel %vm818_vm7, %v4065_v36, %v815_v28  ;;  %v825_v46 = vsel %vm818_vm7, %v815_v28, %v4065_v36  ;;  %v790_v36 = vmul.f32 %v4100_v59, %v766_v11  ;;  %v791_v55 = vmul.f32 %v4100_v59, %v750_v47 }
 0x185   : > { %v4220_v53 = vpop.permute.xlu0 %1012  ;;  %v727_v28 = vadd.f32 %v719_v43, %v656_v40  ;;  %v630_v38 = vmul.f32 %v4082_v49, %v3945_v12  ;;  %v631_v50 = vmul.f32 %v4082_v49, %v3947_v13  ;;  %v4242_v59 = vsel %vm827_vm12, %v825_v46, 0.0 }
 0x186   : > { %v799_v40 = vadd.f32 %v791_v55, %v728_v30 }
 0x187   : > { %v798_v41 = vadd.f32 %v790_v36, %v727_v28 }
 0x189   : > { %3480 = vset.pattern.permute.xlu2 %v6020_v26  ;;  %601 = vperm.xlu1 %3478, %v3834_v4  }
 0x18a   : > { %886 = vperm.xlu2 %3480, %v3834_v4   ;;  %v851_v20 = vpop.permute.xlu2 %850 }
 0x18b   : > { %v861_v25 = vmul.f32 %v851_v20, %v4242_v59  ;;  %v862_v60 = vmul.f32 %v851_v20, %v4213_v27  ;;  %v642_v7 = vpop.permute.xlu1 %641  ;;  %v634_v20 = vmul.f32 %v4007_v22, %v3920_v48 }
 0x18c   : > { %v654_v52 = vadd.f32 %v642_v7, %v630_v38  ;;  %v655_v43 = vadd.f32 %v642_v7, %v631_v50  ;;  %v6077_v50 = vmov 13  }
 0x18d   : > { %v4246_v10 = vadd.f32 %v861_v25, %v798_v41  ;;  %v4248_v47 = vadd.f32 %v862_v60, %v799_v40  ;;  %v4254_v26 = vpop.permute.xlu0 %1022  ;;  %v635_v41 = vmul.f32 %v4007_v22, %v3930_v1  ;;  %v658_v22 = vadd.f32 %v4002_v21, %v634_v20 }
 0x18e   : > { %v4250_v49 = vadd.f32 %v717_v44, %v654_v52  ;;  %v4252_v11 = vadd.f32 %v718_v57, %v655_v43 }
 0x191   : > { %3481 = vset.pattern.permute.xlu1 %v3690_v34 }
 0x192   : > { %3482 = vset.pattern.permute.xlu2 %v3690_v34  ;;  %v912_v46 = vpop.permute.xlu2 %911  ;;  %945 = vperm.xlu1 %3481, %v3827_v3   ;;  %v684_v34 = vsel %vm676_vm8, %v4068_v37, %v4056_v33 }
 0x193   : > { %v4263_v36 = vsel %vm921_vm13, %v912_v46, %v4124_v8  ;;  %v4268_v44 = vsel %vm921_vm13, %v4124_v8, %v912_v46  ;;  %949 = vperm.xlu2 %3482, %v3844_v5   ;;  %v732_v57 = vpop.permute.xlu1 %731  ;;  %v680_v8 = vsel %vm676_vm8, %v4056_v33, %v4068_v37  ;;  %v697_v30 = vsel %vm685_vm9, %v684_v34, 0.0 }
 0x194   : > { %v6078_v37 = vmov 21   ;;  %v721_v7 = vmul.f32 %v4011_v23, %v697_v30  ;;  %v722_v52 = vmul.f32 %v4011_v23, %v680_v8  ;;  %v659_v34 = vadd.f32 %v4002_v21, %v635_v41 }
 0x195   : > { %v4275_v55 = vpop.permute.xlu0 %842  ;;  %vm1378_vm8 = vcmask 130048  }
 0x19a   : > { %v772_v28 = vpop.permute.xlu2 %771  ;;  %1008 = vrot.lane.b32.xlu1 %v3926_v63, %s3687_s24 }
 0x19b   : > { %1016 = vrot.lane.b32.xlu2 %v3928_v45, %s3687_s24  ;;  %v740_v38 = vpop.permute.xlu1 %739  ;;  %3484 = vset.pattern.permute.xlu1 %v6077_v50  ;;  %v730_v45 = vadd.f32 %v722_v52, %v659_v34 }
 0x19c   : > { %v748_v40 = vsel %vm747_vm10, %v732_v57, %v740_v38  ;;  %v752_v33 = vsel %vm747_vm10, %v740_v38, %v732_v57  ;;  %3483 = vset.pattern.permute.xlu2 %v6078_v37  ;;  %v729_v38 = vadd.f32 %v721_v7, %v658_v22 }
 0x19d   : > { %v762_v25 = vsel %vm756_vm11, %v752_v33, 0.0  ;;  %v787_v60 = vmul.f32 %v772_v28, %v748_v40  ;;  %v4309_v40 = vpop.permute.xlu0 %915  ;;  %v801_v8 = vadd.f32 %v4173_v54, %v730_v45 }
 0x19e   : > { %v786_v43 = vmul.f32 %v772_v28, %v762_v25  ;;  %v800_v28 = vadd.f32 %v4171_v29, %v729_v38 }
 0x19f   : > { %v4302_v46 = vadd.f32 %v787_v60, %v4149_v39 }
 0x1a0   : > { %v794_v57 = vadd.f32 %v786_v43, %v4154_v15  ;;  %v4323_v15 = vsel %vm827_vm12, %v4121_v6, 0.0  ;;  %v6080_v43 = vmov 14  }
 0x1a2   : > { %v805_v19 = vpop.permute.xlu2 %804  ;;  %1018 = vrot.lane.b32.xlu1 %v3947_v13, %s3687_s24 }
 0x1a3   : > { %v4314_v23 = vsel %vm818_vm7, %v805_v19, %v4176_v32  ;;  %v824_v39 = vsel %vm818_vm7, %v4176_v32, %v805_v19  ;;  %1131 = vperm.xlu2 %3483, %v3834_v4   ;;  %v855_v21 = vpop.permute.xlu1 %854  ;;  %v4330_v19 = vadd.s32 128, %v4106_v62 }
 0x1a4   : > { %6079 = vst [vmem:[#allocation13_spill] sm:$0xff] %v4314_v23  ;;  %v863_v30 = vmul.f32 %v855_v21, %v4323_v15  ;;  %v864_v20 = vmul.f32 %v855_v21, %v4117_v2 }
 0x1a5   : > { %vm931_vm14 = vcmp.lt.s32.totalorder %v4330_v19, 255  ;;  %v4344_v54 = vpop.permute.xlu0 %1083  ;;  %vm1034_vm0 = vcmp.lt.s32.totalorder %v4330_v19, 254  ;;  %vm1105_vm3 = vcmp.lt.s32.totalorder %v4330_v19, 253 }
 0x1a6   : > { %v871_v41 = vadd.f32 %v863_v30, %v800_v28  ;;  %v872_v33 = vadd.f32 %v864_v20, %v801_v8  ;;  %v6081_v28 = vmov 20  }
 0x1aa   : > { %v954_v32 = vpop.permute.xlu2 %953  ;;  %565 = vperm.xlu1 %3484, %v3827_v3  }
 0x1ab   : > { %3485 = vset.pattern.permute.xlu2 %v6077_v50  ;;  %v918_v6 = vpop.permute.xlu1 %917 }
 0x1ac   : > { %v4337_v29 = vsel %vm921_vm13, %v4104_v61, %v918_v6  ;;  %v928_v45 = vsel %vm921_vm13, %v918_v6, %v4104_v61  ;;  %569 = vperm.xlu2 %3485, %v3844_v5  }
 0x1ad   : > { %v964_v25 = vmul.f32 %v954_v32, %v4337_v29  ;;  %v4349_v50 = vsel %vm931_vm14, %v928_v45, 0.0  ;;  %v6082_v45 = vmov 10  }
 0x1ae   : > { %v965_v60 = vmul.f32 %v954_v32, %v4349_v50  ;;  %v6024_v32 = vmov 3  }
 0x1af   : > { %v4353_v7 = vadd.f32 %v964_v25, %v4246_v10  ;;  %3505 = vset.pattern.permute.xlu0 %v6024_v32 }
 0x1b0   : > { %v4357_v61 = vadd.f32 %v965_v60, %v4248_v47  ;;  %v764_v47 = vsel %vm756_vm11, %v4208_v24, 0.0  ;;  %1175 = vperm.xlu0 %3505, %v3827_v3  }
 0x1b2   : > { %v1015_v52 = vpop.permute.xlu2 %1014  ;;  %3486 = vset.pattern.permute.xlu1 %v6080_v43 }
 0x1b3   : > { %v4363_v22 = vsel %vm1024_vm15, %v1015_v52, %v4254_v26  ;;  %v4368_v34 = vsel %vm1024_vm15, %v4254_v26, %v1015_v52  ;;  %985 = vperm.xlu1 %3486, %v3820_v0   ;;  %v776_v10 = vpop.permute.xlu1 %775  ;;  %v4379_v26 = vpop.permute.xlu0 %1093 }
 0x1b4   : > { %v788_v38 = vmul.f32 %v776_v10, %v764_v47  ;;  %v789_v21 = vmul.f32 %v776_v10, %v4203_v17  ;;  %3487 = vset.pattern.permute.xlu2 %v6081_v28  ;;  %v4413_v47 = vsel %vm827_vm12, %v824_v39, 0.0 }
 0x1b5   : > { %1048 = vperm.xlu2 %3487, %v3827_v3   ;;  %6083 = vst [vmem:[#allocation14_spill] sm:$0xff] %v4413_v47 }
 0x1b6   : > { %v796_v8 = vadd.f32 %v788_v38, %v4250_v49  ;;  %v797_v30 = vadd.f32 %v789_v21, %v4252_v11 }
 0x1ba   : > { %v4381_v20 = vpop.permute.xlu2 %573 }
 0x1bb   : > { %3488 = vset.pattern.permute.xlu1 %v6081_v28  ;;  %v811_v24 = vpop.permute.xlu1 %810  ;;  %v883_v52 = vpop.permute.xlu0 %882 }
 0x1bc   : > { %v4389_v17 = vsel %vm818_vm7, %v4143_v9, %v811_v24  ;;  %v823_v49 = vsel %vm818_vm7, %v811_v24, %v4143_v9  ;;  %1052 = vperm.xlu1 %3488, %v3844_v5   ;;  %v6085_v5 = vmov 12  }
 0x1bd   : > { %v858_v11 = vmul.f32 %v4275_v55, %v4389_v17  ;;  %1079 = vrot.lane.b32.xlu2 %v3926_v63, %s3689_s25  ;;  %v4401_v6 = vsel %vm827_vm12, %v823_v49, 0.0  ;;  %v6084_v49 = vmov 2  }
 0x1be   : > { %3492 = vset.pattern.permute.xlu2 %v6082_v45  ;;  %v857_v25 = vmul.f32 %v4275_v55, %v4401_v6  ;;  %v4420_v55 = vsel %vm931_vm14, %v4268_v44, 0.0 }
 0x1bf   : > { %v4407_v60 = vadd.f32 %v858_v11, %v4302_v46 }
 0x1c0   : > { %v4409_v9 = vadd.f32 %v857_v25, %v794_v57 }
 0x1c2   : > { %v847_v10 = vpop.permute.xlu2 %846 }
 0x1c3   : > { %v859_v38 = vmul.f32 %v847_v10, %v4413_v47  ;;  %v860_v21 = vmul.f32 %v847_v10, %v4314_v23  ;;  %v958_v28 = vpop.permute.xlu1 %957  ;;  %v4437_v10 = vpop.permute.xlu0 %1010 }
 0x1c4   : > { %v966_v46 = vmul.f32 %v958_v28, %v4263_v36  ;;  %v967_v57 = vmul.f32 %v958_v28, %v4420_v55  ;;  %1081 = vrot.lane.b32.xlu1 %v3945_v12, %s3689_s25 }
 0x1c5   : > { %v4426_v24 = vadd.f32 %v859_v38, %v796_v8  ;;  %v4428_v39 = vadd.f32 %v860_v21, %v797_v30  ;;  %1089 = vrot.lane.b32.xlu2 %v3947_v13, %s3689_s25  ;;  %3489 = vset.pattern.permute.xlu1 %v6084_v49  ;;  %v4458_v38 = vld [vmem:[%s6067_s2 + $0x10] sm:$0xff]  ;;  %v3698_v21 = vmov 256.0   ;;  %s401_s25 = scalar_lea.vmem %s6096_s1, %s3200_s14 }
 0x1c6   : > { %v4433_v11 = vadd.f32 %v966_v46, %v871_v41  ;;  %v4435_v44 = vadd.f32 %v967_v57, %v872_v33  ;;  %3517 = vrcp.f32 %v3698_v21  ;;  %v4482_v21 = vld [vmem:[%s6067_s2 + $0x8] sm:$0xff] }
 0x1ca   : > { %v908_v25 = vpop.permute.xlu2 %907 }
 0x1cb   : > { %v4442_v28 = vsel %vm921_vm13, %v908_v25, %v4309_v40  ;;  %v4447_v8 = vsel %vm921_vm13, %v4309_v40, %v908_v25  ;;  %v1021_v30 = vpop.permute.xlu1 %1020  ;;  %v4464_v40 = vld [vmem:[%s6067_s2] sm:$0xff]  ;;  %v4473_v4 = vpop.permute.xlu0 %1087 }
 0x1cc   : > { %v1027_v41 = vsel %vm1024_vm15, %v4220_v53, %v1021_v30  ;;  %v1031_v33 = vsel %vm1024_vm15, %v1021_v30, %v4220_v53  ;;  %1159 = vperm.xlu1 %3489, %v4458_v38   ;;  %v3518_v32 = vpop.eup %3517 }
 0x1cd   : > { %589 = vperm.xlu2 %3492, %v4464_v40   ;;  %v1044_v53 = vsel %vm1034_vm0, %v1031_v33, 0.0  ;;  %vm1215_vm1 = vweird.f32 %v3518_v32 }
 0x1d2   : > { %v1057_v46 = vpop.permute.xlu2 %1056 }
 0x1d3   : > { %v1067_v57 = vmul.f32 %v1057_v46, %v1027_v41  ;;  %v1068_v25 = vmul.f32 %v1057_v46, %v1044_v53  ;;  %v4470_v30 = vpop.permute.xlu1 %577  ;;  %v4494_v53 = vpop.permute.xlu0 %1163 }
 0x1d4   : > { %3493 = vset.pattern.permute.xlu1 %v6082_v45  ;;  %v1211_v45 = vmul.f32 256.0, %v3518_v32  ;;  %6086 = vst [vmem:[#allocation15_spill] sm:$0xff] %v4494_v53 }
 0x1d5   : > { %v4476_v3 = vadd.f32 %v1067_v57, %v4353_v7  ;;  %3494 = vset.pattern.permute.xlu2 %v6085_v5  ;;  %593 = vperm.xlu1 %3493, %v4482_v21   ;;  %v4486_v41 = vadd.f32 %v1068_v25, %v4357_v61  ;;  %v584_v61 = vmul.f32 %v4381_v20, %v3911_v42 }
 0x1d6   : > { %874 = vperm.xlu2 %3494, %v4464_v40   ;;  %v1212_v7 = vsub.f32 1.0, %v1211_v45  ;;  %v585_v25 = vmul.f32 %v4381_v20, %v3917_v58  ;;  %v893_v45 = vmul.f32 %v883_v52, %v4242_v59  ;;  %v6087_v59 = vmov 3  }
 0x1d8   : > { %v1213_v57 = vmul.f32 %v3518_v32, %v1212_v7 }
 0x1da   : > { %v4489_v33 = vpop.permute.xlu2 %1085  ;;  %v1214_v13 = vadd.f32 %v3518_v32, %v1213_v57 }
 0x1db   : > { %v906_v46 = vpop.permute.xlu1 %905 }
 0x1dd   : > { %3495 = vset.pattern.permute.xlu1 %v6085_v5  ;;  %v894_v5 = vmul.f32 %v883_v52, %v4213_v27  ;;  %v1128_v27 = vpop.permute.xlu0 %1127  ;;  %v4523_v52 = vld [vmem:[%s6067_s2 + $0x18] sm:$0xff] }
 0x1de   : > { %3497 = vset.pattern.permute.xlu2 %v6078_v37  ;;  %878 = vperm.xlu1 %3495, %v4482_v21  }
 0x1df   : > { %1123 = vperm.xlu2 %3497, %v4482_v21  }
 0x1e2   : > { %v598_v0 = vpop.permute.xlu2 %597 }
 0x1e3   : > { %v608_v23 = vadd.f32 %v598_v0, %v584_v61  ;;  %v609_v37 = vadd.f32 %v598_v0, %v585_v25  ;;  %v914_v47 = vpop.permute.xlu1 %913  ;;  %v4518_v0 = vsel %vm1215_vm1, %v3518_v32, %v1214_v13  ;;  %v1046_v13 = vsel %vm1034_vm0, %v4368_v34, 0.0 }
 0x1e4   : > { %v4505_v53 = vsel %vm921_vm13, %v906_v46, %v914_v47  ;;  %v4509_v7 = vsel %vm921_vm13, %v914_v47, %v906_v46  ;;  %v1219_v47 = vmul.f32 %v4518_v0, %v4050_v31 }
 0x1e5   : > { %v4511_v42 = vadd.f32 %v893_v45, %v608_v23  ;;  %v4513_v20 = vadd.f32 %v894_v5, %v609_v37  ;;  %v1220_v37 = vmul.f32 %v4518_v0, %v4092_v56 }
 0x1e6   : > { %3498 = vset.pattern.permute.xlu1 %v6087_v59  ;;  %v1223_v31 = vmul.f32 %v4458_v38, %v1219_v47 }
 0x1e7   : > { %3499 = vset.pattern.permute.xlu2 %v6087_v59  ;;  %1183 = vperm.xlu1 %3498, %v4458_v38  }
 0x1e8   : > { %1187 = vperm.xlu2 %3499, %v4523_v52  }
 0x1ea   : > { %v887_v23 = vpop.permute.xlu2 %886 }
 0x1eb   : > { %v895_v46 = vmul.f32 %v887_v23, %v4323_v15  ;;  %v896_v57 = vmul.f32 %v887_v23, %v4117_v2  ;;  %v1061_v61 = vpop.permute.xlu1 %1060  ;;  %v4544_v2 = vpop.permute.xlu0 %1119  ;;  %v4550_v15 = vsel %vm931_vm14, %v4447_v8, 0.0 }
 0x1ec   : > { %v1069_v32 = vmul.f32 %v1061_v61, %v4363_v22  ;;  %v1070_v25 = vmul.f32 %v1061_v61, %v1046_v13 }
 0x1ee   : > { %v4535_v45 = vadd.f32 %v1069_v32, %v4433_v11  ;;  %v4538_v5 = vadd.f32 %v1070_v25, %v4435_v44  ;;  %v1239_v44 = vadd.f32 %v3979_v16, %v1223_v31  ;;  %v1224_v25 = vmul.f32 %v4523_v52, %v1220_v37 }
 0x1ef   : > { %3500 = vset.pattern.permute.xlu1 %v6080_v43 }
 0x1f0   : > { %3501 = vset.pattern.permute.xlu2 %v6084_v49  ;;  %977 = vperm.xlu1 %3500, %v4464_v40   ;;  %v1243_v31 = vmax.f32 %v1239_v44, 0.0  ;;  %v1218_v44 = vmul.f32 %v4518_v0, %v4062_v35  ;;  %v1099_v35 = vsel %vm1095_vm2, %v4489_v33, %v4379_v26 }
 0x1f1   : > { %1151 = vperm.xlu2 %3501, %v4464_v40  }
 0x1f2   : > { %v950_v22 = vpop.permute.xlu2 %949 }
 0x1f3   : > { %v962_v34 = vmul.f32 %v950_v22, %v4442_v28  ;;  %v963_v43 = vmul.f32 %v950_v22, %v4550_v15  ;;  %v1092_v11 = vpop.permute.xlu1 %1091  ;;  %v990_v22 = vpop.permute.xlu0 %989 }
 0x1f4   : > { %v1098_v8 = vsel %vm1095_vm2, %v4344_v54, %v1092_v11  ;;  %v1102_v23 = vsel %vm1095_vm2, %v1092_v11, %v4344_v54  ;;  %v1240_v11 = vadd.f32 %v4022_v51, %v1224_v25  ;;  %v998_v37 = vmul.f32 %v990_v22, %v4263_v36 }
 0x1f5   : > { %v4566_v47 = vadd.f32 %v962_v34, %v4426_v24  ;;  %v4569_v61 = vadd.f32 %v963_v43, %v4428_v39  ;;  %v1115_v16 = vsel %vm1105_vm3, %v1102_v23, 0.0  ;;  %v1138_v56 = vmul.f32 %v1128_v27, %v1098_v8 }
 0x1f6   : > { %v1139_v13 = vmul.f32 %v1128_v27, %v1115_v16  ;;  %v3699_v24 = vmov 4   ;;  %v586_v39 = vmul.f32 %v4470_v30, %v3920_v48  ;;  %v587_v27 = vmul.f32 %v4470_v30, %v3930_v1 }
 0x1f7   : > { %v4574_v32 = vadd.f32 %v1138_v56, %v4476_v3  ;;  %v999_v8 = vmul.f32 %v990_v22, %v4420_v55  ;;  %v1103_v16 = vsel %vm1095_vm2, %v4379_v26, %v4489_v33  ;;  %v1222_v51 = vmul.f32 %v4482_v21, %v1218_v44 }
 0x1f8   : > { %3502 = vset.pattern.permute.xlu1 %v6084_v49  ;;  %v4579_v54 = vadd.f32 %v1139_v13, %v4486_v41  ;;  %v1217_v49 = vmul.f32 %v4518_v0, %v4020_v14  ;;  %v1117_v55 = vsel %vm1105_vm3, %v1103_v16, 0.0  ;;  %v4610_v25 = vsel %vm931_vm14, %v4509_v7, 0.0 }
 0x1f9   : > { %3503 = vset.pattern.permute.xlu2 %v3699_v24  ;;  %1155 = vperm.xlu1 %3502, %v4482_v21  }
 0x1fa   : > { %v1017_v3 = vpop.permute.xlu2 %1016  ;;  %1257 = vperm.xlu2 %3503, %v1243_v31   ;;  %v1221_v14 = vmul.f32 %v4464_v40, %v1217_v49  ;;  %v1244_v31 = vmax.f32 %v1240_v11, 0.0 }
 0x1fb   : > { %v602_v34 = vpop.permute.xlu1 %601 }
 0x1fc   : > { %v610_v43 = vadd.f32 %v602_v34, %v586_v39  ;;  %v611_v41 = vadd.f32 %v602_v34, %v587_v27  ;;  %v1237_v27 = vadd.f32 %v3984_v18, %v1221_v14  ;;  %v6088_v34 = vld [vmem:[#allocation12_spill] sm:$0xff] }
 0x1fd   : > { %v1238_v49 = vadd.f32 %v6088_v34, %v1222_v51 }
 0x1fe   : > { %v903_v23 = vadd.f32 %v895_v46, %v610_v43  ;;  %v904_v30 = vadd.f32 %v896_v57, %v611_v41  ;;  %v1241_v44 = vmax.f32 %v1237_v27, 0.0 }
 0x200   : > { %v1006_v56 = vadd.f32 %v998_v37, %v903_v23  ;;  %v1007_v13 = vadd.f32 %v999_v8, %v904_v30 }
 0x201   : > { %3504 = vset.pattern.permute.xlu1 %v3699_v24 }
 0x202   : > { %v1132_v36 = vpop.permute.xlu2 %1131  ;;  %3506 = vset.pattern.permute.xlu2 %v6087_v59  ;;  %1262 = vperm.xlu1 %3504, %v1244_v31  }
 0x203   : > { %v1140_v46 = vmul.f32 %v1132_v36, %v1099_v35  ;;  %v1141_v57 = vmul.f32 %v1132_v36, %v1117_v55  ;;  %1179 = vperm.xlu2 %3506, %v4482_v21  }
 0x204   : > { %v946_v39 = vpop.permute.xlu1 %945 }
 0x205   : > { %v1148_v26 = vadd.f32 %v1140_v46, %v4535_v45  ;;  %v1149_v33 = vadd.f32 %v1141_v57, %v4538_v5  ;;  %v960_v22 = vmul.f32 %v946_v39, %v4505_v53  ;;  %v961_v59 = vmul.f32 %v946_v39, %v4610_v25 }
 0x206   : > { %v1242_v5 = vmax.f32 %v1238_v49, 0.0  ;;  %v1278_v49 = vmax.f32 %v4579_v54, 0.0 }
 0x207   : > { %v1279_v43 = vmax.f32 %v1148_v26, 0.0  ;;  %v1280_v41 = vmax.f32 %v1149_v33, 0.0  ;;  %v969_v11 = vadd.f32 %v961_v59, %v4407_v60  ;;  %v968_v7 = vadd.f32 %v960_v22, %v4409_v9 }
 0x209   : > { %v4620_v37 = vmul.f32 %v1279_v43, %v1006_v56  ;;  %v4622_v18 = vmul.f32 %v1280_v41, %v1007_v13 }
 0x20a   : > { %v570_v45 = vpop.permute.xlu2 %569  ;;  %1247 = vperm.xlu1 %3504, %v1241_v44  }
 0x20b   : > { %3507 = vset.pattern.permute.xlu2 %v3699_v24 }
 0x20c   : > { %1252 = vperm.xlu2 %3507, %v1242_v5   ;;  %v1009_v8 = vpop.permute.xlu1 %1008 }
 0x20d   : > { %v1025_v23 = vsel %vm1024_vm15, %v1009_v8, %v1017_v3  ;;  %v1029_v30 = vsel %vm1024_vm15, %v1017_v3, %v1009_v8 }
 0x20e   : > { %v1040_v9 = vsel %vm1034_vm0, %v1029_v30, 0.0 }
 0x212   : > { %v1049_v60 = vpop.permute.xlu2 %1048 }
 0x213   : > { %v1063_v16 = vmul.f32 %v1049_v60, %v1025_v23  ;;  %v1064_v14 = vmul.f32 %v1049_v60, %v1040_v9 }
 0x214   : > { %v1019_v56 = vpop.permute.xlu1 %1018 }
 0x215   : > { %v1072_v13 = vadd.f32 %v1064_v14, %v969_v11  ;;  %v1071_v31 = vadd.f32 %v1063_v16, %v968_v7  ;;  %v1030_v11 = vsel %vm1024_vm15, %v1019_v56, %v4437_v10  ;;  %v6089_v7 = vld [vmem:[#allocation10_spill] sm:$0xff] }
 0x21a   : > { %v1080_v51 = vpop.permute.xlu2 %1079 }
 0x21b   : > { %v1096_v24 = vsel %vm1095_vm2, %v1080_v51, %v4473_v4  ;;  %v1100_v35 = vsel %vm1095_vm2, %v4473_v4, %v1080_v51  ;;  %v1277_v4 = vmax.f32 %v4574_v32, 0.0 }
 0x21c   : > { %v1111_v3 = vsel %vm1105_vm3, %v1100_v35, 0.0  ;;  %v1134_v36 = vmul.f32 %v4544_v2, %v1096_v24  ;;  %v566_v55 = vpop.permute.xlu1 %565 }
 0x21d   : > { %v1135_v46 = vmul.f32 %v4544_v2, %v1111_v3  ;;  %v580_v54 = vmul.f32 %v566_v55, %v3926_v63  ;;  %v581_v44 = vmul.f32 %v566_v55, %v6089_v7  ;;  %v982_v55 = vpop.permute.xlu0 %981 }
 0x21e   : > { %v4640_v57 = vadd.f32 %v1134_v36, %v1071_v31 }
 0x21f   : > { %v4642_v39 = vadd.f32 %v1135_v46, %v1072_v13 }
 0x222   : > { %v1090_v27 = vpop.permute.xlu2 %1089 }
 0x225   : > { %v986_v26 = vpop.permute.xlu1 %985 }
 0x226   : > { %v996_v33 = vmul.f32 %v986_v26, %v4337_v29  ;;  %v997_v22 = vmul.f32 %v986_v26, %v4349_v50  ;;  %v1026_v29 = vsel %vm1024_vm15, %v4437_v10, %v1019_v56 }
 0x228   : > { %v1004_v59 = vadd.f32 %v996_v33, %v4511_v42  ;;  %v1005_v34 = vadd.f32 %v997_v22, %v4513_v20  ;;  %v1042_v42 = vsel %vm1034_vm0, %v1030_v11, 0.0  ;;  %v994_v11 = vmul.f32 %v982_v55, %v4442_v28 }
 0x22a   : > { %v4650_v43 = vmul.f32 %v1277_v4, %v1004_v59  ;;  %v4652_v2 = vmul.f32 %v1278_v49, %v1005_v34  ;;  %v590_v41 = vpop.permute.xlu2 %589  ;;  %v6091_v34 = vld [vmem:[#allocation14_spill] sm:$0xff] }
 0x22b   : > { %v604_v30 = vadd.f32 %v590_v41, %v580_v54  ;;  %v605_v60 = vadd.f32 %v590_v41, %v581_v44  ;;  %v6092_v41 = vld [vmem:[#allocation13_spill] sm:$0xff] }
 0x22e   : > { %v1053_v50 = vpop.permute.xlu1 %1052 }
 0x22f   : > { %v1065_v20 = vmul.f32 %v1053_v50, %v1026_v29  ;;  %v1066_v32 = vmul.f32 %v1053_v50, %v1042_v42  ;;  %v995_v29 = vmul.f32 %v982_v55, %v4550_v15 }
 0x231   : > { %v1073_v5 = vadd.f32 %v1065_v20, %v4566_v47  ;;  %v1074_v8 = vadd.f32 %v1066_v32, %v4569_v61 }
 0x232   : > { %v875_v23 = vpop.permute.xlu2 %874 }
 0x233   : > { %v889_v9 = vmul.f32 %v875_v23, %v4401_v6  ;;  %v890_v10 = vmul.f32 %v875_v23, %v4389_v17  ;;  %v582_v6 = vmul.f32 %v570_v45, %v3945_v12  ;;  %v6090_v17 = vld [vmem:[#allocation11_spill] sm:$0xff] }
 0x234   : > { %v583_v36 = vmul.f32 %v570_v45, %v6090_v17 }
 0x235   : > { %v897_v16 = vadd.f32 %v889_v9, %v604_v30  ;;  %v898_v14 = vadd.f32 %v890_v10, %v605_v60  ;;  %v1274_v10 = vmax.f32 %v4642_v39, 0.0  ;;  %v6094_v39 = vld [vmem:[#allocation15_spill] sm:$0xff] }
 0x236   : > { %v1082_v56 = vpop.permute.xlu1 %1081 }
 0x237   : > { %v1101_v24 = vsel %vm1095_vm2, %v1090_v27, %v1082_v56  ;;  %v1097_v47 = vsel %vm1095_vm2, %v1082_v56, %v1090_v27 }
 0x238   : > { %v1113_v61 = vsel %vm1105_vm3, %v1101_v24, 0.0 }
 0x23a   : > { %v1124_v31 = vpop.permute.xlu2 %1123 }
 0x23b   : > { %v1136_v35 = vmul.f32 %v1124_v31, %v1097_v47  ;;  %v1137_v3 = vmul.f32 %v1124_v31, %v1113_v61  ;;  %v1273_v31 = vmax.f32 %v4640_v57, 0.0  ;;  %v6093_v47 = vld [vmem:[#allocation9_spill] sm:$0xff] }
 0x23d   : > { %v1144_v46 = vadd.f32 %v1136_v35, %v1073_v5  ;;  %v1145_v26 = vadd.f32 %v1137_v3, %v1074_v8 }
 0x23e   : > { %v1160_v13 = vpop.permute.xlu1 %1159 }
 0x23f   : > { %v1275_v20 = vmax.f32 %v1144_v46, 0.0  ;;  %v1276_v32 = vmax.f32 %v1145_v26, 0.0  ;;  %v1170_v61 = vmul.f32 %v1160_v13, %v6093_v47  ;;  %v1171_v35 = vmul.f32 %v1160_v13, %v3917_v58 }
 0x240   : > { %v1172_v46 = vmul.f32 %v6094_v39, %v3920_v48 }
 0x242   : > { %v1188_v22 = vpop.permute.xlu2 %1187 }
 0x243   : > { %v1196_v26 = vadd.f32 %v1188_v22, %v1172_v46  ;;  %v3340_v46 = vld [vmem:[%s6001_s5 + $0x10] sm:$0xff] }
 0x247   : > { %v594_v51 = vpop.permute.xlu1 %593 }
 0x248   : > { %v606_v4 = vadd.f32 %v594_v51, %v582_v6  ;;  %v607_v59 = vadd.f32 %v594_v51, %v583_v36 }
 0x24b   : > { %v1152_v23 = vpop.permute.xlu2 %1151 }
 0x250   : > { %v879_v33 = vpop.permute.xlu1 %878 }
 0x251   : > { %v891_v49 = vmul.f32 %v879_v33, %v6091_v34  ;;  %v892_v27 = vmul.f32 %v879_v33, %v6092_v41 }
 0x253   : > { %v899_v50 = vadd.f32 %v891_v49, %v606_v4  ;;  %v900_v42 = vadd.f32 %v892_v27, %v607_v59 }
 0x254   : > { %v1258_v28 = vpop.permute.xlu2 %1257 }
 0x255   : > { %v1002_v45 = vadd.f32 %v994_v11, %v899_v50  ;;  %v1003_v54 = vadd.f32 %v995_v29, %v900_v42  ;;  %v1166_v11 = vmul.f32 %v1152_v23, %v3926_v63  ;;  %v1167_v29 = vmul.f32 %v1152_v23, %v6089_v7 }
 0x257   : > { %v1283_v44 = vmul.f32 %v1275_v20, %v1002_v45  ;;  %v1284_v5 = vmul.f32 %v1276_v32, %v1003_v54  ;;  %v1176_v32 = vpop.permute.xlu0 %1175 }
 0x259   : > { %v1184_v8 = vpop.permute.xlu1 %1183 }
 0x25a   : > { %v1194_v6 = vadd.f32 %v1184_v8, %v1170_v61  ;;  %v1195_v36 = vadd.f32 %v1184_v8, %v1171_v35 }
 0x25c   : > { %v1270_v57 = vmul.f32 %v1258_v28, %v1195_v36 }
 0x25d   : > { %v1180_v55 = vpop.permute.xlu2 %1179 }
 0x25e   : > { %v1294_v27 = vadd.f32 %v4652_v2, %v1270_v57 }
 0x260   : > { %v1302_v8 = vadd.f32 %v1294_v27, %v3917_v58 }
 0x262   : > { %v978_v30 = vpop.permute.xlu1 %977 }
 0x263   : > { %v992_v60 = vmul.f32 %v978_v30, %v4505_v53  ;;  %v993_v9 = vmul.f32 %v978_v30, %v4610_v25  ;;  %v1269_v53 = vmul.f32 %v1258_v28, %v1194_v6  ;;  %v1190_v30 = vadd.f32 %v1176_v32, %v1166_v11 }
 0x265   : > { %v1000_v56 = vadd.f32 %v992_v60, %v897_v16  ;;  %v1001_v15 = vadd.f32 %v993_v9, %v898_v14  ;;  %v1173_v16 = vmul.f32 %v6094_v39, %v3930_v1  ;;  %v1293_v59 = vadd.f32 %v4650_v43, %v1269_v53  ;;  %v3339_v53 = vld [vmem:[%s6001_s5 + $0x8] sm:$0xff] }
 0x266   : > { %v1253_v50 = vpop.permute.xlu2 %1252  ;;  %v1191_v60 = vadd.f32 %v1176_v32, %v1167_v29  ;;  %v3700_v39 = vmov 6  }
 0x267   : > { %v1281_v51 = vmul.f32 %v1273_v31, %v1000_v56  ;;  %v1282_v24 = vmul.f32 %v1274_v10, %v1001_v15  ;;  %v1197_v33 = vadd.f32 %v1188_v22, %v1173_v16  ;;  %v1301_v45 = vadd.f32 %v1293_v59, %v6093_v47  ;;  %3508 = vset.pattern.permute.xlu1 %v3700_v39  ;;  %v3335_v16 = vld [vmem:[%s6000_s4 + $0x8] sm:$0xff] }
 0x268   : > { %3510 = vset.pattern.permute.xlu2 %v3700_v39  ;;  %1450 = vperm.xlu1 %3508, %v4464_v40   ;;  %v3336_v40 = vld [vmem:[%s6000_s4 + $0x10] sm:$0xff] }
 0x269   : > { %1458 = vperm.xlu2 %3510, %v4458_v38   ;;  %3509 = vset.pattern.permute.xlu0 %v3700_v39  ;;  %v3341_v38 = vld [vmem:[%s6001_s5 + $0x18] sm:$0xff] }
 0x26a   : > { %1454 = vperm.xlu0 %3509, %v4482_v21  }
 0x26b   : > { %v1156_v3 = vpop.permute.xlu1 %1155 }
 0x26c   : > { %v1168_v25 = vmul.f32 %v1156_v3, %v3945_v12  ;;  %v1169_v14 = vmul.f32 %v1156_v3, %v6090_v17 }
 0x26e   : > { %v1192_v4 = vadd.f32 %v1180_v55, %v1168_v25  ;;  %v1193_v34 = vadd.f32 %v1180_v55, %v1169_v14  ;;  %v3334_v25 = vld [vmem:[%s6000_s4] sm:$0xff] }
 0x270   : > { %v1267_v22 = vmul.f32 %v1253_v50, %v1192_v4  ;;  %v1268_v54 = vmul.f32 %v1253_v50, %v1193_v34  ;;  %1462 = vperm.xlu1 %3508, %v4523_v52  }
 0x272   : > { %v1291_v28 = vadd.f32 %v1283_v44, %v1267_v22  ;;  %v3333_v44 = vld [vmem:[%s6095_s3] sm:$0xff] }
 0x274   : > { %v1263_v13 = vpop.permute.xlu1 %1262 }
 0x275   : > { %v1271_v49 = vmul.f32 %v1263_v13, %v1196_v26  ;;  %v1272_v41 = vmul.f32 %v1263_v13, %v1197_v33  ;;  %v3337_v26 = vld [vmem:[%s6000_s4 + $0x18] sm:$0xff] }
 0x277   : > { %v1295_v42 = vadd.f32 %v4620_v37, %v1271_v49  ;;  %v1296_v20 = vadd.f32 %v4622_v18, %v1272_v41  ;;  %v1292_v18 = vadd.f32 %v1284_v5, %v1268_v54 }
 0x279   : > { %v1303_v43 = vadd.f32 %v1295_v42, %v3920_v48  ;;  %v1304_v2 = vadd.f32 %v1296_v20, %v3930_v1  ;;  %v1299_v48 = vadd.f32 %v1291_v28, %v3945_v12  ;;  %v1300_v1 = vadd.f32 %v1292_v18, %v6090_v17 }
 0x27b   : > { %v1309_v9 = vpack.c.bf16 %v1303_v43, %v1301_v45  ;;  %v1310_v23 = vpack.c.bf16 %v1304_v2, %v1302_v8 }
 0x27c   : > { %v1248_v10 = vpop.permute.xlu1 %1247 }
 0x27d   : > { %v1265_v37 = vmul.f32 %v1248_v10, %v1190_v30  ;;  %v1266_v56 = vmul.f32 %v1248_v10, %v1191_v60  ;;  %1326 = vmatpush.bf16.msra.mxu0 %v1309_v9  ;;  %1340 = vmatpush.bf16.msra.mxu1 %v1310_v23 }
 0x27f   : > { %v1289_v15 = vadd.f32 %v1281_v51, %v1265_v37  ;;  %v1290_v31 = vadd.f32 %v1282_v24, %v1266_v56  ;;  %v3338_v24 = vld [vmem:[%s6001_s5] sm:$0xff] }
 0x281   : > { %v1297_v47 = vadd.f32 %v1289_v15, %v3926_v63  ;;  %v1298_v58 = vadd.f32 %v1290_v31, %v6089_v7 }
 0x283   : > { %v1307_v61 = vpack.c.bf16 %v1299_v48, %v1297_v47  ;;  %v1308_v35 = vpack.c.bf16 %v1300_v1, %v1298_v58 }
 0x285   : > { %1327 = vmatpush.bf16.msra.mxu0 %v1307_v61  ;;  %1341 = vmatpush.bf16.msra.mxu1 %v1308_v35 }
 0x288   : > { %3205 = vmatmul.msk.bf16.vlgmr.msra.gmra.mxu0 %vm1316_vm4, %v3333_v44  ;;  %3206 = vmatmul.msk.bf16.vlgmr.msra.gmra.mxu1 %vm1316_vm4, %v3333_v44 }
 0x2c3   : > { %v4771_v54 = vpop.permute.xlu2 %1458 }
 0x2da   : > { %v1451_v2 = vpop.permute.xlu1 %1450 }
 0x2dc   : > { %v1455_v60 = vpop.permute.xlu0 %1454 }
 0x2e2   : > { %v1463_v10 = vpop.permute.xlu1 %1462 }
 0x305   : > { %v1329_v63 = vpop.f32.mrf.mxu0  ;;  %v1343_v5 = vpop.f32.mrf.mxu1 }
 0x306   : > { %v1481_v12 = vpack.c.bf16 %v1329_v63, %v1329_v63  ;;  %v1482_v7 = vpack.c.bf16 %v1343_v5, %v1343_v5 }
 0x308   : > { %v1518_v51 = vsel %vm1516_vm5, %v1481_v12, 0  ;;  %v1521_v17 = vsel %vm1516_vm5, %v1482_v7, 0 }
 0x309   : > { %1530 = vmatpush.bf16.msrb.mxu0 %v1518_v51  ;;  %1559 = vmatpush.bf16.msrb.mxu1 %v1521_v17 }
 0x30c   : > { %3247 = vmatmul.msk.bf16.vlgmr.msrb.gmra.mxu0 %vm1503_vm6, %v3338_v24  ;;  %3251 = vmatmul.msk.bf16.vlgmr.msrb.gmra.mxu1 %vm1503_vm6, %v3338_v24 }
 0x30d   : > { %v1331_v3 = vpop.f32.mrf.mxu0  ;;  %v1345_v6 = vpop.f32.mrf.mxu1 }
 0x30e   : > { %v1356_v36 = vpack.c.bf16 %v1331_v3, %v1329_v63  ;;  %v1357_v55 = vpack.c.bf16 %v1345_v6, %v1343_v5 }
 0x310   : > { %1398 = vmatpush.bf16.msra.mxu2 %v1356_v36  ;;  %1427 = vmatpush.bf16.msra.mxu3 %v1357_v55 }
 0x313   : > { %3223 = vmatmul.msk.bf16.vlgmr.msra.gmra.mxu2 %vm1378_vm8, %v3334_v25  ;;  %3227 = vmatmul.msk.bf16.vlgmr.msra.gmra.mxu3 %vm1378_vm8, %v3334_v25 }
 0x31c   : > { %3248 = vmatmul.msk.bf16.gmra.mxu0 %vm1503_vm6, %v3339_v53  ;;  %3252 = vmatmul.msk.bf16.gmra.mxu1 %vm1503_vm6, %v3339_v53 }
 0x323   : > { %3224 = vmatmul.msk.bf16.gmra.mxu2 %vm1378_vm8, %v3335_v16  ;;  %3228 = vmatmul.msk.bf16.gmra.mxu3 %vm1378_vm8, %v3335_v16 }
 0x32c   : > { %3249 = vmatmul.msk.bf16.gmra.mxu0 %vm1503_vm6, %v3340_v46  ;;  %3253 = vmatmul.msk.bf16.gmra.mxu1 %vm1503_vm6, %v3340_v46 }
 0x333   : > { %3225 = vmatmul.msk.bf16.gmra.mxu2 %vm1378_vm8, %v3336_v40  ;;  %3229 = vmatmul.msk.bf16.gmra.mxu3 %vm1378_vm8, %v3336_v40 }
 0x33c   : > { %3250 = vmatmul.msk.bf16.gmra.mxu0 %vm1503_vm6, %v3341_v38  ;;  %3254 = vmatmul.msk.bf16.gmra.mxu1 %vm1503_vm6, %v3341_v38 }
 0x343   : > { %3226 = vmatmul.msk.bf16.gmra.mxu2 %vm1378_vm8, %v3337_v26  ;;  %3230 = vmatmul.msk.bf16.gmra.mxu3 %vm1378_vm8, %v3337_v26 }
 0x389   : > { %v1532_v21 = vpop.f32.mrf.mxu0  ;;  %v1561_v52 = vpop.f32.mrf.mxu1 }
 0x38a   : > { %1589 = vrot.lane.b32.xlu1 %v1561_v52, %s3684_s22  ;;  %1581 = vrot.lane.b32.xlu2 %v1532_v21, %s3684_s22 }
 0x391   : > { %v1534_v57 = vpop.f32.mrf.mxu0  ;;  %v1563_v14 = vpop.f32.mrf.mxu1 }
 0x392   : > { %1591 = vrot.lane.b32.xlu0 %v1563_v14, %s3684_s22  ;;  %1583 = vrot.lane.b32.xlu1 %v1534_v57, %s3684_s22 }
 0x396   : > { %v1429_v20 = vpop.f32.mrf.mxu3  ;;  %v1400_v32 = vpop.f32.mrf.mxu2 }
 0x397   : > { %v1465_v1 = vadd.f32 %v1451_v2, %v1400_v32  ;;  %v1466_v61 = vadd.f32 %v1451_v2, %v1429_v20 }
 0x399   : > { %v1537_v33 = vpop.f32.mrf.mxu0  ;;  %v1566_v4 = vpop.f32.mrf.mxu1 }
 0x39a   : > { %1593 = vrot.lane.b32.xlu2 %v1566_v4, %s3684_s22  ;;  %1585 = vrot.lane.b32.xlu0 %v1537_v33, %s3684_s22 }
 0x39e   : > { %v1431_v22 = vpop.f32.mrf.mxu3  ;;  %v1402_v45 = vpop.f32.mrf.mxu2 }
 0x39f   : > { %v1468_v21 = vadd.f32 %v1455_v60, %v1431_v22  ;;  %v1467_v52 = vadd.f32 %v1455_v60, %v1402_v45 }
 0x3a1   : > { %v1539_v13 = vpop.f32.mrf.mxu0  ;;  %v1568_v59 = vpop.f32.mrf.mxu1 }
 0x3a2   : > { %1595 = vrot.lane.b32.xlu1 %v1568_v59, %s3684_s22  ;;  %1587 = vrot.lane.b32.xlu2 %v1539_v13, %s3684_s22 }
 0x3a6   : > { %v4773_v43 = vpop.f32.mrf.mxu3  ;;  %v4775_v8 = vpop.f32.mrf.mxu2 }
 0x3a9   : > { %v1542_v34 = vpop.f32.mrf.mxu0  ;;  %v1571_v49 = vpop.f32.mrf.mxu1 }
 0x3aa   : > { %1629 = vrot.lane.b32.xlu2 %v1571_v49, %s3677_s13  ;;  %1621 = vrot.lane.b32.xlu0 %v1542_v34, %s3677_s13 }
 0x3ae   : > { %v1436_v9 = vpop.f32.mrf.mxu3  ;;  %v1407_v23 = vpop.f32.mrf.mxu2 }
 0x3af   : > { %v1472_v13 = vadd.f32 %v1463_v10, %v1436_v9  ;;  %v1471_v59 = vadd.f32 %v1463_v10, %v1407_v23 }
 0x3b1   : > { %v1544_v41 = vpop.f32.mrf.mxu0  ;;  %v1573_v27 = vpop.f32.mrf.mxu1 }
 0x3b2   : > { %1623 = vrot.lane.b32.xlu2 %v1544_v41, %s3677_s13 }
 0x3b6   : > { %v4779_v56 = vpop.f32.mrf.mxu2  ;;  %v4781_v18 = vpop.f32.mrf.mxu3 }
 0x3b7   : > { %v1677_v15 = vadd.f32 %v4781_v18, %v4779_v56 }
 0x3b9   : > { %v1547_v11 = vpop.f32.mrf.mxu0  ;;  %v1576_v29 = vpop.f32.mrf.mxu1 }
 0x3ba   : > { %1625 = vrot.lane.b32.xlu1 %v1547_v11, %s3677_s13 }
 0x3be   : > { %v4803_v25 = vpop.f32.mrf.mxu2  ;;  %v4805_v39 = vpop.f32.mrf.mxu3 }
 0x3bf   : > { %v1680_v62 = vadd.f32 %v4805_v39, %v4803_v25 }
 0x3c1   : > { %v1549_v50 = vpop.f32.mrf.mxu0  ;;  %v1578_v42 = vpop.f32.mrf.mxu1 }
 0x3c2   : > { %1631 = vrot.lane.b32.xlu1 %v1573_v27, %s3677_s13  ;;  %1627 = vrot.lane.b32.xlu0 %v1549_v50, %s3677_s13 }
 0x3c3   : > { %1635 = vrot.lane.b32.xlu2 %v1578_v42, %s3677_s13 }
 0x3c6   : > { %v4819_v4 = vpop.f32.mrf.mxu2  ;;  %v4821_v34 = vpop.f32.mrf.mxu3 }
 0x3ca   : > { %1633 = vrot.lane.b32.xlu0 %v1576_v29, %s3677_s13 }
 0x3e4   : > { %v1582_v30 = vpop.permute.xlu2 %1581 }
 0x3f4   : > { %v4777_v28 = vpop.permute.xlu2 %1593  ;;  %1678 = vadd.xlane.f32.xlu0 %v1677_v15  ;;  %v1469_v15 = vadd.f32 %v4771_v54, %v4775_v8 }
 0x3fc   : > { %v1590_v31 = vpop.permute.xlu1 %1589  ;;  %v1588_v47 = vpop.permute.xlu2 %1587 }
 0x3fd   : > { %v1601_v58 = vsel %vm818_vm7, %v1590_v31, %v1582_v30  ;;  %v1597_v44 = vsel %vm818_vm7, %v1582_v30, %v1590_v31  ;;  %v1470_v31 = vadd.f32 %v4771_v54, %v4773_v43  ;;  %v4861_v54 = vpop.f32.mrf.mxu3 }
 0x3fe   : > { %v1605_v35 = vsel %vm827_vm12, %v1601_v58, 0.0  ;;  %v1614_v51 = vadd.f32 %v1597_v44, %v1466_v61 }
 0x3ff   : > { %v1613_v5 = vadd.f32 %v1605_v35, %v1465_v1  ;;  %v4859_v35 = vpop.f32.mrf.mxu2 }
 0x404   : > { %v1592_v37 = vpop.permute.xlu0 %1591  ;;  %v1584_v63 = vpop.permute.xlu1 %1583 }
 0x405   : > { %v1630_v12 = vpop.permute.xlu2 %1629  ;;  %v1602_v38 = vsel %vm818_vm7, %v1592_v37, %v1584_v63  ;;  %v1598_v57 = vsel %vm818_vm7, %v1584_v63, %v1592_v37 }
 0x406   : > { %v1607_v14 = vsel %vm827_vm12, %v1602_v38, 0.0  ;;  %v1616_v49 = vadd.f32 %v1598_v57, %v1468_v21 }
 0x407   : > { %v1615_v27 = vadd.f32 %v1607_v14, %v1467_v52 }
 0x40c   : > { %v1586_v48 = vpop.permute.xlu0 %1585 }
 0x40d   : > { %v1624_v46 = vpop.permute.xlu2 %1623  ;;  %v1603_v11 = vsel %vm818_vm7, %v4777_v28, %v1586_v48  ;;  %v1599_v61 = vsel %vm818_vm7, %v1586_v48, %v4777_v28  ;;  %v1683_v28 = vadd.f32 %v4821_v34, %v4819_v4 }
 0x40e   : > { %v1618_v43 = vadd.f32 %v1599_v61, %v1470_v31 }
 0x414   : > { %v1596_v53 = vpop.permute.xlu1 %1595 }
 0x415   : > { %v1604_v40 = vsel %vm818_vm7, %v1596_v53, %v1588_v47  ;;  %v1600_v26 = vsel %vm818_vm7, %v1588_v47, %v1596_v53  ;;  %v1609_v47 = vsel %vm827_vm12, %v1603_v11, 0.0 }
 0x416   : > { %v1611_v33 = vsel %vm827_vm12, %v1604_v40, 0.0  ;;  %v1620_v50 = vadd.f32 %v1600_v26, %v1472_v13  ;;  %v1617_v8 = vadd.f32 %v1609_v47, %v1469_v15  ;;  %vm1862_vm12 = vcmask 7168  }
 0x417   : > { %v1619_v29 = vadd.f32 %v1611_v33, %v1471_v59 }
 0x41c   : > { %v1622_v7 = vpop.permute.xlu0 %1621 }
 0x41d   : > { %v1637_v17 = vsel %vm921_vm13, %v1622_v7, %v1630_v12  ;;  %v1641_v24 = vsel %vm921_vm13, %v1630_v12, %v1622_v7  ;;  %v1636_v41 = vpop.permute.xlu2 %1635 }
 0x41e   : > { %v1646_v3 = vsel %vm931_vm14, %v1641_v24, 0.0  ;;  %v4797_v6 = vadd.f32 %v1637_v17, %v1613_v5 }
 0x41f   : > { %v4799_v36 = vadd.f32 %v1646_v3, %v1614_v51  ;;  %v1686_v51 = vadd.f32 %v4861_v54, %v4859_v35 }
 0x421   : > { %v1661_v55 = vadd.f32 %v4799_v36, %v4797_v6 }
 0x423   : > { %1662 = vadd.xlane.f32.xlu1 %v1661_v55 }
 0x42c   : > { %v1626_v16 = vpop.permute.xlu1 %1625 }
 0x434   : > { %v1632_v42 = vpop.permute.xlu1 %1631  ;;  %v1628_v20 = vpop.permute.xlu0 %1627 }
 0x435   : > { %v1638_v32 = vsel %vm921_vm13, %v1624_v46, %v1632_v42  ;;  %v1642_v22 = vsel %vm921_vm13, %v1632_v42, %v1624_v46  ;;  %v1640_v45 = vsel %vm921_vm13, %v1628_v20, %v1636_v41  ;;  %v1644_v2 = vsel %vm921_vm13, %v1636_v41, %v1628_v20 }
 0x436   : > { %v1648_v30 = vsel %vm931_vm14, %v1642_v22, 0.0  ;;  %v4836_v60 = vadd.f32 %v1638_v32, %v1615_v27  ;;  %v1652_v9 = vsel %vm931_vm14, %v1644_v2, 0.0  ;;  %v4840_v23 = vadd.f32 %v1640_v45, %v1619_v29 }
 0x437   : > { %v4842_v10 = vadd.f32 %v1652_v9, %v1620_v50  ;;  %v4844_v37 = vadd.f32 %v1648_v30, %v1616_v49 }
 0x439   : > { %v1664_v58 = vadd.f32 %v4844_v37, %v4836_v60  ;;  %v1670_v1 = vadd.f32 %v4842_v10, %v4840_v23 }
 0x43b   : > { %1665 = vadd.xlane.f32.xlu0 %v1664_v58  ;;  %1671 = vadd.xlane.f32.xlu1 %v1670_v1 }
 0x43c   : > { %v1634_v44 = vpop.permute.xlu0 %1633 }
 0x43d   : > { %v1639_v63 = vsel %vm921_vm13, %v1626_v16, %v1634_v44  ;;  %v1643_v5 = vsel %vm921_vm13, %v1634_v44, %v1626_v16 }
 0x43e   : > { %v1650_v12 = vsel %vm931_vm14, %v1643_v5, 0.0  ;;  %v4869_v7 = vadd.f32 %v1639_v63, %v1617_v8 }
 0x43f   : > { %v4873_v48 = vadd.f32 %v1650_v12, %v1618_v43 }
 0x441   : > { %v1667_v17 = vadd.f32 %v4873_v48, %v4869_v7 }
 0x443   : > { %1687 = vadd.xlane.f32.xlu0 %v1686_v51  ;;  %1684 = vadd.xlane.f32.xlu1 %v1683_v28 }
 0x444   : > { %1668 = vadd.xlane.f32.xlu2 %v1667_v17 }
 0x44c   : > { %1681 = vadd.xlane.f32.xlu2 %v1680_v62 }
 0x467   : > { %v1679_v19 = vpop.xlane.xlu0 %1678 }
 0x468   : > { %v1689_v41 = vmul.f32 %v1679_v19, %v4518_v0 }
 0x496   : > { %v1663_v24 = vpop.xlane.xlu1 %1662 }
 0x497   : > { %v1673_v16 = vmul.f32 %v1663_v24, %v4518_v0 }
 0x4ae   : > { %v1672_v3 = vpop.xlane.xlu1 %1671  ;;  %v1666_v55 = vpop.xlane.xlu0 %1665 }
 0x4af   : > { %v1674_v53 = vmul.f32 %v1666_v55, %v4518_v0  ;;  %v1676_v38 = vmul.f32 %v1672_v3, %v4518_v0 }
 0x4b1   : > { %v1693_v21 = vmax.f32 %v1673_v16, %v1674_v53 }
 0x4b6   : > { %v1685_v57 = vpop.xlane.xlu1 %1684  ;;  %v1688_v14 = vpop.xlane.xlu0 %1687 }
 0x4b7   : > { %v1669_v46 = vpop.xlane.xlu2 %1668  ;;  %v1691_v33 = vmul.f32 %v1685_v57, %v4518_v0  ;;  %v1692_v59 = vmul.f32 %v1688_v14, %v4518_v0 }
 0x4b8   : > { %v1675_v40 = vmul.f32 %v1669_v46, %v4518_v0 }
 0x4b9   : > { %v1703_v29 = vmax.f32 %v1691_v33, %v1692_v59 }
 0x4ba   : > { %v1694_v52 = vmax.f32 %v1675_v40, %v1676_v38 }
 0x4bc   : > { %v1695_v26 = vmax.f32 %v1693_v21, %v1694_v52 }
 0x4be   : > { %v1696_v13 = vrot.slane %v1695_v26, 4 }
 0x4bf   : > { %v1682_v49 = vpop.xlane.xlu2 %1681 }
 0x4c0   : > { %v1697_v27 = vmax.f32 %v1695_v26, %v1696_v13  ;;  %v1690_v11 = vmul.f32 %v1682_v49, %v4518_v0 }
 0x4c2   : > { %v1702_v50 = vmax.f32 %v1689_v41, %v1690_v11  ;;  %v1698_v42 = vrot.slane %v1697_v27, 2 }
 0x4c4   : > { %v1704_v20 = vmax.f32 %v1702_v50, %v1703_v29  ;;  %v1699_v22 = vmax.f32 %v1697_v27, %v1698_v42 }
 0x4c6   : > { %v1705_v32 = vrot.slane %v1704_v20, 4  ;;  %v1700_v30 = vrot.slane %v1699_v22, 1 }
 0x4c8   : > { %v1706_v45 = vmax.f32 %v1704_v20, %v1705_v32  ;;  %v1701_v31 = vmax.f32 %v1699_v22, %v1700_v30 }
 0x4ca   : > { %v1707_v2 = vrot.slane %v1706_v45, 2 }
 0x4cc   : > { %v1708_v9 = vmax.f32 %v1706_v45, %v1707_v2 }
 0x4ce   : > { %v1709_v15 = vrot.slane %v1708_v9, 1 }
 0x4d0   : > { %v1710_v47 = vmax.f32 %v1708_v9, %v1709_v15 }
 0x4d2   : > { %v1711_v58 = vmax.f32 %v1701_v31, %v1710_v47  ;;  %v411_v31 = vld [vmem:[%s401_s25] sm:$0x3] }
 0x4d4   : > { %v1712_v1 = vsub.f32 %v1673_v16, %v1711_v58  ;;  %v1713_v61 = vsub.f32 %v1674_v53, %v1711_v58  ;;  %v1714_v8 = vsub.f32 %v1675_v40, %v1711_v58  ;;  %v1715_v44 = vsub.f32 %v1676_v38, %v1711_v58 }
 0x4d5   : > { %v1724_v43 = vsub.f32 %v1689_v41, %v1711_v58  ;;  %v1725_v0 = vsub.f32 %v1690_v11, %v1711_v58  ;;  %v1726_v51 = vsub.f32 %v1691_v33, %v1711_v58  ;;  %v1727_v62 = vsub.f32 %v1692_v59, %v1711_v58 }
 0x4d6   : > { %v1716_v63 = vmul.f32 1.442695, %v1712_v1  ;;  %v1718_v5 = vmul.f32 1.442695, %v1713_v61  ;;  %v1720_v12 = vmul.f32 1.442695, %v1714_v8 }
 0x4d7   : > { %v1722_v28 = vmul.f32 1.442695, %v1715_v44  ;;  %v1728_v17 = vmul.f32 1.442695, %v1724_v43  ;;  %v1730_v19 = vmul.f32 1.442695, %v1725_v0 }
 0x4d8   : > { %3519 = vpow2.f32 %v1716_v63  ;;  %v1732_v24 = vmul.f32 1.442695, %v1726_v51  ;;  %v1734_v3 = vmul.f32 1.442695, %v1727_v62  ;;  %v4899_v1 = vperm.slane %v411_v31, 0  ;;  %v3545_v63 = vld [vmem:[%s3851_s12 + $0x30] sm:$0xff] }
 0x4d9   : > { %3521 = vpow2.f32 %v1718_v5  ;;  %v4901_v44 = vperm.slane %v411_v31, 1 }
 0x4da   : > { %3523 = vpow2.f32 %v1720_v12  ;;  %v1812_v5 = vmul.f32 %v3545_v63, %v4899_v1 }
 0x4db   : > { %3525 = vpow2.f32 %v1722_v28  ;;  %v3546_v28 = vld [vmem:[%s3851_s12 + $0x38] sm:$0xff] }
 0x4dc   : > { %3527 = vpow2.f32 %v1728_v17  ;;  %v1813_v51 = vmul.f32 %v3546_v28, %v4901_v44  ;;  %v3547_v17 = vld [vmem:[%s3851_s12 + $0x20] sm:$0xff] }
 0x4dd   : > { %3529 = vpow2.f32 %v1730_v19  ;;  %v1810_v62 = vmul.f32 %v3547_v17, %v4899_v1 }
 0x4de   : > { %v4889_v55 = vpop.eup %3519  ;;  %3531 = vpow2.f32 %v1732_v24  ;;  %v3548_v24 = vld [vmem:[%s3851_s12 + $0x28] sm:$0xff] }
 0x4df   : > { %v4891_v53 = vpop.eup %3521  ;;  %3533 = vpow2.f32 %v1734_v3  ;;  %v1811_v3 = vmul.f32 %v3548_v24, %v4901_v44 }
 0x4e0   : > { %v3524_v46 = vpop.eup %3523  ;;  %v1736_v16 = vadd.f32 %v4891_v53, %v4889_v55 }
 0x4e1   : > { %v3526_v38 = vpop.eup %3525 }
 0x4e2   : > { %v3528_v40 = vpop.eup %3527  ;;  %v1737_v21 = vadd.f32 %v3524_v46, %v1736_v16  ;;  %v3549_v16 = vld [vmem:[%s3851_s12 + $0x10] sm:$0xff] }
 0x4e3   : > { %v3530_v52 = vpop.eup %3529 }
 0x4e4   : > { %v1738_v57 = vadd.f32 %v3526_v38, %v1737_v21  ;;  %v1745_v14 = vadd.f32 %v3530_v52, %v3528_v40  ;;  %v3532_v26 = vpop.eup %3531  ;;  %v1808_v21 = vmul.f32 %v3549_v16, %v4899_v1 }
 0x4e5   : > { %v3534_v59 = vpop.eup %3533 }
 0x4e6   : > { %v1739_v33 = vrot.slane %v1738_v57, 4  ;;  %v1746_v13 = vadd.f32 %v3532_v26, %v1745_v14 }
 0x4e8   : > { %v1740_v49 = vadd.f32 %v1739_v33, %v1738_v57  ;;  %v1747_v41 = vadd.f32 %v3534_v59, %v1746_v13  ;;  %v3550_v57 = vld [vmem:[%s3851_s12 + $0x18] sm:$0xff] }
 0x4e9   : > { %v1809_v14 = vmul.f32 %v3550_v57, %v4901_v44 }
 0x4ea   : > { %v1741_v27 = vrot.slane %v1740_v49, 2  ;;  %v1748_v11 = vrot.slane %v1747_v41, 4 }
 0x4ec   : > { %v1742_v29 = vadd.f32 %v1741_v27, %v1740_v49  ;;  %v1749_v50 = vadd.f32 %v1748_v11, %v1747_v41 }
 0x4ee   : > { %v1743_v42 = vrot.slane %v1742_v29, 1  ;;  %v1750_v20 = vrot.slane %v1749_v50, 2 }
 0x4f0   : > { %v1751_v32 = vadd.f32 %v1750_v20, %v1749_v50  ;;  %v1744_v22 = vadd.f32 %v1743_v42, %v1742_v29 }
 0x4f2   : > { %v1752_v45 = vrot.slane %v1751_v32, 1 }
 0x4f4   : > { %v1753_v2 = vadd.f32 %v1752_v45, %v1751_v32 }
 0x4f6   : > { %v1754_v30 = vadd.f32 %v1753_v2, %v1744_v22 }
 0x4f8   : > { %3535 = vrcp.f32 %v1754_v30  ;;  %v1766_v58 = vand.u32 2147483648, %v1754_v30  ;;  %v1764_v8 = vand.u32 2147483647, %v1754_v30  ;;  %vm1760_vm9 = vweird.f32 %v1754_v30 }
 0x4fa   : > { %v1767_v0 = vor.u32 1.1754944e-38, %v1766_v58  ;;  %vm1765_vm11 = vcmp.eq.f32.partialorder %v1764_v8, 8.507059e+37 }
 0x4fe   : > { %v3536_v9 = vpop.eup %3535 }
 0x4ff   : > { %v1756_v15 = vmul.f32 %v3536_v9, %v1754_v30  ;;  %vm1761_vm7 = vweird.f32 %v3536_v9 }
 0x500   : > { %vm1762_vm10 = vmor %vm1760_vm9, %vm1761_vm7 }
 0x501   : > { %v1757_v47 = vsub.f32 1.0, %v1756_v15 }
 0x503   : > { %v1758_v61 = vmul.f32 %v3536_v9, %v1757_v47  ;;  %v3551_v47 = vld [vmem:[%s3851_s12] sm:$0xff] }
 0x504   : > { %v1806_v58 = vmul.f32 %v3551_v47, %v4899_v1 }
 0x505   : > { %v1759_v43 = vadd.f32 %v3536_v9, %v1758_v61  ;;  %v3552_v61 = vld [vmem:[%s3851_s12 + $0x8] sm:$0xff]  ;;  %s3701_s12 = smov 122  }
 0x507   : > { %v1763_v12 = vsel %vm1762_vm10, %v3536_v9, %v1759_v43 }
 0x508   : > { %v1768_v19 = vsel %vm1765_vm11, %v1767_v0, %v1763_v12 }
 0x509   : > { %v1782_v33 = vmul.f32 %v3530_v52, %v1768_v19  ;;  %v1772_v13 = vmul.f32 %v3526_v38, %v1768_v19  ;;  %v1784_v49 = vmul.f32 %v3534_v59, %v1768_v19  ;;  %v1771_v41 = vmul.f32 %v3524_v46, %v1768_v19 }
 0x50a   : > { %v1783_v27 = vmul.f32 %v3532_v26, %v1768_v19  ;;  %v1770_v11 = vmul.f32 %v4891_v53, %v1768_v19  ;;  %v1769_v29 = vmul.f32 %v4889_v55, %v1768_v19  ;;  %v1781_v50 = vmul.f32 %v3528_v40, %v1768_v19 }
 0x50b   : > { %v1779_v42 = vmul.f32 %v1772_v13, %v4840_v23  ;;  %v1780_v20 = vmul.f32 %v1772_v13, %v4842_v10  ;;  %v1791_v32 = vmul.f32 %v1784_v49, %v4859_v35  ;;  %v1792_v22 = vmul.f32 %v1784_v49, %v4861_v54 }
 0x50c   : > { %v1777_v38 = vmul.f32 %v1771_v41, %v4869_v7  ;;  %v1778_v46 = vmul.f32 %v1771_v41, %v4873_v48  ;;  %v1789_v52 = vmul.f32 %v1783_v27, %v4819_v4  ;;  %v1790_v53 = vmul.f32 %v1783_v27, %v4821_v34 }
 0x50d   : > { %v1799_v55 = vadd.f32 %v1791_v32, %v1779_v42  ;;  %v1800_v40 = vadd.f32 %v1792_v22, %v1780_v20  ;;  %v1775_v23 = vmul.f32 %v1770_v11, %v4836_v60  ;;  %v1776_v10 = vmul.f32 %v1770_v11, %v4844_v37  ;;  %v1868_v20 = vld [vmem:[%s6002_s6 + $0x8] sm:$0xff] }
 0x50e   : > { %v1797_v26 = vadd.f32 %v1789_v52, %v1777_v38  ;;  %v1798_v35 = vadd.f32 %v1790_v53, %v1778_v46  ;;  %v1787_v54 = vmul.f32 %v1782_v33, %v4803_v25  ;;  %v1788_v59 = vmul.f32 %v1782_v33, %v4805_v39 }
 0x50f   : > { %v1820_v45 = vadd.f32 %v1812_v5, %v1799_v55  ;;  %v1821_v7 = vadd.f32 %v1813_v51, %v1800_v40  ;;  %v1773_v25 = vmul.f32 %v1769_v29, %v4797_v6  ;;  %v1774_v39 = vmul.f32 %v1769_v29, %v4799_v36  ;;  %v4967_v55 = vld [vmem:[%s6067_s2] sm:$0xff]  ;;  %v4973_v40 = vld [vmem:[%s6067_s2 + $0x8] sm:$0xff] }
 0x510   : > { %v1818_v2 = vadd.f32 %v1810_v62, %v1797_v26  ;;  %v1819_v48 = vadd.f32 %v1811_v3, %v1798_v35  ;;  %v1795_v4 = vadd.f32 %v1787_v54, %v1775_v23  ;;  %v1796_v30 = vadd.f32 %v1788_v59, %v1776_v10  ;;  %6097 = vst [vmem:[#allocation12_spill] sm:$0xff] %v4967_v55  ;;  %v4979_v23 = vld [vmem:[%s6067_s2 + $0x10] sm:$0xff]  ;;  %v4985_v10 = vld [vmem:[%s6067_s2 + $0x18] sm:$0xff] }
 0x511   : > { %v1839_v34 = vadd.f32 %v1821_v7, %v1820_v45  ;;  %1828 = vst [vmem:[%s4932_s30 + $0x30] sm:$0xff] %v1820_v45  ;;  %v1785_v60 = vmul.f32 %v1781_v50, %v4779_v56  ;;  %v1786_v31 = vmul.f32 %v1781_v50, %v4781_v18  ;;  %v1807_v6 = vmul.f32 %v3552_v61, %v4901_v44  ;;  %v1867_v50 = vld [vmem:[%s6002_s6] sm:$0xff] }
 0x512   : > { %1829 = vst [vmem:[%s4932_s30 + $0x38] sm:$0xff] %v1821_v7  ;;  %v1836_v37 = vadd.f32 %v1819_v48, %v1818_v2  ;;  %v1816_v9 = vadd.f32 %v1808_v21, %v1795_v4  ;;  %v1817_v15 = vadd.f32 %v1809_v14, %v1796_v30  ;;  %v1846_v56 = vmul.f32 %v1818_v2, %v1818_v2 }
 0x513   : > { %1840 = vadd.xlane.f32.xlu2 %v1839_v34  ;;  %1826 = vst [vmem:[%s4932_s30 + $0x20] sm:$0xff] %v1818_v2  ;;  %v1847_v8 = vmul.f32 %v1819_v48, %v1819_v48  ;;  %v1793_v43 = vadd.f32 %v1785_v60, %v1773_v25  ;;  %v1794_v0 = vadd.f32 %v1786_v31, %v1774_v39 }
 0x514   : > { %1837 = vadd.xlane.f32.xlu0 %v1836_v37  ;;  %1827 = vst [vmem:[%s4932_s30 + $0x28] sm:$0xff] %v1819_v48  ;;  %v1833_v36 = vadd.f32 %v1817_v15, %v1816_v9  ;;  %v1844_v63 = vmul.f32 %v1816_v9, %v1816_v9  ;;  %v1845_v18 = vmul.f32 %v1817_v15, %v1817_v15 }
 0x515   : > { %1824 = vst [vmem:[%s4932_s30 + $0x10] sm:$0xff] %v1816_v9  ;;  %v1814_v5 = vadd.f32 %v1806_v58, %v1793_v43  ;;  %v1815_v12 = vadd.f32 %v1807_v6, %v1794_v0  ;;  %v1848_v1 = vmul.f32 %v1820_v45, %v1820_v45  ;;  %v1849_v28 = vmul.f32 %v1821_v7, %v1821_v7  ;;  %v1938_v0 = vld [vmem:[%s6003_s7 + $0x10] sm:$0xff] }
 0x516   : > { %1834 = vadd.xlane.f32.xlu1 %v1833_v36  ;;  %1825 = vst [vmem:[%s4932_s30 + $0x18] sm:$0xff] %v1817_v15  ;;  %v1856_v51 = vadd.f32 %v1847_v8, %v1846_v56  ;;  %v1853_v44 = vadd.f32 %v1845_v18, %v1844_v63  ;;  %v1936_v56 = vld [vmem:[%s6003_s7] sm:$0xff]  ;;  %v1937_v8 = vld [vmem:[%s6003_s7 + $0x8] sm:$0xff]  ;;  %v1939_v63 = vld [vmem:[%s6003_s7 + $0x18] sm:$0xff] }
 0x517   : > { %1822 = vst [vmem:[%s4932_s30] sm:$0xff] %v1814_v5  ;;  %v1859_v17 = vadd.f32 %v1849_v28, %v1848_v1  ;;  %v1842_v62 = vmul.f32 %v1814_v5, %v1814_v5  ;;  %v1843_v19 = vmul.f32 %v1815_v12, %v1815_v12  ;;  %v1830_v24 = vadd.f32 %v1815_v12, %v1814_v5 }
 0x518   : > { %1823 = vst [vmem:[%s4932_s30 + $0x8] sm:$0xff] %v1815_v12 }
 0x519   : > { %v1850_v3 = vadd.f32 %v1843_v19, %v1842_v62  ;;  %6098 = vst [vmem:[#allocation10_spill] sm:$0xff] %v4973_v40 }
 0x51a   : > { %6099 = vst [vmem:[#allocation11_spill] sm:$0xff] %v4979_v23 }
 0x51b   : > { %1857 = vadd.xlane.f32.xlu2 %v1856_v51  ;;  %6100 = vst [vmem:[#allocation14_spill] sm:$0xff] %v4985_v10 }
 0x51c   : > { %1854 = vadd.xlane.f32.xlu0 %v1853_v44 }
 0x51e   : > { %1860 = vadd.xlane.f32.xlu1 %v1859_v17 }
 0x523   : > { %1831 = vadd.xlane.f32.xlu2 %v1830_v24 }
 0x526   : > { %1851 = vadd.xlane.f32.xlu1 %v1850_v3 }
 0x53f   : > { %1983 = vrot.lane.b32.xlu1 %v4967_v55, %s3701_s12 }
 0x586   : > { %v1841_v16 = vpop.xlane.xlu2 %1840 }
 0x587   : > { %v1838_v21 = vpop.xlane.xlu0 %1837 }
 0x589   : > { %v1835_v57 = vpop.xlane.xlu1 %1834 }
 0x58e   : > { %v1858_v14 = vpop.xlane.xlu2 %1857 }
 0x58f   : > { %v1855_v49 = vpop.xlane.xlu0 %1854  ;;  %v1865_v41 = vsel %vm1862_vm12, %v1838_v21, %v1858_v14 }
 0x590   : > { %v1864_v27 = vsel %vm1862_vm12, %v1835_v57, %v1855_v49 }
 0x591   : > { %v1861_v33 = vpop.xlane.xlu1 %1860 }
 0x592   : > { %v1866_v13 = vsel %vm1862_vm12, %v1841_v16, %v1861_v33 }
 0x593   : > { %1887 = vmatpush.msrb.mxu2 %v1866_v13 }
 0x595   : > { %1888 = vmatpush.msrb.mxu2 %v1865_v41 }
 0x596   : > { %v1832_v11 = vpop.xlane.xlu2 %1831 }
 0x597   : > { %1889 = vmatpush.msrb.mxu2 %v1864_v27 }
 0x599   : > { %v1852_v29 = vpop.xlane.xlu1 %1851 }
 0x59a   : > { %v1863_v42 = vsel %vm1862_vm12, %v1832_v11, %v1852_v29 }
 0x59b   : > { %1890 = vmatpush.msrb.mxu2 %v1863_v42  ;;  %v5033_v42 = vld [vmem:[%s6004_s8] sm:$0xf] }
 0x59c   : > { %3255 = vmatmul.msk.f32.vlgmr.msrb.gmra.mxu2 %vm1316_vm4, %v1867_v50  ;;  %6107 = vst [vmem:[#allocation19_spill] sm:$0xff] %v5033_v42 }
 0x5a4   : > { %3256 = vmatmul.msk.f32.gmra.mxu2 %vm1316_vm4, %v1868_v20  ;;  %v5038_v20 = vld [vmem:[%s6004_s8] sm:$0xf0] }
 0x5a5   : > { %6108 = vst [vmem:[#allocation20_spill] sm:$0xff] %v5038_v20 }
 0x5b1   : > { %v1984_v18 = vpop.permute.xlu1 %1983 }
 0x61f   : > { %v1892_v32 = vpop.f32.mrf.mxu2 }
 0x620   : > { %v1898_v22 = vmul.f32 0.001953125, %v1892_v32  ;;  %v5043_v32 = vld [vmem:[%s6004_s8 + $0x8] sm:$0xf] }
 0x621   : > { %6109 = vst [vmem:[#allocation21_spill] sm:$0xff] %v5043_v32 }
 0x622   : > { %v1900_v38 = vmul.f32 %v1898_v22, %v1898_v22 }
 0x624   : > { %1904 = vrot.lane.b32.xlu2 %v1900_v38, %s3684_s22  ;;  %v5053_v38 = vld [vmem:[%s6004_s8 + $0x10] sm:$0xf] }
 0x625   : > { %6111 = vst [vmem:[#allocation23_spill] sm:$0xff] %v5053_v38 }
 0x627   : > { %v1895_v46 = vpop.f32.mrf.mxu2 }
 0x628   : > { %v1899_v52 = vmul.f32 0.001953125, %v1895_v46  ;;  %v5058_v46 = vld [vmem:[%s6004_s8 + $0x10] sm:$0xf0] }
 0x629   : > { %6112 = vst [vmem:[#allocation24_spill] sm:$0xff] %v5058_v46 }
 0x62a   : > { %v1901_v53 = vmul.f32 %v1899_v52, %v1899_v52 }
 0x62c   : > { %1906 = vrot.lane.b32.xlu0 %v1901_v53, %s3684_s22  ;;  %1987 = vrot.lane.b32.xlu2 %v4979_v23, %s3701_s12  ;;  %v5068_v53 = vld [vmem:[%s6004_s8 + $0x18] sm:$0xf0] }
 0x62d   : > { %6114 = vst [vmem:[#allocation26_spill] sm:$0xff] %v5068_v53 }
 0x634   : > { %1985 = vrot.lane.b32.xlu0 %v4973_v40, %s3701_s12 }
 0x63c   : > { %1989 = vrot.lane.b32.xlu0 %v4985_v10, %s3701_s12  ;;  %s5218_s12 = smov 0  }
 0x67e   : > { %v1905_v26 = vpop.permute.xlu2 %1904 }
 0x67f   : > { %v1910_v35 = vsub.f32 %v1898_v22, %v1905_v26  ;;  %v5073_v26 = vld [vmem:[%s6004_s8 + $0x20] sm:$0xf] }
 0x680   : > { %6115 = vst [vmem:[#allocation27_spill] sm:$0xff] %v5073_v26 }
 0x681   : > { %v1912_v54 = vmax.f32 %v1910_v35, 0.0  ;;  %v5078_v35 = vld [vmem:[%s6004_s8 + $0x20] sm:$0xf0] }
 0x682   : > { %6116 = vst [vmem:[#allocation28_spill] sm:$0xff] %v5078_v35 }
 0x683   : > { %v1914_v59 = vadd.f32 1e-05, %v1912_v54  ;;  %v5083_v54 = vld [vmem:[%s6004_s8 + $0x28] sm:$0xf] }
 0x684   : > { %6117 = vst [vmem:[#allocation29_spill] sm:$0xff] %v5083_v54 }
 0x685   : > { %3537 = vrsqrt.f32 %v1914_v59  ;;  %vm1922_vm15 = vweird.f32 %v1914_v59 }
 0x686   : > { %v1988_v44 = vpop.permute.xlu2 %1987 }
 0x68b   : > { %v3538_v7 = vpop.eup %3537 }
 0x68c   : > { %v1917_v4 = vmul.f32 %v3538_v7, %v1914_v59  ;;  %vm1923_vm13 = vweird.f32 %v3538_v7  ;;  %v5088_v59 = vld [vmem:[%s6004_s8 + $0x28] sm:$0xf0] }
 0x68d   : > { %vm1924_vm1 = vmor %vm1922_vm15, %vm1923_vm13  ;;  %6118 = vst [vmem:[#allocation30_spill] sm:$0xff] %v5088_v59 }
 0x68e   : > { %v1918_v34 = vmul.f32 %v3538_v7, %v1917_v4  ;;  %v5113_v4 = vld [vmem:[%s6005_s9] sm:$0xff] }
 0x68f   : > { %6123 = vst [vmem:[#allocation35_spill] sm:$0xff] %v5113_v4 }
 0x690   : > { %v1919_v25 = vmul.f32 0.5, %v1918_v34  ;;  %v5123_v34 = vld [vmem:[%s6005_s9 + $0x10] sm:$0xff] }
 0x691   : > { %6125 = vst [vmem:[#allocation37_spill] sm:$0xff] %v5123_v34 }
 0x692   : > { %v1920_v37 = vsub.f32 1.5, %v1919_v25  ;;  %v5128_v25 = vld [vmem:[%s6005_s9 + $0x18] sm:$0xff] }
 0x693   : > { %6126 = vst [vmem:[#allocation38_spill] sm:$0xff] %v5128_v25 }
 0x694   : > { %v1921_v47 = vmul.f32 %v3538_v7, %v1920_v37  ;;  %v5143_v37 = vld [vmem:[%s6005_s9 + $0x30] sm:$0xff] }
 0x695   : > { %6129 = vst [vmem:[#allocation41_spill] sm:$0xff] %v5143_v37 }
 0x696   : > { %v1925_v6 = vsel %vm1924_vm1, %v3538_v7, %v1921_v47  ;;  %v5098_v7 = vld [vmem:[%s6004_s8 + $0x30] sm:$0xf0] }
 0x697   : > { %v1940_v43 = vsel %vm1862_vm12, %v1898_v22, %v1925_v6  ;;  %v5048_v22 = vld [vmem:[%s6004_s8 + $0x8] sm:$0xf0]  ;;  %6120 = vst [vmem:[#allocation32_spill] sm:$0xff] %v5098_v7  ;;  %v5163_v47 = vld [vmem:[%s6005_s9 + $0x50] sm:$0xff] }
 0x698   : > { %6110 = vst [vmem:[#allocation22_spill] sm:$0xff] %v5048_v22  ;;  %v5178_v6 = vld [vmem:[%s6005_s9 + $0x68] sm:$0xff] }
 0x699   : > { %6133 = vst [vmem:[#allocation45_spill] sm:$0xff] %v5163_v47 }
 0x69a   : > { %6136 = vst [vmem:[#allocation48_spill] sm:$0xff] %v5178_v6 }
 0x69e   : > { %v1907_v45 = vpop.permute.xlu0 %1906 }
 0x69f   : > { %v1911_v2 = vsub.f32 %v1899_v52, %v1907_v45  ;;  %v5093_v45 = vld [vmem:[%s6004_s8 + $0x30] sm:$0xf] }
 0x6a0   : > { %6119 = vst [vmem:[#allocation31_spill] sm:$0xff] %v5093_v45 }
 0x6a1   : > { %v1913_v48 = vmax.f32 %v1911_v2, 0.0  ;;  %v5103_v2 = vld [vmem:[%s6004_s8 + $0x38] sm:$0xf] }
 0x6a2   : > { %6121 = vst [vmem:[#allocation33_spill] sm:$0xff] %v5103_v2 }
 0x6a3   : > { %v1915_v30 = vadd.f32 1e-05, %v1913_v48  ;;  %v5108_v48 = vld [vmem:[%s6004_s8 + $0x38] sm:$0xf0] }
 0x6a4   : > { %6122 = vst [vmem:[#allocation34_spill] sm:$0xff] %v5108_v48 }
 0x6a5   : > { %3539 = vrsqrt.f32 %v1915_v30  ;;  %vm1932_vm0 = vweird.f32 %v1915_v30 }
 0x6a6   : > { %v1986_v5 = vpop.permute.xlu0 %1985 }
 0x6ab   : > { %v3540_v39 = vpop.eup %3539 }
 0x6ac   : > { %v1927_v60 = vmul.f32 %v3540_v39, %v1915_v30  ;;  %vm1933_vm14 = vweird.f32 %v3540_v39  ;;  %v5118_v30 = vld [vmem:[%s6005_s9 + $0x8] sm:$0xff] }
 0x6ad   : > { %vm1934_vm2 = vmor %vm1932_vm0, %vm1933_vm14  ;;  %6124 = vst [vmem:[#allocation36_spill] sm:$0xff] %v5118_v30 }
 0x6ae   : > { %v1928_v9 = vmul.f32 %v3540_v39, %v1927_v60  ;;  %v1990_v19 = vpop.permute.xlu0 %1989  ;;  %v5138_v60 = vld [vmem:[%s6005_s9 + $0x28] sm:$0xff] }
 0x6af   : > { %6128 = vst [vmem:[#allocation40_spill] sm:$0xff] %v5138_v60 }
 0x6b0   : > { %v1929_v15 = vmul.f32 0.5, %v1928_v9  ;;  %v5148_v9 = vld [vmem:[%s6005_s9 + $0x38] sm:$0xff] }
 0x6b1   : > { %6130 = vst [vmem:[#allocation42_spill] sm:$0xff] %v5148_v9 }
 0x6b2   : > { %v1930_v31 = vsub.f32 1.5, %v1929_v15  ;;  %v5153_v15 = vld [vmem:[%s6005_s9 + $0x40] sm:$0xff] }
 0x6b3   : > { %6131 = vst [vmem:[#allocation43_spill] sm:$0xff] %v5153_v15 }
 0x6b4   : > { %v1931_v58 = vmul.f32 %v3540_v39, %v1930_v31  ;;  %v5158_v31 = vld [vmem:[%s6005_s9 + $0x48] sm:$0xff] }
 0x6b5   : > { %6132 = vst [vmem:[#allocation44_spill] sm:$0xff] %v5158_v31 }
 0x6b6   : > { %v1935_v61 = vsel %vm1934_vm2, %v3540_v39, %v1931_v58  ;;  %v5133_v39 = vld [vmem:[%s6005_s9 + $0x20] sm:$0xff]  ;;  %v5168_v58 = vld [vmem:[%s6005_s9 + $0x58] sm:$0xff] }
 0x6b7   : > { %v1941_v36 = vsel %vm1862_vm12, %v1899_v52, %v1935_v61  ;;  %v5063_v52 = vld [vmem:[%s6004_s8 + $0x18] sm:$0xf]  ;;  %6127 = vst [vmem:[#allocation39_spill] sm:$0xff] %v5133_v39  ;;  %v5173_v61 = vld [vmem:[%s6005_s9 + $0x60] sm:$0xff] }
 0x6b8   : > { %1968 = vmatpush.msra.mxu2 %v1941_v36  ;;  %3353 = vmatpush.msrb.mxu3 %v1941_v36  ;;  %6113 = vst [vmem:[#allocation25_spill] sm:$0xff] %v5063_v52  ;;  %v5183_v36 = vld [vmem:[%s6005_s9 + $0x70] sm:$0xff] }
 0x6b9   : > { %6134 = vst [vmem:[#allocation46_spill] sm:$0xff] %v5168_v58 }
 0x6ba   : > { %1969 = vmatpush.msra.mxu2 %v1940_v43  ;;  %3354 = vmatpush.msrb.mxu3 %v1940_v43  ;;  %6135 = vst [vmem:[#allocation47_spill] sm:$0xff] %v5173_v61  ;;  %v5198_v43 = vld [vmem:[%s6006_s10] sm:$0xf0] }
 0x6bb   : > { %3257 = vmatmul.msk.f32.vlgmr.msra.gmra.mxu2 %vm1378_vm8, %v1936_v56  ;;  %3258 = vmatmul.msk.f32.vlgmr.msrb.gmra.mxu3 %vm1378_vm8, %v1937_v8  ;;  %6137 = vst [vmem:[#allocation49_spill] sm:$0xff] %v5183_v36  ;;  %v5188_v56 = vld [vmem:[%s6005_s9 + $0x78] sm:$0xff]  ;;  %v5193_v8 = vld [vmem:[%s6006_s10] sm:$0xf] }
 0x6bc   : > { %6138 = vst [vmem:[#allocation50_spill] sm:$0xff] %v5188_v56 }
 0x6bd   : > { %6139 = vst [vmem:[#allocation51_spill] sm:$0xff] %v5193_v8 }
 0x6be   : > { %6140 = vst [vmem:[#allocation52_spill] sm:$0xff] %v5198_v43 }
 0x6c3   : > { %3259 = vmatmul.msk.f32.gmra.mxu3 %vm1378_vm8, %v1938_v0  ;;  %v5203_v0 = vld [vmem:[%s6006_s10 + $0x8] sm:$0xf] }
 0x6c4   : > { %6141 = vst [vmem:[#allocation53_spill] sm:$0xff] %v5203_v0 }
 0x6cb   : > { %3260 = vmatmul.msk.f32.gmra.mxu3 %vm1378_vm8, %v1939_v63  ;;  %v5208_v63 = vld [vmem:[%s6006_s10 + $0x8] sm:$0xf0] }
 0x6cc   : > { %6142 = vst [vmem:[#allocation54_spill] sm:$0xff] %v5208_v63 }
 0x73e   : > { %v1971_v12 = vpop.f32.mrf.mxu2  ;;  %v1974_v1 = vpop.f32.mrf.mxu3 }
 0x73f   : > { %v5006_v28 = vmul.f32 %v1984_v18, %v1971_v12  ;;  %v5008_v51 = vmul.f32 %v1986_v5, %v1974_v1 }
 0x741   : > { %6101 = vst [vmem:[#allocation13_spill] sm:$0xff] %v5006_v28  ;;  %2003 = vrot.lane.b32.xlu1 %v5006_v28, %s3677_s13  ;;  %2005 = vrot.lane.b32.xlu2 %v5008_v51, %s3677_s13 }
 0x742   : > { %6102 = vst [vmem:[#allocation9_spill] sm:$0xff] %v5008_v51 }
 0x746   : > { %v1977_v17 = vpop.f32.mrf.mxu3 }
 0x747   : > { %v5014_v62 = vmul.f32 %v1988_v44, %v1977_v17 }
 0x749   : > { %6103 = vst [vmem:[#allocation15_spill] sm:$0xff] %v5014_v62  ;;  %2007 = vrot.lane.b32.xlu0 %v5014_v62, %s3677_s13 }
 0x74e   : > { %v1980_v24 = vpop.f32.mrf.mxu3 }
 0x74f   : > { %v5018_v3 = vmul.f32 %v1990_v19, %v1980_v24 }
 0x751   : > { %6104 = vst [vmem:[#allocation16_spill] sm:$0xff] %v5018_v3  ;;  %2009 = vrot.lane.b32.xlu1 %v5018_v3, %s3677_s13 }
 0x79b   : > { %v2006_v16 = vpop.permute.xlu2 %2005 }
 0x79c   : > { %v2016_v21 = vmul.f32 %v2006_v16, %v1974_v1 }
 0x79e   : > { %2025 = vrot.lane.b32.xlu0 %v2016_v21, %s3702_s16 }
 0x7b3   : > { %v2004_v57 = vpop.permute.xlu1 %2003 }
 0x7b4   : > { %v2015_v14 = vmul.f32 %v2004_v57, %v1971_v12 }
 0x7b6   : > { %2023 = vrot.lane.b32.xlu2 %v2015_v14, %s3702_s16 }
 0x7bb   : > { %v2008_v33 = vpop.permute.xlu0 %2007 }
 0x7bc   : > { %v2017_v13 = vmul.f32 %v2008_v33, %v1977_v17 }
 0x7be   : > { %2027 = vrot.lane.b32.xlu1 %v2017_v13, %s3702_s16 }
 0x7c3   : > { %v2010_v49 = vpop.permute.xlu1 %2009 }
 0x7c4   : > { %v2018_v41 = vmul.f32 %v2010_v49, %v1980_v24 }
 0x7c6   : > { %2029 = vrot.lane.b32.xlu2 %v2018_v41, %s3702_s16 }
 0x810   : > { %v5022_v27 = vpop.permute.xlu2 %2023  ;;  %v5024_v11 = vpop.permute.xlu0 %2025 }
 0x811   : > { %6105 = vst [vmem:[#allocation17_spill] sm:$0xff] %v5022_v27 }
 0x812   : > { %6106 = vst [vmem:[#allocation18_spill] sm:$0xff] %v5024_v11 }
 0x820   : > { %v5210_v18 = vpop.permute.xlu2 %2029 }
 0x821   : > { %6143 = vst [vmem:[#allocation55_spill] sm:$0xff] %v5210_v18 }
 0x830   : > { %v5214_v12 = vpop.permute.xlu1 %2027 }
 0x831   : > { %6144 = vst [vmem:[#allocation56_spill] sm:$0xff] %v5214_v12 }
 0x832 LB: >> { %v3703_v44 = vmov 8   ;;  %v3704_v17 = vmov 1   ;;  %v6145_v23 = vld [vmem:[#allocation11_spill] sm:$0xff]  ;;  %v6149_v28 = vld [vmem:[#allocation13_spill] sm:$0xff]  ;;  %v6150_v10 = vld [vmem:[#allocation14_spill] sm:$0xff]  ;;  %v3705_v19 = vmov 0   ;;  %s3673_s12 = sphi %s5218_s12, %s2080_s12  }
 0x833   : >> { %3558 = vset.pattern.permute.xlu1 %v3703_v44  ;;  %3557 = vset.pattern.permute.xlu0 %v3704_v17  ;;  %v6148_v62 = vld [vmem:[#allocation15_spill] sm:$0xff]  ;;  %v6153_v3 = vld [vmem:[#allocation16_spill] sm:$0xff]  ;;  %v6154_v51 = vld [vmem:[#allocation9_spill] sm:$0xff]  ;;  %s3261_s14 = sshll.u32 %s3673_s12, 7  ;;  %s2080_s12 = sadd.s32 1, %s3673_s12  }
 0x834   : >> { %2099 = vperm.xlu0 %3557, %v6148_v62   ;;  %3559 = vset.pattern.permute.xlu2 %v3704_v17  ;;  %v6151_v18 = vld [vmem:[#allocation55_spill] sm:$0xff]  ;;  %v6155_v40 = vld [vmem:[#allocation10_spill] sm:$0xff]  ;;  %v6158_v55 = vld [vmem:[#allocation12_spill] sm:$0xff]  ;;  %s2082_s15 = sshra.s32 %s3261_s14, 7  ;;  %p2077_p11 = scmp.ge.s32.totalorder %s2080_s12, 2  }
 0x835   : >> { %2091 = vperm.xlu2 %3559, %v6149_v28   ;;  %v6152_v5 = vsub.f32 %v6150_v10, %v6151_v18  ;;  %v6156_v11 = vld [vmem:[#allocation18_spill] sm:$0xff]  ;;  %v6159_v27 = vld [vmem:[#allocation17_spill] sm:$0xff]  ;;  %v6162_v6 = vld [vmem:[#allocation48_spill] sm:$0xff]  ;;  %s3262_s24 = sshll.u32 %s2082_s15, 3  ;;  %s3352_s25 = sshll.u32 (%p2077_p11), %s3790_s21, 6 }
 0x836   : >> { %v6157_v50 = vsub.f32 %v6155_v40, %v6156_v11  ;;  %v6160_v29 = vsub.f32 %v6158_v55, %v6159_v27  ;;  %v6161_v56 = vld [vmem:[#allocation50_spill] sm:$0xff]  ;;  %v6163_v36 = vld [vmem:[#allocation49_spill] sm:$0xff]  ;;  %v6166_v61 = vld [vmem:[#allocation47_spill] sm:$0xff]  ;;  %s5253_s22 = scalar_lea.vmem %s4932_s30, %s3262_s24 [#allocation2]  ;;  %s3108_s13 = scalar_lea.hbm (%p2077_p11), %s6007_s11, %s3352_s25 }
 0x837   : >> { %v6164_v47 = vld [vmem:[#allocation45_spill] sm:$0xff]  ;;  %v6167_v15 = vld [vmem:[#allocation43_spill] sm:$0xff]  ;;  %v6168_v60 = vld [vmem:[#allocation40_spill] sm:$0xff]  ;;  %s3109_s29 = sshll.u32 (%p2077_p11), %s4932_s30, 4  ;;  %s3111_s14 = sshll.u32 (%p2077_p11), %s3108_s13, 4  ;;  %s3110_s29 = int_to_ptr.vmem [resolvable:$true] %s3109_s29  ;;  %s3112_s14 = int_to_ptr.hbm [resolvable:$true] %s3111_s14 }
 0x838   : >> { %v6146_v12 = vld [vmem:[#allocation56_spill] sm:$0xff]  ;;  %v6165_v37 = vld [vmem:[#allocation41_spill] sm:$0xff]  ;;  %v6169_v58 = vld [vmem:[#allocation46_spill] sm:$0xff]  ;;  %s6255_s15 = sand.u32 (%p2077_p11), 1, %s3661_s18   ;;  %s3623_s21 = scalar_lea.hbm (%p2077_p11), %s6007_s11, 128 }
 0x839   : >> { %v6147_v1 = vsub.f32 %v6145_v23, %v6146_v12  ;;  %v6170_v9 = vld [vmem:[#allocation42_spill] sm:$0xff]  ;;  %v6171_v4 = vld [vmem:[#allocation35_spill] sm:$0xff]  ;;  %v6172_v31 = vld [vmem:[#allocation44_spill] sm:$0xff]  ;;  %s3097_s24 = scalar_lea.sflag (%p2077_p11), [#allocation3], %s6255_s15 }
 0x83a   : >> { %v2088_v57 = vld [vmem:[%s5253_s22 + $0x20] sm:$0xff]  ;;  %v2089_v14 = vld [vmem:[%s5253_s22 + $0x30] sm:$0xff]  ;;  %v6175_v30 = vld [vmem:[#allocation36_spill] sm:$0xff] }
 0x83b   : >> { %2122 = vperm.xlu1 %3558, %v6147_v1   ;;  %v6173_v34 = vld [vmem:[#allocation37_spill] sm:$0xff]  ;;  %v6174_v39 = vld [vmem:[#allocation39_spill] sm:$0xff]  ;;  %v6176_v25 = vld [vmem:[#allocation38_spill] sm:$0xff] }
 0x83c   : >> { %2103 = vperm.xlu0 %3557, %v6153_v3   ;;  %v2087_v1 = vld [vmem:[%s5253_s22 + $0x10] sm:$0xff]  ;;  %v6178_v20 = vld [vmem:[#allocation20_spill] sm:$0xff]  ;;  %v6179_v52 = vld [vmem:[#allocation25_spill] sm:$0xff] }
 0x83d   : >> { %2095 = vperm.xlu2 %3559, %v6154_v51   ;;  %v6177_v42 = vld [vmem:[#allocation19_spill] sm:$0xff]  ;;  %v6180_v53 = vld [vmem:[#allocation26_spill] sm:$0xff]  ;;  %v6182_v7 = vld [vmem:[#allocation32_spill] sm:$0xff] }
 0x83e   : >> { %v6181_v45 = vld [vmem:[#allocation31_spill] sm:$0xff]  ;;  %v6183_v32 = vld [vmem:[#allocation21_spill] sm:$0xff]  ;;  %v6184_v22 = vld [vmem:[#allocation22_spill] sm:$0xff] }
 0x83f   : >> { %v6185_v26 = vld [vmem:[#allocation27_spill] sm:$0xff]  ;;  %v6186_v35 = vld [vmem:[#allocation28_spill] sm:$0xff]  ;;  %v6187_v2 = vld [vmem:[#allocation33_spill] sm:$0xff] }
 0x840   : >> { %v6188_v48 = vld [vmem:[#allocation34_spill] sm:$0xff]  ;;  %v6189_v38 = vld [vmem:[#allocation23_spill] sm:$0xff]  ;;  %v6190_v46 = vld [vmem:[#allocation24_spill] sm:$0xff] }
 0x841   : >> { %v6191_v54 = vld [vmem:[#allocation29_spill] sm:$0xff]  ;;  %v6192_v59 = vld [vmem:[#allocation30_spill] sm:$0xff] }
 0x843   : >> { %2127 = vperm.xlu1 %3558, %v6152_v5   ;;  %v2086_v5 = vld [vmem:[%s5253_s22] sm:$0xff] }
 0x844   : >> { %3560 = vset.pattern.permute.xlu0 %v3703_v44 }
 0x845   : >> { %2112 = vperm.xlu0 %3560, %v6160_v29   ;;  %3561 = vset.pattern.permute.xlu2 %v3705_v19 }
 0x846   : >> { %2208 = vperm.xlu2 %3561, %v6163_v36  }
 0x84b   : >> { %2117 = vperm.xlu1 %3558, %v6157_v50  }
 0x84d   : >> { %3563 = vset.pattern.permute.xlu0 %v3705_v19 }
 0x84e   : >> { %2203 = vperm.xlu0 %3563, %v6162_v6   ;;  %2198 = vperm.xlu2 %3561, %v6166_v61  }
 0x853   : >> { %3562 = vset.pattern.permute.xlu1 %v3705_v19 }
 0x854   : >> { %2213 = vperm.xlu1 %3562, %v6161_v56  }
 0x856   : >> { %2168 = vperm.xlu0 %3563, %v6165_v37   ;;  %2193 = vperm.xlu2 %3561, %v6169_v58  }
 0x85c   : >> { %2188 = vperm.xlu1 %3562, %v6164_v47  }
 0x85e   : >> { %2163 = vperm.xlu0 %3563, %v6168_v60   ;;  %2183 = vperm.xlu2 %3561, %v6172_v31  }
 0x864   : >> { %2178 = vperm.xlu1 %3562, %v6167_v15  }
 0x866   : >> { %2138 = vperm.xlu0 %3563, %v6171_v4   ;;  %2158 = vperm.xlu2 %3561, %v6174_v39  }
 0x86c   : >> { %2173 = vperm.xlu1 %3562, %v6170_v9  }
 0x86e   : >> { %2153 = vperm.xlu2 %3561, %v6176_v25  }
 0x874   : >> { %2148 = vperm.xlu1 %3562, %v6173_v34  }
 0x87c   : >> { %2143 = vperm.xlu1 %3562, %v6175_v30  }
 0x88f   : >> { %v2092_v21 = vpop.permute.xlu2 %2091 }
 0x890   : >> { %v2106_v3 = vmul.f32 %v2092_v21, %v2086_v5 }
 0x897   : >> { %v2096_v19 = vpop.permute.xlu2 %2095 }
 0x898   : >> { %v2107_v50 = vmul.f32 %v2096_v19, %v2087_v1  ;;  %v3290_v1 = vor.u32 %v6182_v7, %v6181_v45 }
 0x8a6   : >> { %v2100_v16 = vpop.permute.xlu0 %2099 }
 0x8a7   : >> { %v2108_v33 = vmul.f32 %v2100_v16, %v2088_v57 }
 0x8ad   : >> { %v2123_v24 = vpop.permute.xlu1 %2122 }
 0x8ae   : >> { %v2104_v49 = vpop.permute.xlu0 %2103  ;;  %v2132_v44 = vadd.f32 %v2123_v24, %v2108_v33  ;;  %v3266_v24 = vor.u32 %v6178_v20, %v6177_v42  ;;  %v3278_v33 = vor.u32 %v6180_v53, %v6179_v52 }
 0x8af   : >> { %v2109_v41 = vmul.f32 %v2104_v49, %v2089_v14 }
 0x8b5   : >> { %v2128_v13 = vpop.permute.xlu1 %2127 }
 0x8b6   : >> { %v2133_v17 = vadd.f32 %v2128_v13, %v2109_v41  ;;  %v5291_v41 = vpop.permute.xlu2 %2208 }
 0x8b7   : >> { %v2113_v57 = vpop.permute.xlu0 %2112 }
 0x8b8   : >> { %v2135_v29 = vpack.c.bf16 %v2133_v17, %v2132_v44  ;;  %v2130_v6 = vadd.f32 %v2113_v57, %v2106_v3  ;;  %v3270_v3 = vor.u32 %v6184_v22, %v6183_v32 }
 0x8ba   : >> { %2286 = vmatpush.bf16.msra.mxu0 %v2135_v29  ;;  %3355 = vmatpush.bf16.msra.mxu2 %v2135_v29 }
 0x8bb   : >> { %3356 = vmatpush.bf16.msra.mxu3 %v2135_v29  ;;  %v3282_v29 = vor.u32 %v6186_v35, %v6185_v26 }
 0x8bd   : >> { %v2118_v4 = vpop.permute.xlu1 %2117 }
 0x8be   : >> { %v2131_v16 = vadd.f32 %v2118_v4, %v2107_v50  ;;  %v3294_v50 = vor.u32 %v6188_v48, %v6187_v2  ;;  %v3274_v4 = vor.u32 %v6190_v46, %v6189_v38  ;;  %v2199_v19 = vpop.permute.xlu2 %2198 }
 0x8c0   : >> { %v2134_v14 = vpack.c.bf16 %v2131_v16, %v2130_v6  ;;  %v3286_v6 = vor.u32 %v6192_v59, %v6191_v54  ;;  %v2204_v13 = vpop.permute.xlu0 %2203 }
 0x8c2   : >> { %2287 = vmatpush.bf16.msra.mxu0 %v2134_v14  ;;  %3357 = vmatpush.bf16.msra.mxu2 %v2134_v14 }
 0x8c3   : >> { %3358 = vmatpush.bf16.msra.mxu3 %v2134_v14 }
 0x8c5   : >> { %3295 = vmatmul.msk.bf16.vlgmr.msra.gmra.mxu0 %vm1316_vm4, %v3266_v24  ;;  %3298 = vmatmul.msk.bf16.vlgmr.msra.gmra.mxu2 %vm1316_vm4, %v3278_v33 }
 0x8c6   : >> { %3301 = vmatmul.msk.bf16.vlgmr.msra.gmra.mxu3 %vm1316_vm4, %v3290_v1  ;;  %v5287_v5 = vpop.permute.xlu1 %2213  ;;  %v5295_v24 = vpop.permute.xlu2 %2193 }
 0x8c8   : >> { %v2169_v44 = vpop.permute.xlu0 %2168 }
 0x8ce   : >> { %v5289_v21 = vpop.permute.xlu1 %2188  ;;  %v5325_v18 = vpop.permute.xlu2 %2183 }
 0x8d0   : >> { %v5293_v16 = vpop.permute.xlu0 %2163 }
 0x8d5   : >> { %3296 = vmatmul.msk.bf16.gmra.mxu0 %vm1316_vm4, %v3270_v3  ;;  %3299 = vmatmul.msk.bf16.gmra.mxu2 %vm1316_vm4, %v3282_v29 }
 0x8d6   : >> { %3302 = vmatmul.msk.bf16.gmra.mxu3 %vm1316_vm4, %v3294_v50  ;;  %v2179_v49 = vpop.permute.xlu1 %2178  ;;  %v5362_v34 = vpop.permute.xlu2 %2158 }
 0x8d8   : >> { %v2139_v29 = vpop.permute.xlu0 %2138 }
 0x8de   : >> { %v2174_v17 = vpop.permute.xlu1 %2173  ;;  %v2154_v51 = vpop.permute.xlu2 %2153 }
 0x8e5   : >> { %3297 = vmatmul.msk.bf16.gmra.mxu0 %vm1316_vm4, %v3274_v4  ;;  %3300 = vmatmul.msk.bf16.gmra.mxu2 %vm1316_vm4, %v3286_v6 }
 0x8e6   : >> { %v2149_v14 = vpop.permute.xlu1 %2148 }
 0x942   : >> { %v2289_v57 = vpop.f32.mrf.mxu0 }
 0x943   : >> { %v5307_v7 = vadd.f32 %v2289_v57, %v2139_v29 }
 0x945   : >> { %6193 = vst [vmem:[#allocation57_spill] sm:$0xff] %v5307_v7  ;;  %v5318_v11 = vmul.f32 0.70710677, %v5307_v7 }
 0x947   : >> { %6194 = vst [vmem:[#allocation58_spill] sm:$0xff] %v5318_v11  ;;  %v2361_v26 = vmul.f32 %v5318_v11, %v5318_v11 }
 0x948   : >> { %v2304_v33 = vpop.f32.mrf.mxu2 }
 0x949   : >> { %v5297_v1 = vadd.f32 %v2304_v33, %v2169_v44  ;;  %v2319_v3 = vpop.f32.mrf.mxu3  ;;  %v2144_v33 = vpop.permute.xlu1 %2143  ;;  %v5351_v27 = vmin.f32 %v2361_v26, 16.0 }
 0x94a   : >> { %v5299_v50 = vadd.f32 %v2319_v3, %v2199_v19  ;;  %v2291_v4 = vpop.f32.mrf.mxu0 }
 0x94b   : >> { %v5302_v6 = vmul.f32 0.70710677, %v5297_v1  ;;  %v5321_v15 = vadd.f32 %v2291_v4, %v2144_v33  ;;  %v2363_v36 = vmul.f32 2.1237322e-06, %v5351_v27  ;;  %v5398_v52 = vmul.f32 0.5, %v5297_v1 }
 0x94c   : >> { %v5305_v2 = vmul.f32 0.70710677, %v5299_v50  ;;  %v5411_v56 = vmul.f32 0.5, %v5299_v50 }
 0x94d   : >> { %v2601_v9 = vmul.f32 %v5302_v6, %v5302_v6  ;;  %6195 = vst [vmem:[#allocation59_spill] sm:$0xff] %v5321_v15  ;;  %v5336_v4 = vmul.f32 0.70710677, %v5321_v15 }
 0x94e   : >> { %v2841_v44 = vmul.f32 %v5305_v2, %v5305_v2 }
 0x94f   : >> { %v5313_v10 = vmin.f32 %v2601_v9, 16.0  ;;  %6196 = vst [vmem:[#allocation60_spill] sm:$0xff] %v5336_v4  ;;  %v2401_v28 = vmul.f32 %v5336_v4, %v5336_v4 }
 0x950   : >> { %v5315_v19 = vmin.f32 %v2841_v44, 16.0  ;;  %v2306_v3 = vpop.f32.mrf.mxu2 }
 0x951   : >> { %v2603_v12 = vmul.f32 2.1237322e-06, %v5313_v10  ;;  %v5323_v57 = vadd.f32 %v2306_v3, %v2174_v17  ;;  %v2321_v29 = vpop.f32.mrf.mxu3 }
 0x952   : >> { %v2843_v20 = vmul.f32 2.1237322e-06, %v5315_v19  ;;  %v5328_v22 = vadd.f32 %v2321_v29, %v2204_v13  ;;  %v2294_v44 = vpop.f32.mrf.mxu0  ;;  %v5437_v58 = vmul.f32 3.8918573e-05, %v5315_v19 }
 0x953   : >> { %v2604_v9 = vadd.f32 0.00028619796, %v2603_v12  ;;  %v5331_v25 = vmul.f32 0.70710677, %v5323_v57  ;;  %v5344_v12 = vadd.f32 %v2294_v44, %v2149_v14 }
 0x954   : >> { %v2844_v23 = vadd.f32 0.00028619796, %v2843_v20  ;;  %v5339_v17 = vmul.f32 0.70710677, %v5328_v22 }
 0x955   : >> { %v2605_v33 = vmul.f32 %v2604_v9, %v5313_v10  ;;  %v2641_v13 = vmul.f32 %v5331_v25, %v5331_v25  ;;  %6197 = vst [vmem:[#allocation61_spill] sm:$0xff] %v5344_v12  ;;  %v5359_v14 = vmul.f32 0.70710677, %v5344_v12 }
 0x956   : >> { %v2845_v20 = vmul.f32 %v2844_v23, %v5315_v19  ;;  %v2881_v3 = vmul.f32 %v5339_v17, %v5339_v17 }
 0x957   : >> { %v5349_v29 = vmin.f32 %v2641_v13, 16.0  ;;  %v2606_v31 = vadd.f32 0.0036580483, %v2605_v33  ;;  %6198 = vst [vmem:[#allocation62_spill] sm:$0xff] %v5359_v14  ;;  %v2441_v38 = vmul.f32 %v5359_v14, %v5359_v14 }
 0x958   : >> { %v5355_v30 = vmin.f32 %v2881_v3, 16.0  ;;  %v2309_v9 = vpop.f32.mrf.mxu2  ;;  %v2846_v23 = vadd.f32 0.0036580483, %v2845_v20  ;;  %v5367_v3 = vmin.f32 %v2401_v28, 16.0  ;;  %v2364_v28 = vadd.f32 0.00028619796, %v2363_v36 }
 0x959   : >> { %v2643_v32 = vmul.f32 2.1237322e-06, %v5349_v29  ;;  %v5364_v26 = vadd.f32 %v2309_v9, %v2179_v49  ;;  %v2324_v35 = vpop.f32.mrf.mxu3  ;;  %v2607_v33 = vmul.f32 %v2606_v31, %v5313_v10  ;;  %v5382_v42 = vmin.f32 %v2441_v38, 16.0 }
 0x95a   : >> { %v2883_v44 = vmul.f32 2.1237322e-06, %v5355_v30  ;;  %v2847_v20 = vmul.f32 %v2846_v23, %v5315_v19  ;;  %v5374_v39 = vadd.f32 %v2324_v35, %v5291_v41  ;;  %v2296_v40 = vpop.f32.mrf.mxu0  ;;  %v2365_v36 = vmul.f32 %v2364_v28, %v5351_v27 }
 0x95b   : >> { %v2644_v13 = vadd.f32 0.00028619796, %v2643_v32  ;;  %v5379_v9 = vmul.f32 0.70710677, %v5364_v26  ;;  %v2608_v31 = vadd.f32 0.05243302, %v2607_v33 }
 0x95c   : >> { %v2884_v37 = vadd.f32 0.00028619796, %v2883_v44  ;;  %v2403_v44 = vmul.f32 2.1237322e-06, %v5367_v3  ;;  %v2848_v45 = vadd.f32 0.05243302, %v2847_v20 }
 0x95d   : >> { %v2645_v32 = vmul.f32 %v2644_v13, %v5349_v29  ;;  %v2681_v23 = vmul.f32 %v5379_v9, %v5379_v9  ;;  %v5387_v35 = vmul.f32 0.70710677, %v5374_v39  ;;  %v2609_v38 = vmul.f32 %v2608_v31, %v5313_v10 }
 0x95e   : >> { %v2885_v49 = vmul.f32 %v2884_v37, %v5355_v30  ;;  %v2404_v47 = vadd.f32 0.00028619796, %v2403_v44  ;;  %v2443_v48 = vmul.f32 2.1237322e-06, %v5382_v42  ;;  %v2366_v55 = vadd.f32 0.0036580483, %v2365_v36 }
 0x95f   : >> { %v2646_v41 = vadd.f32 0.0036580483, %v2645_v32  ;;  %v5389_v37 = vmin.f32 %v2681_v23, 16.0  ;;  %v2921_v33 = vmul.f32 %v5387_v35, %v5387_v35  ;;  %v2849_v32 = vmul.f32 %v2848_v45, %v5315_v19 }
 0x960   : >> { %v2886_v13 = vadd.f32 0.0036580483, %v2885_v49  ;;  %v2311_v46 = vpop.f32.mrf.mxu2  ;;  %v5403_v23 = vadd.f32 %v2296_v40, %v2154_v51  ;;  %v2405_v1 = vmul.f32 %v2404_v47, %v5367_v3  ;;  %v2444_v40 = vadd.f32 0.00028619796, %v2443_v48 }
 0x961   : >> { %v2683_v20 = vmul.f32 2.1237322e-06, %v5389_v37  ;;  %v5401_v49 = vmin.f32 %v2921_v33, 16.0  ;;  %v2647_v28 = vmul.f32 %v2646_v41, %v5349_v29  ;;  %v5408_v31 = vadd.f32 %v2311_v46, %v5325_v18  ;;  %v2326_v54 = vpop.f32.mrf.mxu3 }
 0x962   : >> { %6199 = vst [vmem:[#allocation63_spill] sm:$0xff] %v5403_v23  ;;  %v2887_v44 = vmul.f32 %v2886_v13, %v5355_v30  ;;  %v2610_v33 = vadd.f32 0.18741608, %v2609_v38  ;;  %v5417_v41 = vmul.f32 0.70710677, %v5403_v23  ;;  %v5420_v13 = vmul.f32 0.5, %v5323_v57  ;;  %v2299_v47 = vpop.f32.mrf.mxu0 }
 0x963   : >> { %v2684_v53 = vadd.f32 0.00028619796, %v2683_v20  ;;  %v2923_v45 = vmul.f32 2.1237322e-06, %v5401_v49  ;;  %v5423_v18 = vmul.f32 0.70710677, %v5408_v31  ;;  %v5426_v50 = vadd.f32 %v2326_v54, %v5287_v5 }
 0x964   : >> { %6200 = vst [vmem:[#allocation64_spill] sm:$0xff] %v5417_v41  ;;  %v2850_v36 = vadd.f32 0.18741608, %v2849_v32  ;;  %v2648_v20 = vadd.f32 0.05243302, %v2647_v28  ;;  %v5431_v48 = vmul.f32 0.5, %v5328_v22  ;;  %v2611_v54 = vmul.f32 %v2610_v33, %v5313_v10 }
 0x965   : >> { %v2685_v51 = vmul.f32 %v2684_v53, %v5389_v37  ;;  %v2924_v46 = vadd.f32 0.00028619796, %v2923_v45  ;;  %v2888_v38 = vadd.f32 0.05243302, %v2887_v44  ;;  %v2481_v53 = vmul.f32 %v5417_v41, %v5417_v41 }
 0x966   : >> { %v2721_v45 = vmul.f32 %v5423_v18, %v5423_v18  ;;  %v5440_v5 = vadd.f32 0.0036580483, %v2405_v1  ;;  %v2445_v32 = vmul.f32 %v2444_v40, %v5382_v42  ;;  %v5444_v59 = vmul.f32 0.5, %v5364_v26 }
 0x967   : >> { %v2925_v57 = vmul.f32 %v2924_v46, %v5401_v49  ;;  %v2686_v28 = vadd.f32 0.0036580483, %v2685_v51  ;;  %v5446_v22 = vmin.f32 %v2481_v53, 16.0  ;;  %v5451_v60 = vmul.f32 0.70710677, %v5426_v50 }
 0x968   : >> { %6201 = vst [vmem:[#allocation65_spill] sm:$0xff] %v5440_v5  ;;  %v2314_v44 = vpop.f32.mrf.mxu2  ;;  %v5448_v46 = vmin.f32 %v2721_v45, 16.0  ;;  %v2851_v61 = vmul.f32 %v2850_v36, %v5315_v19  ;;  %v2649_v33 = vmul.f32 %v2648_v20, %v5349_v29  ;;  %v2889_v1 = vmul.f32 %v2888_v38, %v5355_v30 }
 0x969   : >> { %v5457_v40 = vadd.f32 %v2299_v47, %v5362_v34  ;;  %v2926_v51 = vadd.f32 0.0036580483, %v2925_v57  ;;  %v2961_v53 = vmul.f32 %v5451_v60, %v5451_v60  ;;  %v5463_v45 = vadd.f32 %v2314_v44, %v5289_v21 }
 0x96a   : >> { %v2723_v26 = vmul.f32 2.1237322e-06, %v5448_v46  ;;  %v2612_v62 = vadd.f32 1.1283791, %v2611_v54  ;;  %v2446_v63 = vadd.f32 0.0036580483, %v2445_v32  ;;  %v2687_v36 = vmul.f32 %v2686_v28, %v5389_v37  ;;  %v2301_v8 = vpop.f32.mrf.mxu0 }
 0x96b   : >> { %6202 = vst [vmem:[#allocation66_spill] sm:$0xff] %v5457_v40  ;;  %v5467_v20 = vmul.f32 0.70710677, %v5457_v40  ;;  %v5470_v38 = vmul.f32 0.5, %v5374_v39  ;;  %v2483_v34 = vmul.f32 2.1237322e-06, %v5446_v22  ;;  %v2927_v28 = vmul.f32 %v2926_v51, %v5401_v49 }
 0x96c   : >> { %v2724_v47 = vadd.f32 0.00028619796, %v2723_v26  ;;  %v5473_v57 = vmin.f32 %v2961_v53, 16.0  ;;  %v2852_v0 = vadd.f32 1.1283791, %v2851_v61  ;;  %v2447_v26 = vmul.f32 %v2446_v63, %v5382_v42 }
 0x96d   : >> { %v2650_v43 = vadd.f32 0.18741608, %v2649_v33  ;;  %v2521_v21 = vmul.f32 %v5467_v20, %v5467_v20  ;;  %v5478_v54 = vmul.f32 0.70710677, %v5463_v45  ;;  %v2890_v32 = vadd.f32 0.18741608, %v2889_v1 }
 0x96e   : >> { %v2725_v44 = vmul.f32 %v2724_v47, %v5448_v46  ;;  %v2963_v39 = vmul.f32 2.1237322e-06, %v5473_v57  ;;  %v2688_v53 = vadd.f32 0.05243302, %v2687_v36  ;;  %v5489_v33 = vmul.f32 %v2366_v55, %v5351_v27 }
 0x96f   : >> { %v5484_v15 = vmin.f32 %v2521_v21, 16.0  ;;  %v2761_v61 = vmul.f32 %v5478_v54, %v5478_v54  ;;  %v2484_v7 = vadd.f32 0.00028619796, %v2483_v34  ;;  %v2651_v51 = vmul.f32 %v2650_v43, %v5349_v29 }
 0x970   : >> { %6203 = vst [vmem:[#allocation67_spill] sm:$0xff] %v5489_v33  ;;  %v2726_v1 = vadd.f32 0.0036580483, %v2725_v44  ;;  %v2964_v4 = vadd.f32 0.00028619796, %v2963_v39  ;;  %v5496_v63 = vadd.f32 %v2301_v8, %v5293_v16  ;;  %v2316_v36 = vpop.f32.mrf.mxu2  ;;  %v2891_v21 = vmul.f32 %v2890_v32, %v5355_v30 }
 0x971   : >> { %v2523_v47 = vmul.f32 2.1237322e-06, %v5484_v15  ;;  %v5493_v23 = vmin.f32 %v2761_v61, 16.0  ;;  %v2928_v11 = vadd.f32 0.05243302, %v2927_v28  ;;  %v5502_v34 = vmul.f32 %v2612_v62, %v5302_v6 }
 0x972   : >> { %6204 = vst [vmem:[#allocation68_spill] sm:$0xff] %v5496_v63  ;;  %v2727_v12 = vmul.f32 %v2726_v1, %v5448_v46  ;;  %v2965_v55 = vmul.f32 %v2964_v4, %v5473_v57  ;;  %v2448_v44 = vadd.f32 0.05243302, %v2447_v26  ;;  %v2689_v61 = vmul.f32 %v2688_v53, %v5389_v37 }
 0x973   : >> { %v2524_v43 = vadd.f32 0.00028619796, %v2523_v47  ;;  %v2763_v39 = vmul.f32 2.1237322e-06, %v5493_v23  ;;  %v2485_v8 = vmul.f32 %v2484_v7, %v5446_v22  ;;  %v5508_v41 = vadd.f32 %v2316_v36, %v5295_v24 }
 0x974   : >> { %v2728_v16 = vadd.f32 0.05243302, %v2727_v12  ;;  %v2966_v32 = vadd.f32 0.0036580483, %v2965_v55  ;;  %v5512_v4 = vmul.f32 0.70710677, %v5496_v63  ;;  %v5515_v62 = vmul.f32 %v2852_v0, %v5305_v2 }
 0x975   : >> { %v2525_v28 = vmul.f32 %v2524_v43, %v5484_v15  ;;  %v2764_v1 = vadd.f32 0.00028619796, %v2763_v39  ;;  %v2652_v6 = vadd.f32 1.1283791, %v2651_v51  ;;  %v2892_v26 = vadd.f32 1.1283791, %v2891_v21 }
 0x976   : >> { %6205 = vst [vmem:[#allocation69_spill] sm:$0xff] %v5512_v4  ;;  %v2929_v53 = vmul.f32 %v2928_v11, %v5401_v49  ;;  %v2729_v7 = vmul.f32 %v2728_v16, %v5448_v46  ;;  %v2561_v47 = vmul.f32 %v5512_v4, %v5512_v4  ;;  %v5523_v36 = vmul.f32 %v2448_v44, %v5382_v42 }
 0x977   : >> { %v2526_v12 = vadd.f32 0.0036580483, %v2525_v28  ;;  %v2765_v24 = vmul.f32 %v2764_v1, %v5493_v23  ;;  %v2690_v55 = vadd.f32 0.18741608, %v2689_v61  ;;  %v2486_v43 = vadd.f32 0.0036580483, %v2485_v8 }
 0x978   : >> { %6206 = vst [vmem:[#allocation70_spill] sm:$0xff] %v5523_v36  ;;  %v5526_v2 = vmul.f32 0.70710677, %v5508_v41  ;;  %v2967_v0 = vmul.f32 %v2966_v32, %v5473_v57  ;;  %v5530_v21 = vmin.f32 %v2561_v47, 16.0  ;;  %v2930_v39 = vadd.f32 0.18741608, %v2929_v53 }
 0x979   : >> { %v2527_v11 = vmul.f32 %v2526_v12, %v5484_v15  ;;  %v2766_v51 = vadd.f32 0.0036580483, %v2765_v24  ;;  %v5533_v16 = vmul.f32 0.5, %v5408_v31  ;;  %v2934_v61 = vmul.f32 3.8918573e-05, %v5401_v49 }
 0x97a   : >> { %v2801_v44 = vmul.f32 %v5526_v2, %v5526_v2  ;;  %v2730_v8 = vadd.f32 0.18741608, %v2729_v7  ;;  %v5539_v28 = vmul.f32 0.5, %v5426_v50  ;;  %v2563_v1 = vmul.f32 2.1237322e-06, %v5530_v21 }
 0x97b   : >> { %v2767_v32 = vmul.f32 %v2766_v51, %v5493_v23  ;;  %v5544_v12 = vmul.f32 %v2652_v6, %v5331_v25  ;;  %v5547_v53 = vmul.f32 %v2892_v26, %v5339_v17  ;;  %v2691_v31 = vmul.f32 %v2690_v55, %v5389_v37 }
 0x97c   : >> { %v5550_v24 = vmin.f32 %v2801_v44, 16.0  ;;  %v2487_v47 = vmul.f32 %v2486_v43, %v5446_v22  ;;  %v2968_v7 = vadd.f32 0.05243302, %v2967_v0  ;;  %v2528_v14 = vadd.f32 0.05243302, %v2527_v11 }
 0x97d   : >> { %v2564_v50 = vadd.f32 0.00028619796, %v2563_v1  ;;  %v2931_v63 = vmul.f32 %v2930_v39, %v5401_v49  ;;  %v5555_v51 = vmul.f32 0.5, %v5463_v45  ;;  %v2935_v6 = vadd.f32 0.001143296, %v2934_v61 }
 0x97e   : >> { %v2803_v25 = vmul.f32 2.1237322e-06, %v5550_v24  ;;  %v2731_v17 = vmul.f32 %v2730_v8, %v5448_v46  ;;  %v2768_v26 = vadd.f32 0.05243302, %v2767_v32  ;;  %v2974_v44 = vmul.f32 3.8918573e-05, %v5473_v57 }
 0x97f   : >> { %v2565_v55 = vmul.f32 %v2564_v50, %v5530_v21  ;;  %v2692_v40 = vadd.f32 1.1283791, %v2691_v31  ;;  %v2936_v0 = vmul.f32 %v2935_v6, %v5401_v49  ;;  %v2855_v11 = vadd.f32 0.001143296, %v5437_v58 }
 0x980   : >> { %v2804_v43 = vadd.f32 0.00028619796, %v2803_v25  ;;  %v2488_v39 = vadd.f32 0.05243302, %v2487_v47  ;;  %v2969_v45 = vmul.f32 %v2968_v7, %v5473_v57  ;;  %v2529_v1 = vmul.f32 %v2528_v14, %v5484_v15 }
 0x981   : >> { %v2975_v36 = vadd.f32 0.001143296, %v2974_v44  ;;  %v2932_v61 = vadd.f32 1.1283791, %v2931_v63  ;;  %v2937_v32 = vadd.f32 0.014752088, %v2936_v0  ;;  %v2856_v50 = vmul.f32 %v2855_v11, %v5315_v19 }
 0x982   : >> { %v2805_v8 = vmul.f32 %v2804_v43, %v5550_v24  ;;  %v2732_v5 = vadd.f32 1.1283791, %v2731_v17  ;;  %v2769_v31 = vmul.f32 %v2768_v26, %v5493_v23  ;;  %v2566_v25 = vadd.f32 0.0036580483, %v2565_v55 }
 0x983   : >> { %v2976_v6 = vmul.f32 %v2975_v36, %v5473_v57  ;;  %v2938_v58 = vmul.f32 %v2937_v32, %v5401_v49  ;;  %v2857_v47 = vadd.f32 0.014752088, %v2856_v50  ;;  %v2894_v7 = vmul.f32 3.8918573e-05, %v5355_v30 }
 0x984   : >> { %v2806_v33 = vadd.f32 0.0036580483, %v2805_v8  ;;  %v5572_v14 = vmul.f32 %v2692_v40, %v5379_v9  ;;  %v2970_v63 = vadd.f32 0.18741608, %v2969_v45  ;;  %v2530_v44 = vadd.f32 0.18741608, %v2529_v1 }
 0x985   : >> { %v2977_v43 = vadd.f32 0.014752088, %v2976_v6  ;;  %v2939_v17 = vadd.f32 0.112945676, %v2938_v58  ;;  %v2858_v26 = vmul.f32 %v2857_v47, %v5315_v19  ;;  %v2895_v55 = vadd.f32 0.001143296, %v2894_v7 }
 0x986   : >> { %v2807_v0 = vmul.f32 %v2806_v33, %v5550_v24  ;;  %v2770_v11 = vadd.f32 0.18741608, %v2769_v31  ;;  %v2567_v36 = vmul.f32 %v2566_v25, %v5530_v21  ;;  %v2774_v32 = vmul.f32 3.8918573e-05, %v5493_v23 }
 0x987   : >> { %v2978_v8 = vmul.f32 %v2977_v43, %v5473_v57  ;;  %v2940_v9 = vmul.f32 %v2939_v17, %v5401_v49  ;;  %v2859_v40 = vadd.f32 0.112945676, %v2858_v26  ;;  %v2896_v45 = vmul.f32 %v2895_v55, %v5355_v30 }
 0x988   : >> { %v2808_v50 = vadd.f32 0.05243302, %v2807_v0  ;;  %v2971_v1 = vmul.f32 %v2970_v63, %v5473_v57  ;;  %v2531_v33 = vmul.f32 %v2530_v44, %v5484_v15  ;;  %v2775_v58 = vadd.f32 0.001143296, %v2774_v32 }
 0x989   : >> { %v2979_v6 = vadd.f32 0.112945676, %v2978_v8  ;;  %v2941_v47 = vadd.f32 0.4994258, %v2940_v9  ;;  %v2860_v25 = vmul.f32 %v2859_v40, %v5315_v19  ;;  %v2897_v7 = vadd.f32 0.014752088, %v2896_v45 }
 0x98a   : >> { %v2809_v31 = vmul.f32 %v2808_v50, %v5550_v24  ;;  %v2771_v43 = vmul.f32 %v2770_v11, %v5493_v23  ;;  %v2776_v17 = vmul.f32 %v2775_v58, %v5493_v23  ;;  %v2814_v26 = vmul.f32 3.8918573e-05, %v5550_v24 }
 0x98b   : >> { %v2980_v0 = vmul.f32 %v2979_v6, %v5473_v57  ;;  %v2568_v55 = vadd.f32 0.05243302, %v2567_v36  ;;  %v2942_v63 = vmul.f32 %v2941_v47, %v5401_v49  ;;  %v2861_v44 = vadd.f32 0.4994258, %v2860_v25 }
 0x98c   : >> { %v2898_v8 = vmul.f32 %v2897_v7, %v5355_v30  ;;  %v5592_v32 = vmul.f32 %v2488_v39, %v5446_v22  ;;  %v2810_v50 = vadd.f32 0.18741608, %v2809_v31  ;;  %v2777_v40 = vadd.f32 0.014752088, %v2776_v17 }
 0x98d   : >> { %v2981_v9 = vadd.f32 0.4994258, %v2980_v0  ;;  %v2972_v45 = vadd.f32 1.1283791, %v2971_v1  ;;  %v5594_v11 = vadd.f32 1.0, %v2942_v63  ;;  %v2862_v6 = vmul.f32 %v2861_v44, %v5315_v19 }
 0x98e   : >> { %6207 = vst [vmem:[#allocation71_spill] sm:$0xff] %v5592_v32  ;;  %v2899_v58 = vadd.f32 0.112945676, %v2898_v8  ;;  %v2532_v4 = vadd.f32 1.1283791, %v2531_v33  ;;  %v2778_v49 = vmul.f32 %v2777_v40, %v5493_v23  ;;  %v5600_v25 = vmul.f32 %v2932_v61, %v5387_v35 }
 0x98f   : >> { %v2982_v36 = vmul.f32 %v2981_v9, %v5473_v57  ;;  %v2815_v47 = vadd.f32 0.001143296, %v2814_v26  ;;  %v2772_v39 = vadd.f32 1.1283791, %v2771_v43  ;;  %v2569_v31 = vmul.f32 %v2568_v55, %v5530_v21 }
 0x990   : >> { %3567 = vrcp.f32 %v5594_v11  ;;  %v2811_v1 = vmul.f32 %v2810_v50, %v5550_v24  ;;  %v5607_v19 = vadd.f32 1.0, %v2862_v6  ;;  %v2900_v33 = vmul.f32 %v2899_v58, %v5355_v30 }
 0x991   : >> { %v5605_v7 = vadd.f32 1.0, %v2982_v36  ;;  %v5611_v57 = vmul.f32 %v2732_v5, %v5423_v18  ;;  %v5614_v0 = vmul.f32 0.5, %v5508_v41  ;;  %v2779_v35 = vadd.f32 0.112945676, %v2778_v49 }
 0x992   : >> { %v2816_v61 = vmul.f32 %v2815_v47, %v5550_v24  ;;  %v5618_v43 = vmul.f32 %v2972_v45, %v5451_v60  ;;  %v5621_v17 = vmul.f32 %v2532_v4, %v5467_v20  ;;  %v2953_v26 = vand.u32 2147483647, %v5594_v11 }
 0x993   : >> { %3569 = vrcp.f32 %v5605_v7  ;;  %v5626_v55 = vmul.f32 %v2772_v39, %v5478_v54  ;;  %v5628_v18 = vadd.f32 0.18741608, %v2569_v31  ;;  %v2955_v41 = vand.u32 2147483648, %v5594_v11 }
 0x994   : >> { %6208 = vst [vmem:[#allocation72_spill] sm:$0xff] %v5621_v17  ;;  %3571 = vrcp.f32 %v5607_v19  ;;  %v5632_v5 = vadd.f32 1.1283791, %v2811_v1  ;;  %v2995_v60 = vand.u32 2147483648, %v5605_v7  ;;  %v2901_v63 = vadd.f32 0.4994258, %v2900_v33 }
 0x995   : >> { %v2780_v20 = vmul.f32 %v2779_v35, %v5493_v23  ;;  %vm2949_vm3 = vweird.f32 %v5594_v11  ;;  %v2993_v44 = vand.u32 2147483647, %v5605_v7  ;;  %v2817_v54 = vadd.f32 0.014752088, %v2816_v61 }
 0x996   : >> { %v3568_v4 = vpop.eup %3567  ;;  %v2694_v8 = vmul.f32 3.8918573e-05, %v5389_v37  ;;  %vm5640_vm5 = vcmp.eq.f32.partialorder %v2953_v26, 8.507059e+37  ;;  %v2873_v40 = vand.u32 2147483647, %v5607_v19  ;;  %v2875_v45 = vand.u32 2147483648, %v5607_v19 }
 0x997   : >> { %v2945_v50 = vmul.f32 %v3568_v4, %v5594_v11  ;;  %v2902_v6 = vmul.f32 %v2901_v63, %v5355_v30  ;;  %v2956_v58 = vor.u32 1.1754944e-38, %v2955_v41  ;;  %vm2989_vm6 = vweird.f32 %v5605_v7 }
 0x998   : >> { %v2781_v36 = vadd.f32 0.4994258, %v2780_v20  ;;  %v2818_v49 = vmul.f32 %v2817_v54, %v5550_v24  ;;  %vm2950_vm8 = vweird.f32 %v3568_v4  ;;  %v2996_v31 = vor.u32 1.1754944e-38, %v2995_v60 }
 0x999   : >> { %v3570_v47 = vpop.eup %3569  ;;  %v2946_v39 = vsub.f32 1.0, %v2945_v50  ;;  %vm2869_vm7 = vweird.f32 %v5607_v19  ;;  %v5650_v1 = vadd.f32 1.0, %v2902_v6  ;;  %vm5653_vm9 = vcmp.eq.f32.partialorder %v2993_v44, 8.507059e+37  ;;  %vm2951_vm12 = vmor %vm2949_vm3, %vm2950_vm8 }
 0x99a   : >> { %v3572_v33 = vpop.eup %3571  ;;  %v2985_v35 = vmul.f32 %v3570_v47, %v5605_v7  ;;  %v2782_v30 = vmul.f32 %v2781_v36, %v5493_v23  ;;  %v2819_v26 = vadd.f32 0.112945676, %v2818_v49  ;;  %v2695_v41 = vadd.f32 0.001143296, %v2694_v8 }
 0x99b   : >> { %v2947_v63 = vmul.f32 %v3568_v4, %v2946_v39  ;;  %v2865_v20 = vmul.f32 %v3572_v33, %v5607_v19  ;;  %vm5659_vm10 = vcmp.eq.f32.partialorder %v2873_v40, 8.507059e+37  ;;  %v2876_v54 = vor.u32 1.1754944e-38, %v2875_v45 }
 0x99c   : >> { %3573 = vrcp.f32 %v5650_v1  ;;  %v2986_v50 = vsub.f32 1.0, %v2985_v35  ;;  %vm2990_vm11 = vweird.f32 %v3570_v47  ;;  %v2734_v44 = vmul.f32 3.8918573e-05, %v5448_v46 }
 0x99d   : >> { %v5666_v6 = vmul.f32 3.8918573e-05, %v5313_v10  ;;  %v2948_v23 = vadd.f32 %v3568_v4, %v2947_v63  ;;  %v2866_v36 = vsub.f32 1.0, %v2865_v20  ;;  %v5668_v8 = vadd.f32 1.0, %v2782_v30  ;;  %vm2991_vm15 = vmor %vm2989_vm6, %vm2990_vm11 }
 0x99e   : >> { %v2820_v49 = vmul.f32 %v2819_v26, %v5550_v24  ;;  %v2987_v40 = vmul.f32 %v3570_v47, %v2986_v50  ;;  %v2913_v45 = vand.u32 2147483647, %v5650_v1  ;;  %v2915_v39 = vand.u32 2147483648, %v5650_v1 }
 0x99f   : >> { %v2696_v35 = vmul.f32 %v2695_v41, %v5389_v37  ;;  %v2952_v32 = vsel %vm2951_vm12, %v3568_v4, %v2948_v23  ;;  %v2867_v17 = vmul.f32 %v3572_v33, %v2866_v36  ;;  %vm2870_vm13 = vweird.f32 %v3572_v33 }
 0x9a0   : >> { %3575 = vrcp.f32 %v5668_v8  ;;  %v2957_v30 = vsel %vm5640_vm5, %v2956_v58, %v2952_v32  ;;  %v2988_v26 = vadd.f32 %v3570_v47, %v2987_v40  ;;  %vm2909_vm14 = vweird.f32 %v5650_v1  ;;  %vm2871_vm0 = vmor %vm2869_vm7, %vm2870_vm13 }
 0x9a1   : >> { %v5682_v11 = vmul.f32 3.8918573e-05, %v5349_v29  ;;  %v2958_v20 = vmul.f32 %v2957_v30, %v5600_v25  ;;  %v2868_v4 = vadd.f32 %v3572_v33, %v2867_v17  ;;  %v2821_v41 = vadd.f32 0.4994258, %v2820_v49 }
 0x9a2   : >> { %v3574_v63 = vpop.eup %3573  ;;  %v2697_v50 = vadd.f32 0.014752088, %v2696_v35  ;;  %v2992_v23 = vsel %vm2991_vm15, %v3570_v47, %v2988_v26  ;;  %vm5691_vm1 = vcmp.eq.f32.partialorder %v2913_v45, 8.507059e+37  ;;  %v2916_v58 = vor.u32 1.1754944e-38, %v2915_v39 }
 0x9a3   : >> { %v2905_v32 = vmul.f32 %v3574_v63, %v5650_v1  ;;  %v3317_v36 = vclamps-f32 %v2958_v20, 1.0  ;;  %v2997_v25 = vsel %vm5653_vm9, %v2996_v31, %v2992_v23  ;;  %v2872_v7 = vsel %vm2871_vm0, %v3572_v33, %v2868_v4 }
 0x9a4   : >> { %v2793_v17 = vand.u32 2147483647, %v5668_v8  ;;  %v2998_v49 = vmul.f32 %v2997_v25, %v5618_v43  ;;  %v2877_v19 = vsel %vm5659_vm10, %v2876_v54, %v2872_v7  ;;  %v2822_v40 = vmul.f32 %v2821_v41, %v5550_v24 }
 0x9a5   : >> { %v2906_v47 = vsub.f32 1.0, %v2905_v32  ;;  %v2878_v35 = vmul.f32 %v2877_v19, %v5515_v62  ;;  %vm2910_vm2 = vweird.f32 %v3574_v63  ;;  %v2698_v39 = vmul.f32 %v2697_v50, %v5389_v37 }
 0x9a6   : >> { %v3576_v45 = vpop.eup %3575  ;;  %v2735_v30 = vadd.f32 0.001143296, %v2734_v44  ;;  %v3318_v61 = vclamps-f32 %v2998_v49, 1.0  ;;  %v3015_v31 = vadd.f32 1.0, %v3317_v36  ;;  %v2795_v43 = vand.u32 2147483648, %v5668_v8  ;;  %vm2911_vm5 = vmor %vm2909_vm14, %vm2910_vm2 }
 0x9a7   : >> { %v2907_v33 = vmul.f32 %v3574_v63, %v2906_v47  ;;  %v2785_v26 = vmul.f32 %v3576_v45, %v5668_v8  ;;  %v3315_v20 = vclamps-f32 %v2878_v35, 1.0  ;;  %v5706_v60 = vadd.f32 1.0, %v2822_v40 }
 0x9a8   : >> { %v2699_v54 = vadd.f32 0.112945676, %v2698_v39  ;;  %v3016_v4 = vadd.f32 1.0, %v3318_v61  ;;  %vm2789_vm3 = vweird.f32 %v5668_v8  ;;  %vm2790_vm6 = vweird.f32 %v3576_v45 }
 0x9a9   : >> { %v2908_v24 = vadd.f32 %v3574_v63, %v2907_v33  ;;  %v2786_v41 = vsub.f32 1.0, %v2785_v26  ;;  %vm5712_vm8 = vcmp.eq.f32.partialorder %v2793_v17, 8.507059e+37  ;;  %3577 = vrcp.f32 %v5706_v60  ;;  %vm2791_vm7 = vmor %vm2789_vm3, %vm2790_vm6 }
 0x9aa   : >> { %v2736_v44 = vmul.f32 %v2735_v30, %v5448_v46  ;;  %v3031_v50 = vmul.f32 %v3015_v31, %v5470_v38  ;;  %v3032_v23 = vmul.f32 %v3016_v4, %v5539_v28  ;;  %v3013_v1 = vadd.f32 1.0, %v3315_v20 }
 0x9ab   : >> { %v2912_v32 = vsel %vm2911_vm5, %v3574_v63, %v2908_v24  ;;  %v2787_v36 = vmul.f32 %v3576_v45, %v2786_v41  ;;  %v2796_v7 = vor.u32 1.1754944e-38, %v2795_v43  ;;  %v2700_v17 = vmul.f32 %v2699_v54, %v5389_v37 }
 0x9ac   : >> { %v2917_v25 = vsel %vm5691_vm1, %v2916_v58, %v2912_v32  ;;  %v3040_v49 = vpack.c.bf16 %v3032_v23, %v3031_v50  ;;  %v2833_v40 = vand.u32 2147483647, %v5706_v60  ;;  %v2571_v38 = vmul.f32 %v5628_v18, %v5530_v21 }
 0x9ad   : >> { %v2918_v19 = vmul.f32 %v2917_v25, %v5547_v53  ;;  %v2788_v47 = vadd.f32 %v3576_v45, %v2787_v36  ;;  %v2701_v28 = vadd.f32 0.4994258, %v2700_v17  ;;  %v2737_v63 = vadd.f32 0.014752088, %v2736_v44 }
 0x9ae   : >> { %v2615_v9 = vadd.f32 0.001143296, %v5666_v6  ;;  %3069 = vmatpush.bf16.msra.mxu1 %v3040_v49  ;;  %3359 = vmatpush.bf16.msrb.mxu3 %v3040_v49  ;;  %v2655_v53 = vadd.f32 0.001143296, %v5682_v11  ;;  %v2534_v39 = vmul.f32 3.8918573e-05, %v5484_v15  ;;  %v3029_v6 = vmul.f32 %v3013_v1, %v5411_v56 }
 0x9af   : >> { %v3316_v58 = vclamps-f32 %v2918_v19, 1.0  ;;  %v2792_v35 = vsel %vm2791_vm7, %v3576_v45, %v2788_v47  ;;  %v3578_v30 = vpop.eup %3577  ;;  %v2702_v61 = vmul.f32 %v2701_v28, %v5389_v37  ;;  %v2738_v8 = vmul.f32 %v2737_v63, %v5448_v46 }
 0x9b0   : >> { %v2797_v18 = vsel %vm5712_vm8, %v2796_v7, %v2792_v35  ;;  %v2616_v31 = vmul.f32 %v2615_v9, %v5313_v10  ;;  %v2825_v26 = vmul.f32 %v3578_v30, %v5706_v60  ;;  %v2835_v45 = vand.u32 2147483648, %v5706_v60 }
 0x9b1   : >> { %v3014_v33 = vadd.f32 1.0, %v3316_v58  ;;  %v5741_v11 = vadd.f32 1.0, %v2702_v61  ;;  %v2739_v20 = vadd.f32 0.112945676, %v2738_v8  ;;  %v2656_v54 = vmul.f32 %v2655_v53, %v5349_v29 }
 0x9b2   : >> { %v2617_v43 = vadd.f32 0.014752088, %v2616_v31  ;;  %v2798_v37 = vmul.f32 %v2797_v18, %v5626_v55  ;;  %v2826_v24 = vsub.f32 1.0, %v2825_v26  ;;  %v2535_v41 = vadd.f32 0.001143296, %v2534_v39 }
 0x9b3   : >> { %v3030_v4 = vmul.f32 %v3014_v33, %v5431_v48  ;;  %v5746_v62 = vadd.f32 1.1283791, %v2571_v38  ;;  %v2813_v56 = vmul.f32 %v5632_v5, %v5526_v2  ;;  %vm2829_vm9 = vweird.f32 %v5706_v60 }
 0x9b4   : >> { %3579 = vrcp.f32 %v5741_v11  ;;  %v2827_v50 = vmul.f32 %v3578_v30, %v2826_v24  ;;  %vm2830_vm10 = vweird.f32 %v3578_v30  ;;  %v2740_v23 = vmul.f32 %v2739_v20, %v5448_v46 }
 0x9b5   : >> { %v3039_v44 = vpack.c.bf16 %v3030_v4, %v3029_v6  ;;  %vm5753_vm11 = vcmp.eq.f32.partialorder %v2833_v40, 8.507059e+37  ;;  %v2836_v55 = vor.u32 1.1754944e-38, %v2835_v45  ;;  %v2618_v32 = vmul.f32 %v2617_v43, %v5313_v10  ;;  %vm2831_vm12 = vmor %vm2829_vm9, %vm2830_vm10 }
 0x9b6   : >> { %v2657_v36 = vadd.f32 0.014752088, %v2656_v54  ;;  %v3313_v2 = vclamps-f32 %v2798_v37, 1.0  ;;  %v2828_v5 = vadd.f32 %v3578_v30, %v2827_v50  ;;  %v2741_v25 = vadd.f32 0.4994258, %v2740_v23 }
 0x9b7   : >> { %3070 = vmatpush.bf16.msra.mxu1 %v3039_v44  ;;  %3360 = vmatpush.bf16.msrb.mxu3 %v3039_v44  ;;  %v2536_v1 = vmul.f32 %v2535_v41, %v5484_v15  ;;  %v2713_v7 = vand.u32 2147483647, %v5741_v11  ;;  %v2619_v17 = vadd.f32 0.112945676, %v2618_v32  ;;  %v2574_v19 = vmul.f32 3.8918573e-05, %v5530_v21 }
 0x9b8   : >> { %v2658_v49 = vmul.f32 %v2657_v36, %v5349_v29  ;;  %v2832_v47 = vsel %vm2831_vm12, %v3578_v30, %v2828_v5  ;;  %v2715_v40 = vand.u32 2147483648, %v5741_v11  ;;  %v2742_v38 = vmul.f32 %v2741_v25, %v5448_v46 }
 0x9b9   : >> { %v2537_v28 = vadd.f32 0.014752088, %v2536_v1  ;;  %v2837_v9 = vsel %vm5753_vm11, %v2836_v55, %v2832_v47  ;;  %v2620_v60 = vmul.f32 %v2619_v17, %v5313_v10  ;;  %v2575_v35 = vadd.f32 0.001143296, %v2574_v19 }
 0x9ba   : >> { %v3580_v63 = vpop.eup %3579  ;;  %v2659_v58 = vadd.f32 0.112945676, %v2658_v49  ;;  %v2838_v53 = vmul.f32 %v2837_v9, %v2813_v56  ;;  %v3011_v39 = vadd.f32 1.0, %v3313_v2  ;;  %v5770_v61 = vadd.f32 1.0, %v2742_v38 }
 0x9bb   : >> { %v2705_v18 = vmul.f32 %v3580_v63, %v5741_v11  ;;  %v2621_v30 = vadd.f32 0.4994258, %v2620_v60  ;;  %v2538_v46 = vmul.f32 %v2537_v28, %v5484_v15  ;;  %v2576_v31 = vmul.f32 %v2575_v35, %v5530_v21 }
 0x9bc   : >> { %v2660_v8 = vmul.f32 %v2659_v58, %v5349_v29  ;;  %v3314_v33 = vclamps-f32 %v2838_v53, 1.0  ;;  %vm2709_vm13 = vweird.f32 %v5741_v11  ;;  %3581 = vrcp.f32 %v5770_v61 }
 0x9bd   : >> { %v2706_v6 = vsub.f32 1.0, %v2705_v18  ;;  %vm2710_vm14 = vweird.f32 %v3580_v63  ;;  %vm5777_vm15 = vcmp.eq.f32.partialorder %v2713_v7, 8.507059e+37  ;;  %v2622_v45 = vmul.f32 %v2621_v30, %v5313_v10 }
 0x9be   : >> { %v2661_v20 = vadd.f32 0.4994258, %v2660_v8  ;;  %v3012_v43 = vadd.f32 1.0, %v3314_v33  ;;  %v2539_v4 = vadd.f32 0.112945676, %v2538_v46  ;;  %v3027_v24 = vmul.f32 %v3011_v39, %v5555_v51  ;;  %vm2711_vm0 = vmor %vm2709_vm13, %vm2710_vm14 }
 0x9bf   : >> { %v2707_v54 = vmul.f32 %v3580_v63, %v2706_v6  ;;  %v2577_v37 = vadd.f32 0.014752088, %v2576_v31  ;;  %v2716_v41 = vor.u32 1.1754944e-38, %v2715_v40  ;;  %v5783_v56 = vadd.f32 1.0, %v2622_v45 }
 0x9c0   : >> { %v2662_v44 = vmul.f32 %v2661_v20, %v5349_v29  ;;  %v3028_v50 = vmul.f32 %v3012_v43, %v5614_v0  ;;  %v2540_v48 = vmul.f32 %v2539_v4, %v5484_v15  ;;  %v2454_v55 = vmul.f32 3.8918573e-05, %v5382_v42 }
 0x9c1   : >> { %v2708_v23 = vadd.f32 %v3580_v63, %v2707_v54  ;;  %v2753_v10 = vand.u32 2147483647, %v5770_v61  ;;  %v2755_v51 = vand.u32 2147483648, %v5770_v61  ;;  %3583 = vrcp.f32 %v5783_v56 }
 0x9c2   : >> { %v2578_v32 = vmul.f32 %v2577_v37, %v5530_v21  ;;  %v3582_v29 = vpop.eup %3581  ;;  %v3038_v36 = vpack.c.bf16 %v3028_v50, %v3027_v24  ;;  %v5796_v2 = vadd.f32 1.0, %v2662_v44  ;;  %v2541_v5 = vadd.f32 0.4994258, %v2540_v48 }
 0x9c3   : >> { %v2712_v0 = vsel %vm2711_vm0, %v3580_v63, %v2708_v23  ;;  %v2745_v11 = vmul.f32 %v3582_v29, %v5770_v61  ;;  %vm2749_vm1 = vweird.f32 %v5770_v61  ;;  %v2494_v1 = vmul.f32 3.8918573e-05, %v5446_v22 }
 0x9c4   : >> { %v2717_v25 = vsel %vm5777_vm15, %v2716_v41, %v2712_v0  ;;  %3071 = vmatpush.bf16.msra.mxu1 %v3038_v36  ;;  %3361 = vmatpush.bf16.msrb.mxu3 %v3038_v36  ;;  %v2633_v17 = vand.u32 2147483647, %v5783_v56  ;;  %v2635_v49 = vand.u32 2147483648, %v5783_v56  ;;  %3585 = vrcp.f32 %v5796_v2 }
 0x9c5   : >> { %v2718_v7 = vmul.f32 %v2717_v25, %v5572_v14  ;;  %v2746_v19 = vsub.f32 1.0, %v2745_v11  ;;  %vm5807_vm2 = vcmp.eq.f32.partialorder %v2753_v10, 8.507059e+37  ;;  %v2756_v40 = vor.u32 1.1754944e-38, %v2755_v51 }
 0x9c6   : >> { %v2542_v38 = vmul.f32 %v2541_v5, %v5484_v15  ;;  %vm2629_vm3 = vweird.f32 %v5783_v56  ;;  %v2675_v63 = vand.u32 2147483648, %v5796_v2  ;;  %v2579_v14 = vadd.f32 0.112945676, %v2578_v32 }
 0x9c7   : >> { %v3311_v28 = vclamps-f32 %v2718_v7, 1.0  ;;  %v3584_v9 = vpop.eup %3583  ;;  %v2747_v60 = vmul.f32 %v3582_v29, %v2746_v19  ;;  %vm2750_vm5 = vweird.f32 %v3582_v29  ;;  %v2673_v58 = vand.u32 2147483647, %v5796_v2 }
 0x9c8   : >> { %v5815_v35 = vadd.f32 1.0, %v2542_v38  ;;  %v2625_v53 = vmul.f32 %v3584_v9, %v5783_v56  ;;  %vm5818_vm6 = vcmp.eq.f32.partialorder %v2633_v17, 8.507059e+37  ;;  %v2636_v15 = vor.u32 1.1754944e-38, %v2635_v49  ;;  %vm2751_vm7 = vmor %vm2749_vm1, %vm2750_vm5 }
 0x9c9   : >> { %v2580_v18 = vmul.f32 %v2579_v14, %v5530_v21  ;;  %v2748_v30 = vadd.f32 %v3582_v29, %v2747_v60  ;;  %vm2669_vm8 = vweird.f32 %v5796_v2  ;;  %v2455_v8 = vadd.f32 0.001143296, %v2454_v55 }
 0x9ca   : >> { %3587 = vrcp.f32 %v5815_v35  ;;  %v3586_v46 = vpop.eup %3585  ;;  %v3009_v31 = vadd.f32 1.0, %v3311_v28  ;;  %v2626_v33 = vsub.f32 1.0, %v2625_v53  ;;  %v2676_v6 = vor.u32 1.1754944e-38, %v2675_v63 }
 0x9cb   : >> { %v2581_v26 = vadd.f32 0.4994258, %v2580_v18  ;;  %v2752_v45 = vsel %vm2751_vm7, %v3582_v29, %v2748_v30  ;;  %vm2630_vm9 = vweird.f32 %v3584_v9  ;;  %v2665_v20 = vmul.f32 %v3586_v46, %v5796_v2 }
 0x9cc   : >> { %vm5828_vm10 = vcmp.eq.f32.partialorder %v2673_v58, 8.507059e+37  ;;  %v2553_v54 = vand.u32 2147483647, %v5815_v35  ;;  %v2757_v4 = vsel %vm5807_vm2, %v2756_v40, %v2752_v45  ;;  %v2627_v37 = vmul.f32 %v3584_v9, %v2626_v33  ;;  %vm2631_vm13 = vmor %vm2629_vm3, %vm2630_vm9 }
 0x9cd   : >> { %v2555_v61 = vand.u32 2147483648, %v5815_v35  ;;  %v2582_v24 = vmul.f32 %v2581_v26, %v5530_v21  ;;  %v2758_v41 = vmul.f32 %v2757_v4, %v5611_v57  ;;  %v2666_v44 = vsub.f32 1.0, %v2665_v20 }
 0x9ce   : >> { %v2456_v50 = vmul.f32 %v2455_v8, %v5382_v42  ;;  %v2495_v23 = vadd.f32 0.001143296, %v2494_v1  ;;  %v3025_v48 = vmul.f32 %v3009_v31, %v5444_v59  ;;  %v2628_v55 = vadd.f32 %v3584_v9, %v2627_v37  ;;  %v6233_v59 = vld [vmem:[#allocation67_spill] sm:$0xff] }
 0x9cf   : >> { %vm2670_vm11 = vweird.f32 %v3586_v46  ;;  %vm2549_vm12 = vweird.f32 %v5815_v35  ;;  %v5841_v10 = vadd.f32 1.0, %v2582_v24  ;;  %v3312_v32 = vclamps-f32 %v2758_v41, 1.0 }
 0x9d0   : >> { %v3588_v51 = vpop.eup %3587  ;;  %v2667_v21 = vmul.f32 %v3586_v46, %v2666_v44  ;;  %v2457_v57 = vadd.f32 0.014752088, %v2456_v50  ;;  %v2496_v29 = vmul.f32 %v2495_v23, %v5446_v22  ;;  %v2632_v36 = vsel %vm2631_vm13, %v3584_v9, %v2628_v55  ;;  %vm2671_vm15 = vmor %vm2669_vm8, %vm2670_vm11  ;;  %v6232_v50 = vld [vmem:[#allocation69_spill] sm:$0xff] }
 0x9d1   : >> { %v2545_v0 = vmul.f32 %v3588_v51, %v5815_v35  ;;  %vm5848_vm14 = vcmp.eq.f32.partialorder %v2553_v54, 8.507059e+37  ;;  %3589 = vrcp.f32 %v5841_v10  ;;  %v3010_v5 = vadd.f32 1.0, %v3312_v32 }
 0x9d2   : >> { %v2637_v25 = vsel %vm5818_vm6, %v2636_v15, %v2632_v36  ;;  %v2668_v11 = vadd.f32 %v3586_v46, %v2667_v21  ;;  %v2556_v56 = vor.u32 1.1754944e-38, %v2555_v61  ;;  %v2374_v17 = vmul.f32 3.8918573e-05, %v5351_v27  ;;  %v6231_v61 = vld [vmem:[#allocation72_spill] sm:$0xff] }
 0x9d3   : >> { %v2638_v1 = vmul.f32 %v2637_v25, %v5502_v34  ;;  %v2546_v7 = vsub.f32 1.0, %v2545_v0  ;;  %v2414_v49 = vmul.f32 3.8918573e-05, %v5367_v3  ;;  %v3026_v19 = vmul.f32 %v3010_v5, %v5533_v16 }
 0x9d4   : >> { %v2672_v47 = vsel %vm2671_vm15, %v3586_v46, %v2668_v11  ;;  %v2458_v40 = vmul.f32 %v2457_v57, %v5382_v42  ;;  %v2497_v38 = vadd.f32 0.014752088, %v2496_v29  ;;  %vm2550_vm0 = vweird.f32 %v3588_v51 }
 0x9d5   : >> { %v3309_v28 = vclamps-f32 %v2638_v1, 1.0  ;;  %v2677_v63 = vsel %vm5828_vm10, %v2676_v6, %v2672_v47  ;;  %v2547_v34 = vmul.f32 %v3588_v51, %v2546_v7  ;;  %v3037_v14 = vpack.c.bf16 %v3026_v19, %v3025_v48  ;;  %vm2551_vm1 = vmor %vm2549_vm12, %vm2550_vm0  ;;  %v6236_v47 = vld [vmem:[#allocation71_spill] sm:$0xff] }
 0x9d6   : >> { %v2678_v2 = vmul.f32 %v2677_v63, %v5544_v12  ;;  %v2593_v9 = vand.u32 2147483647, %v5841_v10  ;;  %v2459_v60 = vadd.f32 0.112945676, %v2458_v40  ;;  %v2498_v16 = vmul.f32 %v2497_v38, %v5446_v22 }
 0x9d7   : >> { %v3590_v58 = vpop.eup %3589  ;;  %v3007_v53 = vadd.f32 1.0, %v3309_v28  ;;  %v2548_v39 = vadd.f32 %v3588_v51, %v2547_v34  ;;  %v2375_v15 = vadd.f32 0.001143296, %v2374_v17  ;;  %3072 = vmatpush.bf16.msra.mxu1 %v3037_v14  ;;  %3362 = vmatpush.bf16.msrb.mxu3 %v3037_v14  ;;  %v2595_v8 = vand.u32 2147483648, %v5841_v10 }
 0x9d8   : >> { %v3310_v18 = vclamps-f32 %v2678_v2, 1.0  ;;  %v2585_v30 = vmul.f32 %v3590_v58, %v5841_v10  ;;  %v2460_v12 = vmul.f32 %v2459_v60, %v5382_v42  ;;  %vm2590_vm2 = vweird.f32 %v3590_v58 }
 0x9d9   : >> { %v2552_v46 = vsel %vm2551_vm1, %v3588_v51, %v2548_v39  ;;  %v2499_v31 = vadd.f32 0.112945676, %v2498_v16  ;;  %v2376_v33 = vmul.f32 %v2375_v15, %v5351_v27  ;;  %v3023_v35 = vmul.f32 %v3007_v53, %v5398_v52  ;;  %v6238_v53 = vld [vmem:[#allocation68_spill] sm:$0xff] }
 0x9da   : >> { %v3008_v6 = vadd.f32 1.0, %v3310_v18  ;;  %v2557_v26 = vsel %vm5848_vm14, %v2556_v56, %v2552_v46  ;;  %v2586_v45 = vsub.f32 1.0, %v2585_v30  ;;  %v2461_v20 = vadd.f32 0.4994258, %v2460_v12 }
 0x9db   : >> { %v2500_v43 = vmul.f32 %v2499_v31, %v5446_v22  ;;  %v2377_v54 = vadd.f32 0.014752088, %v2376_v33  ;;  %v2415_v4 = vadd.f32 0.001143296, %v2414_v49  ;;  %v2558_v24 = vmul.f32 %v2557_v26, %v6231_v61  ;;  %v6235_v49 = vld [vmem:[#allocation70_spill] sm:$0xff] }
 0x9dc   : >> { %v3024_v37 = vmul.f32 %v3008_v6, %v5420_v13  ;;  %v2587_v41 = vmul.f32 %v3590_v58, %v2586_v45  ;;  %v2462_v44 = vmul.f32 %v2461_v20, %v5382_v42  ;;  %v2573_v23 = vmul.f32 %v5746_v62, %v6232_v50 }
 0x9dd   : >> { %v2501_v48 = vadd.f32 0.4994258, %v2500_v43  ;;  %v2378_v55 = vmul.f32 %v2377_v54, %v5351_v27  ;;  %v2416_v51 = vmul.f32 %v2415_v4, %v5367_v3  ;;  %vm2589_vm3 = vweird.f32 %v5841_v10  ;;  %v6234_v10 = vld [vmem:[#allocation65_spill] sm:$0xff] }
 0x9de   : >> { %v3036_v52 = vpack.c.bf16 %v3024_v37, %v3023_v35  ;;  %v2588_v32 = vadd.f32 %v3590_v58, %v2587_v41  ;;  %v5886_v21 = vadd.f32 1.0, %v2462_v44  ;;  %vm2591_vm5 = vmor %vm2589_vm3, %vm2590_vm2  ;;  %v2596_v13 = vor.u32 1.1754944e-38, %v2595_v8 }
 0x9df   : >> { %v2502_v57 = vmul.f32 %v2501_v48, %v5446_v22  ;;  %v2379_v29 = vadd.f32 0.112945676, %v2378_v55  ;;  %v2417_v36 = vadd.f32 0.014752088, %v2416_v51  ;;  %v3307_v62 = vclamps-f32 %v2558_v24, 1.0 }
 0x9e0   : >> { %3073 = vmatpush.bf16.msra.mxu1 %v3036_v52  ;;  %3363 = vmatpush.bf16.msrb.mxu3 %v3036_v52  ;;  %v2592_v0 = vsel %vm2591_vm5, %v3590_v58, %v2588_v32  ;;  %vm2594_vm6 = vcmp.eq.f32.partialorder %v2593_v9, 8.507059e+37  ;;  %3591 = vrcp.f32 %v5886_v21  ;;  %v2368_v5 = vadd.f32 0.05243302, %v6233_v59  ;;  %v6237_v9 = vld [vmem:[#allocation66_spill] sm:$0xff]  ;;  %v6241_v59 = vld [vmem:[#allocation8_spill] sm:$0xff] }
 0x9e1   : >> { %v2407_v25 = vmul.f32 %v6234_v10, %v5367_v3  ;;  %v2597_v11 = vsel %vm2594_vm6, %v2596_v13, %v2592_v0  ;;  %v5894_v56 = vadd.f32 1.0, %v2502_v57  ;;  %v2380_v7 = vmul.f32 %v2379_v29, %v5351_v27  ;;  %v6239_v32 = vld [vmem:[#allocation62_spill] sm:$0xff]  ;;  %v6240_v0 = vld [vmem:[#allocation5_spill] sm:$0xff] }
 0x9e2   : >> { %v2598_v1 = vmul.f32 %v2597_v11, %v2573_v23  ;;  %v2418_v17 = vmul.f32 %v2417_v36, %v5367_v3  ;;  %v2450_v19 = vadd.f32 0.18741608, %v6235_v49  ;;  %v2490_v40 = vadd.f32 0.18741608, %v6236_v47  ;;  %v6242_v11 = vld [vmem:[#allocation64_spill] sm:$0xff] }
 0x9e3   : >> { %3593 = vrcp.f32 %v5894_v56  ;;  %v3005_v28 = vadd.f32 1.0, %v3307_v62  ;;  %v2381_v63 = vadd.f32 0.4994258, %v2380_v7  ;;  %v2369_v14 = vmul.f32 %v2368_v5, %v5351_v27 }
 0x9e4   : >> { %v3308_v38 = vclamps-f32 %v2598_v1, 1.0  ;;  %v2419_v34 = vadd.f32 0.112945676, %v2418_v17  ;;  %v2408_v2 = vadd.f32 0.05243302, %v2407_v25  ;;  %v2333_v60 = vmul.f32 0.5, %v6237_v9 }
 0x9e5   : >> { %v2334_v39 = vmul.f32 0.5, %v6238_v53  ;;  %v2382_v15 = vmul.f32 %v2381_v63, %v5351_v27  ;;  %v2451_v30 = vmul.f32 %v2450_v19, %v5382_v42  ;;  %v2491_v8 = vmul.f32 %v2490_v40, %v5446_v22  ;;  %v6243_v17 = vld [vmem:[#allocation6_spill] sm:$0xff] }
 0x9e6   : >> { %v3592_v58 = vpop.eup %3591  ;;  %v3006_v16 = vadd.f32 1.0, %v3308_v38  ;;  %v2420_v18 = vmul.f32 %v2419_v34, %v5367_v3  ;;  %v3021_v46 = vmul.f32 %v3005_v28, %v2333_v60  ;;  %v2370_v45 = vadd.f32 0.18741608, %v2369_v14  ;;  %v6244_v60 = vld [vmem:[#allocation61_spill] sm:$0xff] }
 0x9e7   : >> { %v2465_v12 = vmul.f32 %v3592_v58, %v5886_v21  ;;  %v5909_v33 = vadd.f32 1.0, %v2382_v15  ;;  %v2475_v35 = vand.u32 2147483648, %v5886_v21  ;;  %v2409_v43 = vmul.f32 %v2408_v2, %v5367_v3 }
 0x9e8   : >> { %v3022_v31 = vmul.f32 %v3006_v16, %v2334_v39  ;;  %v2421_v6 = vadd.f32 0.4994258, %v2420_v18  ;;  %v2452_v42 = vadd.f32 1.1283791, %v2451_v30  ;;  %vm2470_vm8 = vweird.f32 %v3592_v58  ;;  %v6245_v16 = vld [vmem:[#allocation58_spill] sm:$0xff]  ;;  %v6246_v18 = vld [vmem:[#allocation63_spill] sm:$0xff] }
 0x9e9   : >> { %v3594_v26 = vpop.eup %3593  ;;  %v2466_v20 = vsub.f32 1.0, %v2465_v12  ;;  %3595 = vrcp.f32 %v5909_v33  ;;  %v2473_v37 = vand.u32 2147483647, %v5886_v21  ;;  %v2492_v61 = vadd.f32 1.1283791, %v2491_v8 }
 0x9ea   : >> { %v3035_v54 = vpack.c.bf16 %v3022_v31, %v3021_v46  ;;  %v2505_v4 = vmul.f32 %v3594_v26, %v5894_v56  ;;  %vm2469_vm7 = vweird.f32 %v5886_v21  ;;  %v2422_v41 = vmul.f32 %v2421_v6, %v5367_v3 }
 0x9eb   : >> { %v2467_v22 = vmul.f32 %v3592_v58, %v2466_v20  ;;  %v2476_v50 = vor.u32 1.1754944e-38, %v2475_v35  ;;  %v2513_v23 = vand.u32 2147483647, %v5894_v56  ;;  %v2515_v48 = vand.u32 2147483648, %v5894_v56  ;;  %vm2471_vm9 = vmor %vm2469_vm7, %vm2470_vm8  ;;  %v6247_v35 = vld [vmem:[#allocation7_spill] sm:$0xff] }
 0x9ec   : >> { %3074 = vmatpush.bf16.msra.mxu1 %v3035_v54  ;;  %3364 = vmatpush.bf16.msrb.mxu3 %v3035_v54  ;;  %v2506_v24 = vsub.f32 1.0, %v2505_v4  ;;  %vm2510_vm10 = vweird.f32 %v3594_v26  ;;  %v5920_v51 = vadd.f32 1.0, %v2422_v41  ;;  %v2371_v52 = vmul.f32 %v2370_v45, %v5351_v27 }
 0x9ed   : >> { %v2468_v44 = vadd.f32 %v3592_v58, %v2467_v22  ;;  %v2453_v13 = vmul.f32 %v2452_v42, %v6239_v32  ;;  %vm2474_vm11 = vcmp.eq.f32.partialorder %v2473_v37, 8.507059e+37  ;;  %v3706_v21 = vmov 9   ;;  %v6248_v37 = vld [vmem:[#allocation60_spill] sm:$0xff]  ;;  %v6250_v32 = vld [vmem:[#allocation59_spill] sm:$0xff] }
 0x9ee   : >> { %v2507_v55 = vmul.f32 %v3594_v26, %v2506_v24  ;;  %3566 = vset.pattern.permute.xlu1 %v3706_v21  ;;  %3565 = vset.pattern.permute.xlu0 %v3706_v21  ;;  %vm2509_vm12 = vweird.f32 %v5894_v56  ;;  %3597 = vrcp.f32 %v5920_v51  ;;  %v2410_v5 = vadd.f32 0.18741608, %v2409_v43 }
 0x9ef   : >> { %v2472_v57 = vsel %vm2471_vm9, %v3592_v58, %v2468_v44  ;;  %v3596_v29 = vpop.eup %3595  ;;  %3050 = vperm.xlu1 %3566, %v6240_v0   ;;  %3046 = vperm.xlu0 %3565, %v6241_v59   ;;  %vm2511_vm13 = vmor %vm2509_vm12, %vm2510_vm10  ;;  %v2516_v10 = vor.u32 1.1754944e-38, %v2515_v48  ;;  %v2493_v1 = vmul.f32 %v2492_v61, %v6242_v11  ;;  %vm2514_vm14 = vcmp.eq.f32.partialorder %v2513_v23, 8.507059e+37  ;;  %v6253_v59 = vld [vmem:[#allocation53_spill] sm:$0xff] }
 0x9f0   : >> { %v2477_v36 = vsel %vm2474_vm11, %v2476_v50, %v2472_v57  ;;  %v2508_v62 = vadd.f32 %v3594_v26, %v2507_v55  ;;  %v2385_v25 = vmul.f32 %v3596_v29, %v5909_v33  ;;  %3564 = vset.pattern.permute.xlu2 %v3706_v21  ;;  %v2372_v47 = vadd.f32 1.1283791, %v2371_v52  ;;  %v6249_v55 = vld [vmem:[#allocation57_spill] sm:$0xff] }
 0x9f1   : >> { %v2478_v27 = vmul.f32 %v2477_v36, %v2453_v13  ;;  %3042 = vperm.xlu2 %3564, %v6243_v17   ;;  %v2395_v38 = vand.u32 2147483648, %v5909_v33  ;;  %v2411_v28 = vmul.f32 %v2410_v5, %v5367_v3  ;;  %vm2390_vm15 = vweird.f32 %v3596_v29  ;;  %v6251_v36 = vld [vmem:[#allocation51_spill] sm:$0xff]  ;;  %v6254_v5 = vld [vmem:[#allocation54_spill] sm:$0xff] }
 0x9f2   : >> { %v2512_v7 = vsel %vm2511_vm13, %v3594_v26, %v2508_v62  ;;  %v2386_v19 = vsub.f32 1.0, %v2385_v25  ;;  %v2393_v34 = vand.u32 2147483647, %v5909_v33  ;;  %v2331_v58 = vmul.f32 0.5, %v6244_v60  ;;  %v6252_v62 = vld [vmem:[#allocation52_spill] sm:$0xff]  ;;  %v3602_v60 = vld [vmem:[%s5253_s22 + $0x30] sm:$0xff] }
 0x9f3   : >> { %v3305_v56 = vclamps-f32 %v2478_v27, 1.0  ;;  %v2517_v49 = vsel %vm2514_vm14, %v2516_v10, %v2512_v7  ;;  %vm2389_vm0 = vweird.f32 %v5909_v33  ;;  %v2373_v15 = vmul.f32 %v2372_v47, %v6245_v16 }
 0x9f4   : >> { %v2518_v40 = vmul.f32 %v2517_v49, %v2493_v1  ;;  %v2387_v63 = vmul.f32 %v3596_v29, %v2386_v19  ;;  %v3598_v14 = vpop.eup %3597  ;;  %v2332_v30 = vmul.f32 0.5, %v6246_v18  ;;  %vm2391_vm1 = vmor %vm2389_vm0, %vm2390_vm15  ;;  %v2396_v3 = vor.u32 1.1754944e-38, %v2395_v38  ;;  %v3599_v1 = vld [vmem:[%s5253_s22] sm:$0xff] }
 0x9f5   : >> { %v3003_v9 = vadd.f32 1.0, %v3305_v56  ;;  %v2425_v39 = vmul.f32 %v3598_v14, %v5920_v51  ;;  %v2412_v12 = vadd.f32 1.1283791, %v2411_v28  ;;  %vm2394_vm2 = vcmp.eq.f32.partialorder %v2393_v34, 8.507059e+37 }
 0x9f6   : >> { %v3306_v2 = vclamps-f32 %v2518_v40, 1.0  ;;  %v2388_v53 = vadd.f32 %v3596_v29, %v2387_v63  ;;  %v2435_v20 = vand.u32 2147483648, %v5920_v51  ;;  %vm2430_vm3 = vweird.f32 %v3598_v14  ;;  %v3600_v40 = vld [vmem:[%s5253_s22 + $0x20] sm:$0xff]  ;;  %v3601_v63 = vld [vmem:[%s5253_s22 + $0x10] sm:$0xff] }
 0x9f7   : >> { %v2426_v31 = vsub.f32 1.0, %v2425_v39  ;;  %v3019_v6 = vmul.f32 %v3003_v9, %v2331_v58  ;;  %v2433_v54 = vand.u32 2147483647, %v5920_v51  ;;  %vm2429_vm5 = vweird.f32 %v5920_v51 }
 0x9f8   : >> { %v3004_v8 = vadd.f32 1.0, %v3306_v2  ;;  %v2392_v46 = vsel %vm2391_vm1, %v3596_v29, %v2388_v53  ;;  %vm2431_vm6 = vmor %vm2429_vm5, %vm2430_vm3  ;;  %v2436_v22 = vor.u32 1.1754944e-38, %v2435_v20  ;;  %v2413_v61 = vmul.f32 %v2412_v12, %v6248_v37 }
 0x9f9   : >> { %v2397_v45 = vsel %vm2394_vm2, %v2396_v3, %v2392_v46  ;;  %3054 = vperm.xlu2 %3564, %v6247_v35   ;;  %v2427_v43 = vmul.f32 %v3598_v14, %v2426_v31  ;;  %vm2434_vm8 = vcmp.eq.f32.partialorder %v2433_v54, 8.507059e+37  ;;  %v2329_v52 = vmul.f32 0.5, %v6249_v55 }
 0x9fa   : >> { %v3020_v26 = vmul.f32 %v3004_v8, %v2332_v30  ;;  %v2398_v33 = vmul.f32 %v2397_v45, %v2373_v15  ;;  %v2330_v13 = vmul.f32 0.5, %v6250_v32  ;;  %v3322_v0 = vor.u32 %v6252_v62, %v6251_v36 }
 0x9fb   : >> { %v2428_v42 = vadd.f32 %v3598_v14, %v2427_v43  ;;  %v3326_v27 = vor.u32 %v6254_v5, %v6253_v59 }
 0x9fc   : >> { %v3034_v4 = vpack.c.bf16 %v3020_v26, %v3019_v6  ;;  %v3303_v24 = vclamps-f32 %v2398_v33, 1.0 }
 0x9fd   : >> { %v2432_v41 = vsel %vm2431_vm6, %v3598_v14, %v2428_v42 }
 0x9fe   : >> { %3075 = vmatpush.bf16.msra.mxu1 %v3034_v4  ;;  %3365 = vmatpush.bf16.msrb.mxu3 %v3034_v4  ;;  %v2437_v44 = vsel %vm2434_vm8, %v2436_v22, %v2432_v41  ;;  %v3001_v48 = vadd.f32 1.0, %v3303_v24 }
 0x9ff   : >> { %v2438_v50 = vmul.f32 %v2437_v44, %v2413_v61 }
 0xa00   : >> { %v3017_v51 = vmul.f32 %v3001_v48, %v2329_v52 }
 0xa01   : >> { %v3304_v23 = vclamps-f32 %v2438_v50, 1.0 }
 0xa03   : >> { %v3002_v57 = vadd.f32 1.0, %v3304_v23 }
 0xa05   : >> { %v3018_v21 = vmul.f32 %v3002_v57, %v2330_v13 }
 0xa07   : >> { %v3033_v29 = vpack.c.bf16 %v3018_v21, %v3017_v51 }
 0xa09   : >> { %3076 = vmatpush.bf16.msra.mxu1 %v3033_v29  ;;  %3366 = vmatpush.bf16.msrb.mxu3 %v3033_v29 }
 0xa0c   : >> { %3077 = vmatmul.bf16.vlgmr.msra.gmra.mxu1 %v3322_v0  ;;  %3082 = vmatmul.bf16.vlgmr.msrb.gmra.mxu3 %v3326_v27 }
 0xa4b   : >> { %v3043_v10 = vpop.permute.xlu2 %3042 }
 0xa53   : >> { %v3055_v14 = vpop.permute.xlu2 %3054 }
 0xa61   : >> { %v3051_v17 = vpop.permute.xlu1 %3050  ;;  %v3047_v49 = vpop.permute.xlu0 %3046 }
 0xa89   : >> { %v3078_v25 = vpop.f32.mrf.mxu1 }
 0xa8a   : >> { %v3079_v11 = vadd.f32 %v3078_v25, %v3043_v10 }
 0xa8c   : >> { %v3088_v7 = vadd.f32 %v3599_v1, %v3079_v11 }
 0xa8e   : >> { %3092 = vst [vmem:[%s5253_s22] sm:$0xff] %v3088_v7 }
 0xa8f   : >> { %v3083_v56 = vpop.f32.mrf.mxu3 }
 0xa90   : >> { %v3084_v19 = vadd.f32 %v3083_v56, %v3051_v17 }
 0xa91   : >> { %v3080_v47 = vpop.f32.mrf.mxu1 }
 0xa92   : >> { %v3090_v38 = vadd.f32 %v3600_v40, %v3084_v19  ;;  %v3081_v28 = vadd.f32 %v3080_v47, %v3047_v49 }
 0xa94   : >> { %3094 = vst [vmem:[%s5253_s22 + $0x20] sm:$0xff] %v3090_v38  ;;  %v3089_v34 = vadd.f32 %v3601_v63, %v3081_v28 }
 0xa96   : >> { %3093 = vst [vmem:[%s5253_s22 + $0x10] sm:$0xff] %v3089_v34 }
 0xa97   : >> { %v3085_v2 = vpop.f32.mrf.mxu3 }
 0xa98   : >> { %v3086_v9 = vadd.f32 %v3085_v2, %v3055_v14  ;;  %2079 = sbr.rel (!%p2077_p11) target bundleno = 2098 (0x832), region = 110 }
 0xa9a   : >> { %v3091_v58 = vadd.f32 %v3602_v60, %v3086_v9 }
 0xa9c   : >> { %3095 = vst [vmem:[%s5253_s22 + $0x30] sm:$0xff] %v3091_v58  ;;  %s3617_s22 = sshra.s32 (%p2077_p11), %s3112_s14, 4  ;;  %s3618_s22 = int_to_ptr.hbm [resolvable:$true] %s3617_s22 }
 0xa9d   : > { %s3619_s1 = scalar_lea.hbm %s3618_s22, 64  ;;  %p3624_p1 = scmp.lt.s32.totalorder %s3618_s22, %s6007_s11 }
 0xa9e   : > { %p3620_p12 = scmp.ne.s32.totalorder %s3618_s22, %s3619_s1  ;;  %p3625_p2 = scmp.lt.s32.totalorder %s3623_s21, %s3619_s1 }
 0xaa0   : > { %p3621_p13 = pnand %p3620_p12, %p3807_p5  ;;  %p3626_p3 = por %p3625_p2, %p3624_p1 }
 0xaa2   : > { %p3622_p0 = pneg %p3621_p13 }
 0xaa4   : > { %p3627_p4 = pnand %p3626_p3, %p3622_p0 }
 0xaa6   : > { %3630 = shalt.err (!%p3627_p4)
}
 0xaa7   : > { %s3707_s30 = smov 256   ;;  %s3708_s25 = smov 16  }
 0xaa8   : > { %3367 = dma.vmem_to_hbm [thread:$0]  (%p3807_p5), %s3110_s29, 1024, %s3112_s14, %s3097_s24, %s3707_s30, %s3707_s30, %s3708_s25  }
 0xaa9 PF: > { %p3373_p7 = scmp.ge.s32.totalorder %s3669_s20, 2  ;;  %s3126_s2 = sand.u32 1, %s3657_s17  }
 0xaaa   : > { %s3127_s3 = scalar_lea.sflag [#allocation3], %s3126_s2 }
 0xaab   : > { %p3370_p8 = pnand %p3373_p7, %p3811_p6 }
 0xaad   : > { %p3371_p9 = pneg %p3370_p8 }
 0xaaf   : > { %3652 = dma.done.wait (%p3371_p9), %s3127_s3, 1024  }
 0xab0   : > { %3654 = vsyncadd (%p3371_p9), %s3127_s3, 4294966272  ;;  %p21_p10 = scmp.ge.s32.totalorder %s3794_s23, 4   ;;  %s6256_s17 = smov %s3661_s18 }
 0xab1   : > { %s6257_s18 = smov %s3665_s19  ;;  %s6258_s19 = smov %s3805_s26 }
 0xab2   : > { %s6259_s20 = smov %s3794_s23  ;;  %23 = sbr.rel (!%p21_p10) target bundleno = 8 (0x8), region = 121 }
 0xab7   :  { %3133 = vsyncpa [#allocation3], 1 }
 0xab8   :  { %3135 = vsyncpa [#allocation3 + $0x1], 1 }

</bundles_post_ra>
